<compile_context>
chip_gen: v7x
topology: tpu7x:2x2x1
jax: 0.10.0
libtpu: 0.0.40
codegen_flags: <defaults>
</compile_context>

<pallas_src>
import functools

import jax
import jax.numpy as jnp
import numpy as np
from jax.experimental import pallas as pl
from jax.experimental.pallas import tpu as pltpu


def _round_up(x, m):
    return ((x + m - 1) // m) * m


def _tcn_block_kernel(x_ref, w1_ref, b1_ref, w2_ref, b2_ref, *rest,
                      has_downsample, K, dilation, pad, halo, TL, SUB, C_in):
    """One (batch, time-tile) step.

    x_ref : (1, TL, C_in)      bf16 current time tile (channels NOT padded)
    w*_ref: (K, C_in_p/C_out_p, C_out_p) bf16 per-tap matmul matrices
    b*_ref: (1, C_out_p) f32
    wd_ref: (C_in_p, C_out_p) bf16, bd_ref: (1, C_out_p) f32 (only if downsample)
    o_ref : (1, TL, C_out_p)   bf16
    xs_ref: (halo+TL, C_in_p)  bf16 scratch -- causally padded conv1 input
    hs_ref: (halo+TL, C_out_p) bf16 scratch -- causally padded conv2 input
    """
    if has_downsample:
        wd_ref, bd_ref, o_ref, xs_ref, hs_ref = rest
    else:
        o_ref, xs_ref, hs_ref = rest

    l = pl.program_id(1)
    gap = halo - pad               # always-zero filler rows (sublane alignment)
    c_in_p = xs_ref.shape[1]
    nsub = TL // SUB

    # --- init / carry of the causal halo -------------------------------------
    # CORRECTNESS INVARIANT: the time-tile axis must be the innermost grid axis
    # and marked "arbitrary" so tiles of one batch row execute sequentially on
    # one core; otherwise the carried halo reads stale data.
    if pad > 0 or C_in < c_in_p:
        @pl.when(l == 0)
        def _init():
            # Zero everything once per batch row: causal left padding for the
            # first tile, and permanent zeros in padded input lanes
            # [C_in, C_in_p) -- those lanes are never written again.
            xs_ref[...] = jnp.zeros(xs_ref.shape, xs_ref.dtype)
            hs_ref[...] = jnp.zeros(hs_ref.shape, hs_ref.dtype)

    if pad > 0:
        @pl.when(l > 0)
        def _carry():
            # Carry the last `pad` rows of the previous tile (x and conv1 out h).
            # Rows [0, gap) stay zero from l == 0 and are never read (taps start
            # at offset >= gap) -- do not change tap offsets without re-zeroing.
            xs_ref[gap:halo, :] = xs_ref[halo + TL - pad:halo + TL, :]
            hs_ref[gap:halo, :] = hs_ref[halo + TL - pad:halo + TL, :]

    # Stage the current (channel-unpadded) x tile; padded lanes remain zero.
    xs_ref[halo:, :C_in] = x_ref[0]

    b1 = b1_ref[0]
    b2 = b2_ref[0]

    # ---- causal dilated conv 1 + bias + ReLU (dropout1 = identity) ----------
    # Sub-blocked so each f32 accumulator stays <= ~16 vregs (no spill at TL=512).
    for s in range(nsub):
        r0 = s * SUB
        acc = jnp.dot(xs_ref[gap + r0:gap + r0 + SUB, :], w1_ref[0],
                      preferred_element_type=jnp.float32)
        for k in range(1, K):                                  # static taps
            off = gap + k * dilation + r0
            acc += jnp.dot(xs_ref[off:off + SUB, :], w1_ref[k],
                           preferred_element_type=jnp.float32)
        h = jnp.maximum(acc + b1, 0.0)
        # TODO(synk): h is staged in bf16 (extra rounding vs the f32 PyTorch
        # module); switch this scratch to f32 if tighter accuracy is required.
        hs_ref[halo + r0:halo + r0 + SUB, :] = h.astype(hs_ref.dtype)

    # ---- causal dilated conv 2 + bias + ReLU, residual, final ReLU ----------
    for s in range(nsub):
        r0 = s * SUB
        acc = jnp.dot(hs_ref[gap + r0:gap + r0 + SUB, :], w2_ref[0],
                      preferred_element_type=jnp.float32)
        for k in range(1, K):
            off = gap + k * dilation + r0
            acc += jnp.dot(hs_ref[off:off + SUB, :], w2_ref[k],
                           preferred_element_type=jnp.float32)
        out = jnp.maximum(acc + b2, 0.0)

        x_rows = xs_ref[halo + r0:halo + r0 + SUB, :]          # (SUB, C_in_p)
        if has_downsample:
            res = jnp.dot(x_rows, wd_ref[...],
                          preferred_element_type=jnp.float32) + bd_ref[0]
        else:
            res = x_rows.astype(jnp.float32)                   # C_in_p == C_out_p

        o_ref[0, r0:r0 + SUB, :] = jnp.maximum(out + res, 0.0).astype(o_ref.dtype)


def temporal_block_forward(x, w1, b1, w2, b2, wd=None, bd=None, *,
                           kernel_size, dilation, time_tile=512):
    """x: (B, C_in, L) float32 (PyTorch NCL).  Weights in PyTorch Conv1d layout:
       w1: (C_out, C_in, K), w2: (C_out, C_out, K), wd: (C_out, C_in, 1) or None
       (identity residual when n_inputs == n_outputs)."""
    B, C_in, L = x.shape
    C_out = w1.shape[0]
    K = kernel_size
    pad = (K - 1) * dilation
    has_downsample = wd is not None
    if not has_downsample:
        assert C_in == C_out, "identity residual requires n_inputs == n_outputs"

    C_in_p = _round_up(C_in, 128)
    C_out_p = _round_up(C_out, 128)
    halo = _round_up(pad, 8) if pad > 0 else 0

    # Sub-block rows: keep each (SUB, C_out_p) f32 accumulator <= 64 KiB (16 vregs).
    SUB = 128
    while SUB > 8 and SUB * C_out_p * 4 > 64 * 1024:
        SUB //= 2

    # Large time tile (amortizes ~0.35 us/grid-step), multiple of 128 so SUB
    # divides it, and >= halo (>= pad) so the carried halo comes from one tile.
    TL = max(_round_up(min(time_tile, L), 128), _round_up(halo, 128), 128)
    L_p = _round_up(L, TL)
    NL = L_p // TL

    # Glue: NCL -> NLC, time-pad to a tile multiple, bf16.  Channels are NOT
    # lane-padded in HBM (x stream stays proportional to real data); the kernel
    # zero-fills the padded lanes in VMEM.
    x_nlc = jnp.transpose(x, (0, 2, 1))
    x_nlc = jnp.pad(x_nlc, ((0, 0), (0, L_p - L), (0, 0)))
    x_bf = x_nlc.astype(jnp.bfloat16)

    def prep_conv_w(w, c_in, c_in_p):
        wt = jnp.transpose(w, (2, 1, 0))                       # (K, c_in, C_out)
        wt = jnp.pad(wt, ((0, 0), (0, c_in_p - c_in), (0, C_out_p - C_out)))
        return wt.astype(jnp.bfloat16)

    def prep_bias(b):
        return jnp.pad(b, (0, C_out_p - C_out)).reshape(1, C_out_p).astype(jnp.float32)

    w1_t = prep_conv_w(w1, C_in, C_in_p)                       # (K, C_in_p, C_out_p)
    w2_t = prep_conv_w(w2, C_out, C_out_p)                     # (K, C_out_p, C_out_p)
    b1_r = prep_bias(b1)
    b2_r = prep_bias(b2)

    in_specs = [
        pl.BlockSpec((1, TL, C_in), lambda b, l: (b, l, 0)),   # last dim = full dim
        pl.BlockSpec((K, C_in_p, C_out_p), lambda b, l: (0, 0, 0)),
        pl.BlockSpec((1, C_out_p), lambda b, l: (0, 0)),
        pl.BlockSpec((K, C_out_p, C_out_p), lambda b, l: (0, 0, 0)),
        pl.BlockSpec((1, C_out_p), lambda b, l: (0, 0)),
    ]
    operands = [x_bf, w1_t, b1_r, w2_t, b2_r]
    if has_downsample:
        wd_t = jnp.pad(jnp.transpose(wd[:, :, 0], (1, 0)),
                       ((0, C_in_p - C_in), (0, C_out_p - C_out))).astype(jnp.bfloat16)
        bd_r = prep_bias(bd)
        in_specs += [pl.BlockSpec((C_in_p, C_out_p), lambda b, l: (0, 0)),
                     pl.BlockSpec((1, C_out_p), lambda b, l: (0, 0))]
        operands += [wd_t, bd_r]

    kernel = functools.partial(
        _tcn_block_kernel, has_downsample=has_downsample, K=K,
        dilation=dilation, pad=pad, halo=halo, TL=TL, SUB=SUB, C_in=C_in)

    # VMEM budget derived from the actual footprint (double-buffered blocks +
    # resident scratch), clamped so it also fits v7x's 64 MiB physical VMEM.
    footprint = (
        2 * TL * C_in * 2 +                                    # x block, 2 bufs
        2 * TL * C_out_p * 2 +                                 # out block, 2 bufs
        2 * 2 * (K * C_in_p * C_out_p + K * C_out_p * C_out_p) +  # conv weights
        (2 * C_in_p * C_out_p * 2 if has_downsample else 0) +
        (halo + TL) * (C_in_p + C_out_p) * 2 +                 # carry scratch
        64 * 1024)                                             # biases + slack
    vmem_limit = int(min(max(2 * footprint, 32 << 20), 48 << 20))

    y = pl.pallas_call(
        kernel,
        out_shape=jax.ShapeDtypeStruct((B, L_p, C_out_p), jnp.bfloat16),
        grid=(B, NL),
        in_specs=in_specs,
        out_specs=pl.BlockSpec((1, TL, C_out_p), lambda b, l: (b, l, 0)),
        scratch_shapes=[
            pltpu.VMEM((halo + TL, C_in_p), jnp.bfloat16),
            pltpu.VMEM((halo + TL, C_out_p), jnp.bfloat16),
        ],
        compiler_params=pltpu.CompilerParams(
            # time axis carries the causal halo in scratch -> must be "arbitrary"
            dimension_semantics=("parallel", "arbitrary"),
            vmem_limit_bytes=vmem_limit),
    )(*operands)

    # Drop channel/time padding, back to NCL (f32 for the caller).
    return jnp.transpose(y[:, :L, :C_out], (0, 2, 1)).astype(jnp.float32)


def _reference_forward(x, w1, b1, w2, b2, wd, bd, *, kernel_size, dilation):
    """Plain-JAX (f32) reference mirroring the PyTorch module in eval mode."""
    pad = (kernel_size - 1) * dilation

    def causal_conv(inp, w, b):
        y = jax.lax.conv_general_dilated(
            inp, w, window_strides=(1,), padding=[(pad, pad)],
            rhs_dilation=(dilation,), dimension_numbers=("NCH", "OIH", "NCH"))
        if pad > 0:
            y = y[:, :, :-pad]                                 # Chomp1d
        return y + b[None, :, None]

    h = jax.nn.relu(causal_conv(x, w1, b1))                    # dropout = identity
    out = jax.nn.relu(causal_conv(h, w2, b2))
    if wd is None:
        res = x
    else:
        res = jnp.einsum("bcl,oc->bol", x, wd[:, :, 0]) + bd[None, :, None]
    return jax.nn.relu(out + res)


if __name__ == "__main__":
    # Downsample variant: L=640 with TL=512 exercises the halo carry + time pad.
    B, C_in, C_out, L = 2, 4, 8, 640
    kernel_size, dilation = 3, 2

    key = jax.random.PRNGKey(0)
    ks = jax.random.split(key, 7)

    def rnd(k, shape, scale=1.0):
        v = jax.random.normal(k, shape, jnp.float32) * scale
        # pre-round to bf16 so the f32 reference sees the same operand values
        return v.astype(jnp.bfloat16).astype(jnp.float32)

    x = rnd(ks[0], (B, C_in, L))
    w1 = rnd(ks[1], (C_out, C_in, kernel_size), 0.3)
    b1 = rnd(ks[2], (C_out,), 0.1)
    w2 = rnd(ks[3], (C_out, C_out, kernel_size), 0.3)
    b2 = rnd(ks[4], (C_out,), 0.1)
    wd = rnd(ks[5], (C_out, C_in, 1), 0.3)      # downsample (n_in != n_out)
    bd = rnd(ks[6], (C_out,), 0.1)

    y = temporal_block_forward(x, w1, b1, w2, b2, wd, bd,
                               kernel_size=kernel_size, dilation=dilation)
    y = jax.block_until_ready(y)
    y_ref = _reference_forward(x, w1, b1, w2, b2, wd, bd,
                               kernel_size=kernel_size, dilation=dilation)
    np.testing.assert_allclose(np.asarray(y), np.asarray(y_ref),
                               rtol=3e-2, atol=3e-2)

    # Identity-residual variant (n_inputs == n_outputs -> downsample is None),
    # small time tile to exercise the carry with TL=128.
    k2 = jax.random.split(jax.random.PRNGKey(1), 5)
    x2 = rnd(k2[0], (B, C_out, 256))
    w1b = rnd(k2[1], (C_out, C_out, kernel_size), 0.3)
    b1b = rnd(k2[2], (C_out,), 0.1)
    w2b = rnd(k2[3], (C_out, C_out, kernel_size), 0.3)
    b2b = rnd(k2[4], (C_out,), 0.1)
    y2 = jax.block_until_ready(temporal_block_forward(
        x2, w1b, b1b, w2b, b2b, None, None,
        kernel_size=kernel_size, dilation=dilation, time_tile=128))
    y2_ref = _reference_forward(x2, w1b, b1b, w2b, b2b, None, None,
                                kernel_size=kernel_size, dilation=dilation)
    np.testing.assert_allclose(np.asarray(y2), np.asarray(y2_ref),
                               rtol=3e-2, atol=3e-2)

    print("KERNEL_OK")
</pallas_src>

<mosaic_0001>
module attributes {stable_mosaic.version = 11 : i64} {
  func.func @_tcn_block_kernel(%arg0: i32, %arg1: i32, %arg2: memref<1x512x4xbf16, #tpu.memory_space<vmem>>, %arg3: memref<3x128x128xbf16, #tpu.memory_space<vmem>>, %arg4: memref<1x128xf32, #tpu.memory_space<vmem>>, %arg5: memref<3x128x128xbf16, #tpu.memory_space<vmem>>, %arg6: memref<1x128xf32, #tpu.memory_space<vmem>>, %arg7: memref<128x128xbf16, #tpu.memory_space<vmem>>, %arg8: memref<1x128xf32, #tpu.memory_space<vmem>>, %arg9: memref<1x512x128xbf16, #tpu.memory_space<vmem>>, %arg10: memref<520x128xbf16, #tpu.memory_space<vmem>>, %arg11: memref<520x128xbf16, #tpu.memory_space<vmem>>) attributes {dimension_semantics = [#tpu.dimension_semantics<parallel>, #tpu.dimension_semantics<arbitrary>], iteration_bounds = array<i64: 2, 2>, scalar_prefetch = 0 : i64, scratch_operands = 2 : i64, tpu.core_type = #tpu.core_type<tc>, window_params = [{transform_indices = @transform_0, window_bounds = array<i64: 1, 512, 4>}, {pipeline_mode = #tpu.pipeline_mode<synchronous>, transform_indices = @transform_1, window_bounds = array<i64: 3, 128, 128>}, {pipeline_mode = #tpu.pipeline_mode<synchronous>, transform_indices = @transform_2, window_bounds = array<i64: 1, 128>}, {pipeline_mode = #tpu.pipeline_mode<synchronous>, transform_indices = @transform_3, window_bounds = array<i64: 3, 128, 128>}, {pipeline_mode = #tpu.pipeline_mode<synchronous>, transform_indices = @transform_4, window_bounds = array<i64: 1, 128>}, {pipeline_mode = #tpu.pipeline_mode<synchronous>, transform_indices = @transform_5, window_bounds = array<i64: 128, 128>}, {pipeline_mode = #tpu.pipeline_mode<synchronous>, transform_indices = @transform_6, window_bounds = array<i64: 1, 128>}, {transform_indices = @transform_7, window_bounds = array<i64: 1, 512, 128>}]} {
    %c0_i32 = arith.constant 0 : i32
    %0 = arith.cmpi eq, %arg1, %c0_i32 : i32
    %1 = arith.extui %0 : i1 to i32
    %c0_i32_0 = arith.constant 0 : i32
    %2 = arith.cmpi ne, %1, %c0_i32_0 : i32
    scf.if %2 {
      %cst_197 = arith.constant 0.000000e+00 : bf16
      %233 = vector.broadcast %cst_197 : bf16 to vector<520x128xbf16>
      %c0_198 = arith.constant 0 : index
      %c0_199 = arith.constant 0 : index
      %234 = vector.load %arg10[%c0_198, %c0_199] : memref<520x128xbf16, #tpu.memory_space<vmem>>, vector<520x128xbf16>
      tpu.vector_store %arg10[%c0_198, %c0_199], %233 {strides = array<i32>} : memref<520x128xbf16, #tpu.memory_space<vmem>>, vector<520x128xbf16>,
      %cst_200 = arith.constant 0.000000e+00 : bf16
      %235 = vector.broadcast %cst_200 : bf16 to vector<520x128xbf16>
      %c0_201 = arith.constant 0 : index
      %c0_202 = arith.constant 0 : index
      %236 = vector.load %arg11[%c0_201, %c0_202] : memref<520x128xbf16, #tpu.memory_space<vmem>>, vector<520x128xbf16>
      tpu.vector_store %arg11[%c0_201, %c0_202], %235 {strides = array<i32>} : memref<520x128xbf16, #tpu.memory_space<vmem>>, vector<520x128xbf16>,
    } else {
    }
    %c0_i32_1 = arith.constant 0 : i32
    %3 = arith.cmpi sgt, %arg1, %c0_i32_1 : i32
    %4 = arith.extui %3 : i1 to i32
    %c0_i32_2 = arith.constant 0 : i32
    %5 = arith.cmpi ne, %4, %c0_i32_2 : i32
    scf.if %5 {
      %c516 = arith.constant 516 : index
      %c0_197 = arith.constant 0 : index
      %233 = vector.load %arg10[%c516, %c0_197] : memref<520x128xbf16, #tpu.memory_space<vmem>>, vector<4x128xbf16>
      %c4_198 = arith.constant 4 : index
      %c0_199 = arith.constant 0 : index
      %234 = vector.load %arg10[%c4_198, %c0_199] : memref<520x128xbf16, #tpu.memory_space<vmem>>, vector<4x128xbf16>
      tpu.vector_store %arg10[%c4_198, %c0_199], %233 {strides = array<i32>} : memref<520x128xbf16, #tpu.memory_space<vmem>>, vector<4x128xbf16>,
      %c516_200 = arith.constant 516 : index
      %c0_201 = arith.constant 0 : index
      %235 = vector.load %arg11[%c516_200, %c0_201] : memref<520x128xbf16, #tpu.memory_space<vmem>>, vector<4x128xbf16>
      %c4_202 = arith.constant 4 : index
      %c0_203 = arith.constant 0 : index
      %236 = vector.load %arg11[%c4_202, %c0_203] : memref<520x128xbf16, #tpu.memory_space<vmem>>, vector<4x128xbf16>
      tpu.vector_store %arg11[%c4_202, %c0_203], %235 {strides = array<i32>} : memref<520x128xbf16, #tpu.memory_space<vmem>>, vector<4x128xbf16>,
    } else {
    }
    %c0 = arith.constant 0 : index
    %c0_3 = arith.constant 0 : index
    %c0_4 = arith.constant 0 : index
    %6 = vector.load %arg2[%c0, %c0_3, %c0_4] : memref<1x512x4xbf16, #tpu.memory_space<vmem>>, vector<1x512x4xbf16>
    %7 = vector.shape_cast %6 : vector<1x512x4xbf16> to vector<512x4xbf16>
    %c8 = arith.constant 8 : index
    %c0_5 = arith.constant 0 : index
    %8 = vector.load %arg10[%c8, %c0_5] : memref<520x128xbf16, #tpu.memory_space<vmem>>, vector<512x4xbf16>
    tpu.vector_store %arg10[%c8, %c0_5], %7 {strides = array<i32>} : memref<520x128xbf16, #tpu.memory_space<vmem>>, vector<512x4xbf16>,
    %c0_6 = arith.constant 0 : index
    %c0_7 = arith.constant 0 : index
    %9 = vector.load %arg4[%c0_6, %c0_7] : memref<1x128xf32, #tpu.memory_space<vmem>>, vector<1x128xf32>
    %10 = vector.shape_cast %9 : vector<1x128xf32> to vector<128xf32>
    %c0_8 = arith.constant 0 : index
    %c0_9 = arith.constant 0 : index
    %11 = vector.load %arg6[%c0_8, %c0_9] : memref<1x128xf32, #tpu.memory_space<vmem>>, vector<1x128xf32>
    %12 = vector.shape_cast %11 : vector<1x128xf32> to vector<128xf32>
    %c4 = arith.constant 4 : index
    %c0_10 = arith.constant 0 : index
    %13 = vector.load %arg10[%c4, %c0_10] : memref<520x128xbf16, #tpu.memory_space<vmem>>, vector<128x128xbf16>
    %c0_11 = arith.constant 0 : index
    %c0_12 = arith.constant 0 : index
    %c0_13 = arith.constant 0 : index
    %14 = vector.load %arg3[%c0_11, %c0_12, %c0_13] : memref<3x128x128xbf16, #tpu.memory_space<vmem>>, vector<1x128x128xbf16>
    %15 = vector.shape_cast %14 : vector<1x128x128xbf16> to vector<128x128xbf16>
    %cst = arith.constant dense<0.000000e+00> : vector<128x128xf32>
    %16 = tpu.matmul %13, %15, %cst {dimension_numbers = #tpu.dot_dimension_numbers<[1], [0], [0], [1], [0, 0, 1, 1], [], []>} : vector<128x128xbf16>, vector<128x128xbf16>, vector<128x128xf32> -> vector<128x128xf32>
    %c6 = arith.constant 6 : index
    %c0_14 = arith.constant 0 : index
    %17 = vector.load %arg10[%c6, %c0_14] : memref<520x128xbf16, #tpu.memory_space<vmem>>, vector<128x128xbf16>
    %c1 = arith.constant 1 : index
    %c0_15 = arith.constant 0 : index
    %c0_16 = arith.constant 0 : index
    %18 = vector.load %arg3[%c1, %c0_15, %c0_16] : memref<3x128x128xbf16, #tpu.memory_space<vmem>>, vector<1x128x128xbf16>
    %19 = vector.shape_cast %18 : vector<1x128x128xbf16> to vector<128x128xbf16>
    %cst_17 = arith.constant dense<0.000000e+00> : vector<128x128xf32>
    %20 = tpu.matmul %17, %19, %cst_17 {dimension_numbers = #tpu.dot_dimension_numbers<[1], [0], [0], [1], [0, 0, 1, 1], [], []>} : vector<128x128xbf16>, vector<128x128xbf16>, vector<128x128xf32> -> vector<128x128xf32>
    %21 = arith.addf %16, %20 : vector<128x128xf32>
    %c8_18 = arith.constant 8 : index
    %c0_19 = arith.constant 0 : index
    %22 = vector.load %arg10[%c8_18, %c0_19] : memref<520x128xbf16, #tpu.memory_space<vmem>>, vector<128x128xbf16>
    %c2 = arith.constant 2 : index
    %c0_20 = arith.constant 0 : index
    %c0_21 = arith.constant 0 : index
    %23 = vector.load %arg3[%c2, %c0_20, %c0_21] : memref<3x128x128xbf16, #tpu.memory_space<vmem>>, vector<1x128x128xbf16>
    %24 = vector.shape_cast %23 : vector<1x128x128xbf16> to vector<128x128xbf16>
    %cst_22 = arith.constant dense<0.000000e+00> : vector<128x128xf32>
    %25 = tpu.matmul %22, %24, %cst_22 {dimension_numbers = #tpu.dot_dimension_numbers<[1], [0], [0], [1], [0, 0, 1, 1], [], []>} : vector<128x128xbf16>, vector<128x128xbf16>, vector<128x128xf32> -> vector<128x128xf32>
    %26 = arith.addf %21, %25 : vector<128x128xf32>
    %27 = vector.shape_cast %10 : vector<128xf32> to vector<1x128xf32>
    %28 = vector.broadcast %27 : vector<1x128xf32> to vector<128x128xf32>
    %29 = arith.addf %26, %28 : vector<128x128xf32>
    %cst_23 = arith.constant 0.000000e+00 : f32
    %30 = vector.broadcast %cst_23 : f32 to vector<128x128xf32>
    %31 = arith.maximumf %29, %30 : vector<128x128xf32>
    %32 = arith.truncf %31 : vector<128x128xf32> to vector<128x128xbf16>
    %c8_24 = arith.constant 8 : index
    %c0_25 = arith.constant 0 : index
    %33 = vector.load %arg11[%c8_24, %c0_25] : memref<520x128xbf16, #tpu.memory_space<vmem>>, vector<128x128xbf16>
    tpu.vector_store %arg11[%c8_24, %c0_25], %32 {strides = array<i32>} : memref<520x128xbf16, #tpu.memory_space<vmem>>, vector<128x128xbf16>,
    %c132 = arith.constant 132 : index
    %c0_26 = arith.constant 0 : index
    %34 = vector.load %arg10[%c132, %c0_26] : memref<520x128xbf16, #tpu.memory_space<vmem>>, vector<128x128xbf16>
    %c0_27 = arith.constant 0 : index
    %c0_28 = arith.constant 0 : index
    %c0_29 = arith.constant 0 : index
    %35 = vector.load %arg3[%c0_27, %c0_28, %c0_29] : memref<3x128x128xbf16, #tpu.memory_space<vmem>>, vector<1x128x128xbf16>
    %36 = vector.shape_cast %35 : vector<1x128x128xbf16> to vector<128x128xbf16>
    %cst_30 = arith.constant dense<0.000000e+00> : vector<128x128xf32>
    %37 = tpu.matmul %34, %36, %cst_30 {dimension_numbers = #tpu.dot_dimension_numbers<[1], [0], [0], [1], [0, 0, 1, 1], [], []>} : vector<128x128xbf16>, vector<128x128xbf16>, vector<128x128xf32> -> vector<128x128xf32>
    %c134 = arith.constant 134 : index
    %c0_31 = arith.constant 0 : index
    %38 = vector.load %arg10[%c134, %c0_31] : memref<520x128xbf16, #tpu.memory_space<vmem>>, vector<128x128xbf16>
    %c1_32 = arith.constant 1 : index
    %c0_33 = arith.constant 0 : index
    %c0_34 = arith.constant 0 : index
    %39 = vector.load %arg3[%c1_32, %c0_33, %c0_34] : memref<3x128x128xbf16, #tpu.memory_space<vmem>>, vector<1x128x128xbf16>
    %40 = vector.shape_cast %39 : vector<1x128x128xbf16> to vector<128x128xbf16>
    %cst_35 = arith.constant dense<0.000000e+00> : vector<128x128xf32>
    %41 = tpu.matmul %38, %40, %cst_35 {dimension_numbers = #tpu.dot_dimension_numbers<[1], [0], [0], [1], [0, 0, 1, 1], [], []>} : vector<128x128xbf16>, vector<128x128xbf16>, vector<128x128xf32> -> vector<128x128xf32>
    %42 = arith.addf %37, %41 : vector<128x128xf32>
    %c136 = arith.constant 136 : index
    %c0_36 = arith.constant 0 : index
    %43 = vector.load %arg10[%c136, %c0_36] : memref<520x128xbf16, #tpu.memory_space<vmem>>, vector<128x128xbf16>
    %c2_37 = arith.constant 2 : index
    %c0_38 = arith.constant 0 : index
    %c0_39 = arith.constant 0 : index
    %44 = vector.load %arg3[%c2_37, %c0_38, %c0_39] : memref<3x128x128xbf16, #tpu.memory_space<vmem>>, vector<1x128x128xbf16>
    %45 = vector.shape_cast %44 : vector<1x128x128xbf16> to vector<128x128xbf16>
    %cst_40 = arith.constant dense<0.000000e+00> : vector<128x128xf32>
    %46 = tpu.matmul %43, %45, %cst_40 {dimension_numbers = #tpu.dot_dimension_numbers<[1], [0], [0], [1], [0, 0, 1, 1], [], []>} : vector<128x128xbf16>, vector<128x128xbf16>, vector<128x128xf32> -> vector<128x128xf32>
    %47 = arith.addf %42, %46 : vector<128x128xf32>
    %48 = vector.shape_cast %10 : vector<128xf32> to vector<1x128xf32>
    %49 = vector.broadcast %48 : vector<1x128xf32> to vector<128x128xf32>
    %50 = arith.addf %47, %49 : vector<128x128xf32>
    %cst_41 = arith.constant 0.000000e+00 : f32
    %51 = vector.broadcast %cst_41 : f32 to vector<128x128xf32>
    %52 = arith.maximumf %50, %51 : vector<128x128xf32>
    %53 = arith.truncf %52 : vector<128x128xf32> to vector<128x128xbf16>
    %c136_42 = arith.constant 136 : index
    %c0_43 = arith.constant 0 : index
    %54 = vector.load %arg11[%c136_42, %c0_43] : memref<520x128xbf16, #tpu.memory_space<vmem>>, vector<128x128xbf16>
    tpu.vector_store %arg11[%c136_42, %c0_43], %53 {strides = array<i32>} : memref<520x128xbf16, #tpu.memory_space<vmem>>, vector<128x128xbf16>,
    %c260 = arith.constant 260 : index
    %c0_44 = arith.constant 0 : index
    %55 = vector.load %arg10[%c260, %c0_44] : memref<520x128xbf16, #tpu.memory_space<vmem>>, vector<128x128xbf16>
    %c0_45 = arith.constant 0 : index
    %c0_46 = arith.constant 0 : index
    %c0_47 = arith.constant 0 : index
    %56 = vector.load %arg3[%c0_45, %c0_46, %c0_47] : memref<3x128x128xbf16, #tpu.memory_space<vmem>>, vector<1x128x128xbf16>
    %57 = vector.shape_cast %56 : vector<1x128x128xbf16> to vector<128x128xbf16>
    %cst_48 = arith.constant dense<0.000000e+00> : vector<128x128xf32>
    %58 = tpu.matmul %55, %57, %cst_48 {dimension_numbers = #tpu.dot_dimension_numbers<[1], [0], [0], [1], [0, 0, 1, 1], [], []>} : vector<128x128xbf16>, vector<128x128xbf16>, vector<128x128xf32> -> vector<128x128xf32>
    %c262 = arith.constant 262 : index
    %c0_49 = arith.constant 0 : index
    %59 = vector.load %arg10[%c262, %c0_49] : memref<520x128xbf16, #tpu.memory_space<vmem>>, vector<128x128xbf16>
    %c1_50 = arith.constant 1 : index
    %c0_51 = arith.constant 0 : index
    %c0_52 = arith.constant 0 : index
    %60 = vector.load %arg3[%c1_50, %c0_51, %c0_52] : memref<3x128x128xbf16, #tpu.memory_space<vmem>>, vector<1x128x128xbf16>
    %61 = vector.shape_cast %60 : vector<1x128x128xbf16> to vector<128x128xbf16>
    %cst_53 = arith.constant dense<0.000000e+00> : vector<128x128xf32>
    %62 = tpu.matmul %59, %61, %cst_53 {dimension_numbers = #tpu.dot_dimension_numbers<[1], [0], [0], [1], [0, 0, 1, 1], [], []>} : vector<128x128xbf16>, vector<128x128xbf16>, vector<128x128xf32> -> vector<128x128xf32>
    %63 = arith.addf %58, %62 : vector<128x128xf32>
    %c264 = arith.constant 264 : index
    %c0_54 = arith.constant 0 : index
    %64 = vector.load %arg10[%c264, %c0_54] : memref<520x128xbf16, #tpu.memory_space<vmem>>, vector<128x128xbf16>
    %c2_55 = arith.constant 2 : index
    %c0_56 = arith.constant 0 : index
    %c0_57 = arith.constant 0 : index
    %65 = vector.load %arg3[%c2_55, %c0_56, %c0_57] : memref<3x128x128xbf16, #tpu.memory_space<vmem>>, vector<1x128x128xbf16>
    %66 = vector.shape_cast %65 : vector<1x128x128xbf16> to vector<128x128xbf16>
    %cst_58 = arith.constant dense<0.000000e+00> : vector<128x128xf32>
    %67 = tpu.matmul %64, %66, %cst_58 {dimension_numbers = #tpu.dot_dimension_numbers<[1], [0], [0], [1], [0, 0, 1, 1], [], []>} : vector<128x128xbf16>, vector<128x128xbf16>, vector<128x128xf32> -> vector<128x128xf32>
    %68 = arith.addf %63, %67 : vector<128x128xf32>
    %69 = vector.shape_cast %10 : vector<128xf32> to vector<1x128xf32>
    %70 = vector.broadcast %69 : vector<1x128xf32> to vector<128x128xf32>
    %71 = arith.addf %68, %70 : vector<128x128xf32>
    %cst_59 = arith.constant 0.000000e+00 : f32
    %72 = vector.broadcast %cst_59 : f32 to vector<128x128xf32>
    %73 = arith.maximumf %71, %72 : vector<128x128xf32>
    %74 = arith.truncf %73 : vector<128x128xf32> to vector<128x128xbf16>
    %c264_60 = arith.constant 264 : index
    %c0_61 = arith.constant 0 : index
    %75 = vector.load %arg11[%c264_60, %c0_61] : memref<520x128xbf16, #tpu.memory_space<vmem>>, vector<128x128xbf16>
    tpu.vector_store %arg11[%c264_60, %c0_61], %74 {strides = array<i32>} : memref<520x128xbf16, #tpu.memory_space<vmem>>, vector<128x128xbf16>,
    %c388 = arith.constant 388 : index
    %c0_62 = arith.constant 0 : index
    %76 = vector.load %arg10[%c388, %c0_62] : memref<520x128xbf16, #tpu.memory_space<vmem>>, vector<128x128xbf16>
    %c0_63 = arith.constant 0 : index
    %c0_64 = arith.constant 0 : index
    %c0_65 = arith.constant 0 : index
    %77 = vector.load %arg3[%c0_63, %c0_64, %c0_65] : memref<3x128x128xbf16, #tpu.memory_space<vmem>>, vector<1x128x128xbf16>
    %78 = vector.shape_cast %77 : vector<1x128x128xbf16> to vector<128x128xbf16>
    %cst_66 = arith.constant dense<0.000000e+00> : vector<128x128xf32>
    %79 = tpu.matmul %76, %78, %cst_66 {dimension_numbers = #tpu.dot_dimension_numbers<[1], [0], [0], [1], [0, 0, 1, 1], [], []>} : vector<128x128xbf16>, vector<128x128xbf16>, vector<128x128xf32> -> vector<128x128xf32>
    %c390 = arith.constant 390 : index
    %c0_67 = arith.constant 0 : index
    %80 = vector.load %arg10[%c390, %c0_67] : memref<520x128xbf16, #tpu.memory_space<vmem>>, vector<128x128xbf16>
    %c1_68 = arith.constant 1 : index
    %c0_69 = arith.constant 0 : index
    %c0_70 = arith.constant 0 : index
    %81 = vector.load %arg3[%c1_68, %c0_69, %c0_70] : memref<3x128x128xbf16, #tpu.memory_space<vmem>>, vector<1x128x128xbf16>
    %82 = vector.shape_cast %81 : vector<1x128x128xbf16> to vector<128x128xbf16>
    %cst_71 = arith.constant dense<0.000000e+00> : vector<128x128xf32>
    %83 = tpu.matmul %80, %82, %cst_71 {dimension_numbers = #tpu.dot_dimension_numbers<[1], [0], [0], [1], [0, 0, 1, 1], [], []>} : vector<128x128xbf16>, vector<128x128xbf16>, vector<128x128xf32> -> vector<128x128xf32>
    %84 = arith.addf %79, %83 : vector<128x128xf32>
    %c392 = arith.constant 392 : index
    %c0_72 = arith.constant 0 : index
    %85 = vector.load %arg10[%c392, %c0_72] : memref<520x128xbf16, #tpu.memory_space<vmem>>, vector<128x128xbf16>
    %c2_73 = arith.constant 2 : index
    %c0_74 = arith.constant 0 : index
    %c0_75 = arith.constant 0 : index
    %86 = vector.load %arg3[%c2_73, %c0_74, %c0_75] : memref<3x128x128xbf16, #tpu.memory_space<vmem>>, vector<1x128x128xbf16>
    %87 = vector.shape_cast %86 : vector<1x128x128xbf16> to vector<128x128xbf16>
    %cst_76 = arith.constant dense<0.000000e+00> : vector<128x128xf32>
    %88 = tpu.matmul %85, %87, %cst_76 {dimension_numbers = #tpu.dot_dimension_numbers<[1], [0], [0], [1], [0, 0, 1, 1], [], []>} : vector<128x128xbf16>, vector<128x128xbf16>, vector<128x128xf32> -> vector<128x128xf32>
    %89 = arith.addf %84, %88 : vector<128x128xf32>
    %90 = vector.shape_cast %10 : vector<128xf32> to vector<1x128xf32>
    %91 = vector.broadcast %90 : vector<1x128xf32> to vector<128x128xf32>
    %92 = arith.addf %89, %91 : vector<128x128xf32>
    %cst_77 = arith.constant 0.000000e+00 : f32
    %93 = vector.broadcast %cst_77 : f32 to vector<128x128xf32>
    %94 = arith.maximumf %92, %93 : vector<128x128xf32>
    %95 = arith.truncf %94 : vector<128x128xf32> to vector<128x128xbf16>
    %c392_78 = arith.constant 392 : index
    %c0_79 = arith.constant 0 : index
    %96 = vector.load %arg11[%c392_78, %c0_79] : memref<520x128xbf16, #tpu.memory_space<vmem>>, vector<128x128xbf16>
    tpu.vector_store %arg11[%c392_78, %c0_79], %95 {strides = array<i32>} : memref<520x128xbf16, #tpu.memory_space<vmem>>, vector<128x128xbf16>,
    %c4_80 = arith.constant 4 : index
    %c0_81 = arith.constant 0 : index
    %97 = vector.load %arg11[%c4_80, %c0_81] : memref<520x128xbf16, #tpu.memory_space<vmem>>, vector<128x128xbf16>
    %c0_82 = arith.constant 0 : index
    %c0_83 = arith.constant 0 : index
    %c0_84 = arith.constant 0 : index
    %98 = vector.load %arg5[%c0_82, %c0_83, %c0_84] : memref<3x128x128xbf16, #tpu.memory_space<vmem>>, vector<1x128x128xbf16>
    %99 = vector.shape_cast %98 : vector<1x128x128xbf16> to vector<128x128xbf16>
    %cst_85 = arith.constant dense<0.000000e+00> : vector<128x128xf32>
    %100 = tpu.matmul %97, %99, %cst_85 {dimension_numbers = #tpu.dot_dimension_numbers<[1], [0], [0], [1], [0, 0, 1, 1], [], []>} : vector<128x128xbf16>, vector<128x128xbf16>, vector<128x128xf32> -> vector<128x128xf32>
    %c6_86 = arith.constant 6 : index
    %c0_87 = arith.constant 0 : index
    %101 = vector.load %arg11[%c6_86, %c0_87] : memref<520x128xbf16, #tpu.memory_space<vmem>>, vector<128x128xbf16>
    %c1_88 = arith.constant 1 : index
    %c0_89 = arith.constant 0 : index
    %c0_90 = arith.constant 0 : index
    %102 = vector.load %arg5[%c1_88, %c0_89, %c0_90] : memref<3x128x128xbf16, #tpu.memory_space<vmem>>, vector<1x128x128xbf16>
    %103 = vector.shape_cast %102 : vector<1x128x128xbf16> to vector<128x128xbf16>
    %cst_91 = arith.constant dense<0.000000e+00> : vector<128x128xf32>
    %104 = tpu.matmul %101, %103, %cst_91 {dimension_numbers = #tpu.dot_dimension_numbers<[1], [0], [0], [1], [0, 0, 1, 1], [], []>} : vector<128x128xbf16>, vector<128x128xbf16>, vector<128x128xf32> -> vector<128x128xf32>
    %105 = arith.addf %100, %104 : vector<128x128xf32>
    %c8_92 = arith.constant 8 : index
    %c0_93 = arith.constant 0 : index
    %106 = vector.load %arg11[%c8_92, %c0_93] : memref<520x128xbf16, #tpu.memory_space<vmem>>, vector<128x128xbf16>
    %c2_94 = arith.constant 2 : index
    %c0_95 = arith.constant 0 : index
    %c0_96 = arith.constant 0 : index
    %107 = vector.load %arg5[%c2_94, %c0_95, %c0_96] : memref<3x128x128xbf16, #tpu.memory_space<vmem>>, vector<1x128x128xbf16>
    %108 = vector.shape_cast %107 : vector<1x128x128xbf16> to vector<128x128xbf16>
    %cst_97 = arith.constant dense<0.000000e+00> : vector<128x128xf32>
    %109 = tpu.matmul %106, %108, %cst_97 {dimension_numbers = #tpu.dot_dimension_numbers<[1], [0], [0], [1], [0, 0, 1, 1], [], []>} : vector<128x128xbf16>, vector<128x128xbf16>, vector<128x128xf32> -> vector<128x128xf32>
    %110 = arith.addf %105, %109 : vector<128x128xf32>
    %111 = vector.shape_cast %12 : vector<128xf32> to vector<1x128xf32>
    %112 = vector.broadcast %111 : vector<1x128xf32> to vector<128x128xf32>
    %113 = arith.addf %110, %112 : vector<128x128xf32>
    %cst_98 = arith.constant 0.000000e+00 : f32
    %114 = vector.broadcast %cst_98 : f32 to vector<128x128xf32>
    %115 = arith.maximumf %113, %114 : vector<128x128xf32>
    %c8_99 = arith.constant 8 : index
    %c0_100 = arith.constant 0 : index
    %116 = vector.load %arg10[%c8_99, %c0_100] : memref<520x128xbf16, #tpu.memory_space<vmem>>, vector<128x128xbf16>
    %c0_101 = arith.constant 0 : index
    %c0_102 = arith.constant 0 : index
    %117 = vector.load %arg7[%c0_101, %c0_102] : memref<128x128xbf16, #tpu.memory_space<vmem>>, vector<128x128xbf16>
    %cst_103 = arith.constant dense<0.000000e+00> : vector<128x128xf32>
    %118 = tpu.matmul %116, %117, %cst_103 {dimension_numbers = #tpu.dot_dimension_numbers<[1], [0], [0], [1], [0, 0, 1, 1], [], []>} : vector<128x128xbf16>, vector<128x128xbf16>, vector<128x128xf32> -> vector<128x128xf32>
    %c0_104 = arith.constant 0 : index
    %c0_105 = arith.constant 0 : index
    %119 = vector.load %arg8[%c0_104, %c0_105] : memref<1x128xf32, #tpu.memory_space<vmem>>, vector<1x128xf32>
    %120 = vector.shape_cast %119 : vector<1x128xf32> to vector<128xf32>
    %121 = vector.shape_cast %120 : vector<128xf32> to vector<1x128xf32>
    %122 = vector.broadcast %121 : vector<1x128xf32> to vector<128x128xf32>
    %123 = arith.addf %118, %122 : vector<128x128xf32>
    %124 = arith.addf %115, %123 : vector<128x128xf32>
    %cst_106 = arith.constant 0.000000e+00 : f32
    %125 = vector.broadcast %cst_106 : f32 to vector<128x128xf32>
    %126 = arith.maximumf %124, %125 : vector<128x128xf32>
    %127 = arith.truncf %126 : vector<128x128xf32> to vector<128x128xbf16>
    %c0_107 = arith.constant 0 : index
    %c0_108 = arith.constant 0 : index
    %c0_109 = arith.constant 0 : index
    %128 = vector.load %arg9[%c0_107, %c0_108, %c0_109] : memref<1x512x128xbf16, #tpu.memory_space<vmem>>, vector<1x128x128xbf16>
    %129 = vector.shape_cast %128 : vector<1x128x128xbf16> to vector<128x128xbf16>
    %130 = vector.shape_cast %127 : vector<128x128xbf16> to vector<1x128x128xbf16>
    tpu.vector_store %arg9[%c0_107, %c0_108, %c0_109], %130 {strides = array<i32>} : memref<1x512x128xbf16, #tpu.memory_space<vmem>>, vector<1x128x128xbf16>,
    %c132_110 = arith.constant 132 : index
    %c0_111 = arith.constant 0 : index
    %131 = vector.load %arg11[%c132_110, %c0_111] : memref<520x128xbf16, #tpu.memory_space<vmem>>, vector<128x128xbf16>
    %c0_112 = arith.constant 0 : index
    %c0_113 = arith.constant 0 : index
    %c0_114 = arith.constant 0 : index
    %132 = vector.load %arg5[%c0_112, %c0_113, %c0_114] : memref<3x128x128xbf16, #tpu.memory_space<vmem>>, vector<1x128x128xbf16>
    %133 = vector.shape_cast %132 : vector<1x128x128xbf16> to vector<128x128xbf16>
    %cst_115 = arith.constant dense<0.000000e+00> : vector<128x128xf32>
    %134 = tpu.matmul %131, %133, %cst_115 {dimension_numbers = #tpu.dot_dimension_numbers<[1], [0], [0], [1], [0, 0, 1, 1], [], []>} : vector<128x128xbf16>, vector<128x128xbf16>, vector<128x128xf32> -> vector<128x128xf32>
    %c134_116 = arith.constant 134 : index
    %c0_117 = arith.constant 0 : index
    %135 = vector.load %arg11[%c134_116, %c0_117] : memref<520x128xbf16, #tpu.memory_space<vmem>>, vector<128x128xbf16>
    %c1_118 = arith.constant 1 : index
    %c0_119 = arith.constant 0 : index
    %c0_120 = arith.constant 0 : index
    %136 = vector.load %arg5[%c1_118, %c0_119, %c0_120] : memref<3x128x128xbf16, #tpu.memory_space<vmem>>, vector<1x128x128xbf16>
    %137 = vector.shape_cast %136 : vector<1x128x128xbf16> to vector<128x128xbf16>
    %cst_121 = arith.constant dense<0.000000e+00> : vector<128x128xf32>
    %138 = tpu.matmul %135, %137, %cst_121 {dimension_numbers = #tpu.dot_dimension_numbers<[1], [0], [0], [1], [0, 0, 1, 1], [], []>} : vector<128x128xbf16>, vector<128x128xbf16>, vector<128x128xf32> -> vector<128x128xf32>
    %139 = arith.addf %134, %138 : vector<128x128xf32>
    %c136_122 = arith.constant 136 : index
    %c0_123 = arith.constant 0 : index
    %140 = vector.load %arg11[%c136_122, %c0_123] : memref<520x128xbf16, #tpu.memory_space<vmem>>, vector<128x128xbf16>
    %c2_124 = arith.constant 2 : index
    %c0_125 = arith.constant 0 : index
    %c0_126 = arith.constant 0 : index
    %141 = vector.load %arg5[%c2_124, %c0_125, %c0_126] : memref<3x128x128xbf16, #tpu.memory_space<vmem>>, vector<1x128x128xbf16>
    %142 = vector.shape_cast %141 : vector<1x128x128xbf16> to vector<128x128xbf16>
    %cst_127 = arith.constant dense<0.000000e+00> : vector<128x128xf32>
    %143 = tpu.matmul %140, %142, %cst_127 {dimension_numbers = #tpu.dot_dimension_numbers<[1], [0], [0], [1], [0, 0, 1, 1], [], []>} : vector<128x128xbf16>, vector<128x128xbf16>, vector<128x128xf32> -> vector<128x128xf32>
    %144 = arith.addf %139, %143 : vector<128x128xf32>
    %145 = vector.shape_cast %12 : vector<128xf32> to vector<1x128xf32>
    %146 = vector.broadcast %145 : vector<1x128xf32> to vector<128x128xf32>
    %147 = arith.addf %144, %146 : vector<128x128xf32>
    %cst_128 = arith.constant 0.000000e+00 : f32
    %148 = vector.broadcast %cst_128 : f32 to vector<128x128xf32>
    %149 = arith.maximumf %147, %148 : vector<128x128xf32>
    %c136_129 = arith.constant 136 : index
    %c0_130 = arith.constant 0 : index
    %150 = vector.load %arg10[%c136_129, %c0_130] : memref<520x128xbf16, #tpu.memory_space<vmem>>, vector<128x128xbf16>
    %c0_131 = arith.constant 0 : index
    %c0_132 = arith.constant 0 : index
    %151 = vector.load %arg7[%c0_131, %c0_132] : memref<128x128xbf16, #tpu.memory_space<vmem>>, vector<128x128xbf16>
    %cst_133 = arith.constant dense<0.000000e+00> : vector<128x128xf32>
    %152 = tpu.matmul %150, %151, %cst_133 {dimension_numbers = #tpu.dot_dimension_numbers<[1], [0], [0], [1], [0, 0, 1, 1], [], []>} : vector<128x128xbf16>, vector<128x128xbf16>, vector<128x128xf32> -> vector<128x128xf32>
    %c0_134 = arith.constant 0 : index
    %c0_135 = arith.constant 0 : index
    %153 = vector.load %arg8[%c0_134, %c0_135] : memref<1x128xf32, #tpu.memory_space<vmem>>, vector<1x128xf32>
    %154 = vector.shape_cast %153 : vector<1x128xf32> to vector<128xf32>
    %155 = vector.shape_cast %154 : vector<128xf32> to vector<1x128xf32>
    %156 = vector.broadcast %155 : vector<1x128xf32> to vector<128x128xf32>
    %157 = arith.addf %152, %156 : vector<128x128xf32>
    %158 = arith.addf %149, %157 : vector<128x128xf32>
    %cst_136 = arith.constant 0.000000e+00 : f32
    %159 = vector.broadcast %cst_136 : f32 to vector<128x128xf32>
    %160 = arith.maximumf %158, %159 : vector<128x128xf32>
    %161 = arith.truncf %160 : vector<128x128xf32> to vector<128x128xbf16>
    %c0_137 = arith.constant 0 : index
    %c128 = arith.constant 128 : index
    %c0_138 = arith.constant 0 : index
    %162 = vector.load %arg9[%c0_137, %c128, %c0_138] : memref<1x512x128xbf16, #tpu.memory_space<vmem>>, vector<1x128x128xbf16>
    %163 = vector.shape_cast %162 : vector<1x128x128xbf16> to vector<128x128xbf16>
    %164 = vector.shape_cast %161 : vector<128x128xbf16> to vector<1x128x128xbf16>
    tpu.vector_store %arg9[%c0_137, %c128, %c0_138], %164 {strides = array<i32>} : memref<1x512x128xbf16, #tpu.memory_space<vmem>>, vector<1x128x128xbf16>,
    %c260_139 = arith.constant 260 : index
    %c0_140 = arith.constant 0 : index
    %165 = vector.load %arg11[%c260_139, %c0_140] : memref<520x128xbf16, #tpu.memory_space<vmem>>, vector<128x128xbf16>
    %c0_141 = arith.constant 0 : index
    %c0_142 = arith.constant 0 : index
    %c0_143 = arith.constant 0 : index
    %166 = vector.load %arg5[%c0_141, %c0_142, %c0_143] : memref<3x128x128xbf16, #tpu.memory_space<vmem>>, vector<1x128x128xbf16>
    %167 = vector.shape_cast %166 : vector<1x128x128xbf16> to vector<128x128xbf16>
    %cst_144 = arith.constant dense<0.000000e+00> : vector<128x128xf32>
    %168 = tpu.matmul %165, %167, %cst_144 {dimension_numbers = #tpu.dot_dimension_numbers<[1], [0], [0], [1], [0, 0, 1, 1], [], []>} : vector<128x128xbf16>, vector<128x128xbf16>, vector<128x128xf32> -> vector<128x128xf32>
    %c262_145 = arith.constant 262 : index
    %c0_146 = arith.constant 0 : index
    %169 = vector.load %arg11[%c262_145, %c0_146] : memref<520x128xbf16, #tpu.memory_space<vmem>>, vector<128x128xbf16>
    %c1_147 = arith.constant 1 : index
    %c0_148 = arith.constant 0 : index
    %c0_149 = arith.constant 0 : index
    %170 = vector.load %arg5[%c1_147, %c0_148, %c0_149] : memref<3x128x128xbf16, #tpu.memory_space<vmem>>, vector<1x128x128xbf16>
    %171 = vector.shape_cast %170 : vector<1x128x128xbf16> to vector<128x128xbf16>
    %cst_150 = arith.constant dense<0.000000e+00> : vector<128x128xf32>
    %172 = tpu.matmul %169, %171, %cst_150 {dimension_numbers = #tpu.dot_dimension_numbers<[1], [0], [0], [1], [0, 0, 1, 1], [], []>} : vector<128x128xbf16>, vector<128x128xbf16>, vector<128x128xf32> -> vector<128x128xf32>
    %173 = arith.addf %168, %172 : vector<128x128xf32>
    %c264_151 = arith.constant 264 : index
    %c0_152 = arith.constant 0 : index
    %174 = vector.load %arg11[%c264_151, %c0_152] : memref<520x128xbf16, #tpu.memory_space<vmem>>, vector<128x128xbf16>
    %c2_153 = arith.constant 2 : index
    %c0_154 = arith.constant 0 : index
    %c0_155 = arith.constant 0 : index
    %175 = vector.load %arg5[%c2_153, %c0_154, %c0_155] : memref<3x128x128xbf16, #tpu.memory_space<vmem>>, vector<1x128x128xbf16>
    %176 = vector.shape_cast %175 : vector<1x128x128xbf16> to vector<128x128xbf16>
    %cst_156 = arith.constant dense<0.000000e+00> : vector<128x128xf32>
    %177 = tpu.matmul %174, %176, %cst_156 {dimension_numbers = #tpu.dot_dimension_numbers<[1], [0], [0], [1], [0, 0, 1, 1], [], []>} : vector<128x128xbf16>, vector<128x128xbf16>, vector<128x128xf32> -> vector<128x128xf32>
    %178 = arith.addf %173, %177 : vector<128x128xf32>
    %179 = vector.shape_cast %12 : vector<128xf32> to vector<1x128xf32>
    %180 = vector.broadcast %179 : vector<1x128xf32> to vector<128x128xf32>
    %181 = arith.addf %178, %180 : vector<128x128xf32>
    %cst_157 = arith.constant 0.000000e+00 : f32
    %182 = vector.broadcast %cst_157 : f32 to vector<128x128xf32>
    %183 = arith.maximumf %181, %182 : vector<128x128xf32>
    %c264_158 = arith.constant 264 : index
    %c0_159 = arith.constant 0 : index
    %184 = vector.load %arg10[%c264_158, %c0_159] : memref<520x128xbf16, #tpu.memory_space<vmem>>, vector<128x128xbf16>
    %c0_160 = arith.constant 0 : index
    %c0_161 = arith.constant 0 : index
    %185 = vector.load %arg7[%c0_160, %c0_161] : memref<128x128xbf16, #tpu.memory_space<vmem>>, vector<128x128xbf16>
    %cst_162 = arith.constant dense<0.000000e+00> : vector<128x128xf32>
    %186 = tpu.matmul %184, %185, %cst_162 {dimension_numbers = #tpu.dot_dimension_numbers<[1], [0], [0], [1], [0, 0, 1, 1], [], []>} : vector<128x128xbf16>, vector<128x128xbf16>, vector<128x128xf32> -> vector<128x128xf32>
    %c0_163 = arith.constant 0 : index
    %c0_164 = arith.constant 0 : index
    %187 = vector.load %arg8[%c0_163, %c0_164] : memref<1x128xf32, #tpu.memory_space<vmem>>, vector<1x128xf32>
    %188 = vector.shape_cast %187 : vector<1x128xf32> to vector<128xf32>
    %189 = vector.shape_cast %188 : vector<128xf32> to vector<1x128xf32>
    %190 = vector.broadcast %189 : vector<1x128xf32> to vector<128x128xf32>
    %191 = arith.addf %186, %190 : vector<128x128xf32>
    %192 = arith.addf %183, %191 : vector<128x128xf32>
    %cst_165 = arith.constant 0.000000e+00 : f32
    %193 = vector.broadcast %cst_165 : f32 to vector<128x128xf32>
    %194 = arith.maximumf %192, %193 : vector<128x128xf32>
    %195 = arith.truncf %194 : vector<128x128xf32> to vector<128x128xbf16>
    %c0_166 = arith.constant 0 : index
    %c256 = arith.constant 256 : index
    %c0_167 = arith.constant 0 : index
    %196 = vector.load %arg9[%c0_166, %c256, %c0_167] : memref<1x512x128xbf16, #tpu.memory_space<vmem>>, vector<1x128x128xbf16>
    %197 = vector.shape_cast %196 : vector<1x128x128xbf16> to vector<128x128xbf16>
    %198 = vector.shape_cast %195 : vector<128x128xbf16> to vector<1x128x128xbf16>
    tpu.vector_store %arg9[%c0_166, %c256, %c0_167], %198 {strides = array<i32>} : memref<1x512x128xbf16, #tpu.memory_space<vmem>>, vector<1x128x128xbf16>,
    %c388_168 = arith.constant 388 : index
    %c0_169 = arith.constant 0 : index
    %199 = vector.load %arg11[%c388_168, %c0_169] : memref<520x128xbf16, #tpu.memory_space<vmem>>, vector<128x128xbf16>
    %c0_170 = arith.constant 0 : index
    %c0_171 = arith.constant 0 : index
    %c0_172 = arith.constant 0 : index
    %200 = vector.load %arg5[%c0_170, %c0_171, %c0_172] : memref<3x128x128xbf16, #tpu.memory_space<vmem>>, vector<1x128x128xbf16>
    %201 = vector.shape_cast %200 : vector<1x128x128xbf16> to vector<128x128xbf16>
    %cst_173 = arith.constant dense<0.000000e+00> : vector<128x128xf32>
    %202 = tpu.matmul %199, %201, %cst_173 {dimension_numbers = #tpu.dot_dimension_numbers<[1], [0], [0], [1], [0, 0, 1, 1], [], []>} : vector<128x128xbf16>, vector<128x128xbf16>, vector<128x128xf32> -> vector<128x128xf32>
    %c390_174 = arith.constant 390 : index
    %c0_175 = arith.constant 0 : index
    %203 = vector.load %arg11[%c390_174, %c0_175] : memref<520x128xbf16, #tpu.memory_space<vmem>>, vector<128x128xbf16>
    %c1_176 = arith.constant 1 : index
    %c0_177 = arith.constant 0 : index
    %c0_178 = arith.constant 0 : index
    %204 = vector.load %arg5[%c1_176, %c0_177, %c0_178] : memref<3x128x128xbf16, #tpu.memory_space<vmem>>, vector<1x128x128xbf16>
    %205 = vector.shape_cast %204 : vector<1x128x128xbf16> to vector<128x128xbf16>
    %cst_179 = arith.constant dense<0.000000e+00> : vector<128x128xf32>
    %206 = tpu.matmul %203, %205, %cst_179 {dimension_numbers = #tpu.dot_dimension_numbers<[1], [0], [0], [1], [0, 0, 1, 1], [], []>} : vector<128x128xbf16>, vector<128x128xbf16>, vector<128x128xf32> -> vector<128x128xf32>
    %207 = arith.addf %202, %206 : vector<128x128xf32>
    %c392_180 = arith.constant 392 : index
    %c0_181 = arith.constant 0 : index
    %208 = vector.load %arg11[%c392_180, %c0_181] : memref<520x128xbf16, #tpu.memory_space<vmem>>, vector<128x128xbf16>
    %c2_182 = arith.constant 2 : index
    %c0_183 = arith.constant 0 : index
    %c0_184 = arith.constant 0 : index
    %209 = vector.load %arg5[%c2_182, %c0_183, %c0_184] : memref<3x128x128xbf16, #tpu.memory_space<vmem>>, vector<1x128x128xbf16>
    %210 = vector.shape_cast %209 : vector<1x128x128xbf16> to vector<128x128xbf16>
    %cst_185 = arith.constant dense<0.000000e+00> : vector<128x128xf32>
    %211 = tpu.matmul %208, %210, %cst_185 {dimension_numbers = #tpu.dot_dimension_numbers<[1], [0], [0], [1], [0, 0, 1, 1], [], []>} : vector<128x128xbf16>, vector<128x128xbf16>, vector<128x128xf32> -> vector<128x128xf32>
    %212 = arith.addf %207, %211 : vector<128x128xf32>
    %213 = vector.shape_cast %12 : vector<128xf32> to vector<1x128xf32>
    %214 = vector.broadcast %213 : vector<1x128xf32> to vector<128x128xf32>
    %215 = arith.addf %212, %214 : vector<128x128xf32>
    %cst_186 = arith.constant 0.000000e+00 : f32
    %216 = vector.broadcast %cst_186 : f32 to vector<128x128xf32>
    %217 = arith.maximumf %215, %216 : vector<128x128xf32>
    %c392_187 = arith.constant 392 : index
    %c0_188 = arith.constant 0 : index
    %218 = vector.load %arg10[%c392_187, %c0_188] : memref<520x128xbf16, #tpu.memory_space<vmem>>, vector<128x128xbf16>
    %c0_189 = arith.constant 0 : index
    %c0_190 = arith.constant 0 : index
    %219 = vector.load %arg7[%c0_189, %c0_190] : memref<128x128xbf16, #tpu.memory_space<vmem>>, vector<128x128xbf16>
    %cst_191 = arith.constant dense<0.000000e+00> : vector<128x128xf32>
    %220 = tpu.matmul %218, %219, %cst_191 {dimension_numbers = #tpu.dot_dimension_numbers<[1], [0], [0], [1], [0, 0, 1, 1], [], []>} : vector<128x128xbf16>, vector<128x128xbf16>, vector<128x128xf32> -> vector<128x128xf32>
    %c0_192 = arith.constant 0 : index
    %c0_193 = arith.constant 0 : index
    %221 = vector.load %arg8[%c0_192, %c0_193] : memref<1x128xf32, #tpu.memory_space<vmem>>, vector<1x128xf32>
    %222 = vector.shape_cast %221 : vector<1x128xf32> to vector<128xf32>
    %223 = vector.shape_cast %222 : vector<128xf32> to vector<1x128xf32>
    %224 = vector.broadcast %223 : vector<1x128xf32> to vector<128x128xf32>
    %225 = arith.addf %220, %224 : vector<128x128xf32>
    %226 = arith.addf %217, %225 : vector<128x128xf32>
    %cst_194 = arith.constant 0.000000e+00 : f32
    %227 = vector.broadcast %cst_194 : f32 to vector<128x128xf32>
    %228 = arith.maximumf %226, %227 : vector<128x128xf32>
    %229 = arith.truncf %228 : vector<128x128xf32> to vector<128x128xbf16>
    %c0_195 = arith.constant 0 : index
    %c384 = arith.constant 384 : index
    %c0_196 = arith.constant 0 : index
    %230 = vector.load %arg9[%c0_195, %c384, %c0_196] : memref<1x512x128xbf16, #tpu.memory_space<vmem>>, vector<1x128x128xbf16>
    %231 = vector.shape_cast %230 : vector<1x128x128xbf16> to vector<128x128xbf16>
    %232 = vector.shape_cast %229 : vector<128x128xbf16> to vector<1x128x128xbf16>
    tpu.vector_store %arg9[%c0_195, %c384, %c0_196], %232 {strides = array<i32>} : memref<1x512x128xbf16, #tpu.memory_space<vmem>>, vector<1x128x128xbf16>,
    return
  }
  func.func @transform_0(%arg0: i32, %arg1: i32) -> (i32, i32, i32) {
    %c0_i32 = arith.constant 0 : i32
    %c0_i32_0 = arith.constant 0 : i32
    return %arg0, %arg1, %c0_i32 : i32, i32, i32
  }
  func.func @transform_1(%arg0: i32, %arg1: i32) -> (i32, i32, i32) {
    %c0_i32 = arith.constant 0 : i32
    %c0_i32_0 = arith.constant 0 : i32
    %c0_i32_1 = arith.constant 0 : i32
    %c0_i32_2 = arith.constant 0 : i32
    return %c0_i32, %c0_i32_0, %c0_i32_1 : i32, i32, i32
  }
  func.func @transform_2(%arg0: i32, %arg1: i32) -> (i32, i32) {
    %c0_i32 = arith.constant 0 : i32
    %c0_i32_0 = arith.constant 0 : i32
    %c0_i32_1 = arith.constant 0 : i32
    return %c0_i32, %c0_i32_0 : i32, i32
  }
  func.func @transform_3(%arg0: i32, %arg1: i32) -> (i32, i32, i32) {
    %c0_i32 = arith.constant 0 : i32
    %c0_i32_0 = arith.constant 0 : i32
    %c0_i32_1 = arith.constant 0 : i32
    %c0_i32_2 = arith.constant 0 : i32
    return %c0_i32, %c0_i32_0, %c0_i32_1 : i32, i32, i32
  }
  func.func @transform_4(%arg0: i32, %arg1: i32) -> (i32, i32) {
    %c0_i32 = arith.constant 0 : i32
    %c0_i32_0 = arith.constant 0 : i32
    %c0_i32_1 = arith.constant 0 : i32
    return %c0_i32, %c0_i32_0 : i32, i32
  }
  func.func @transform_5(%arg0: i32, %arg1: i32) -> (i32, i32) {
    %c0_i32 = arith.constant 0 : i32
    %c0_i32_0 = arith.constant 0 : i32
    %c0_i32_1 = arith.constant 0 : i32
    return %c0_i32, %c0_i32_0 : i32, i32
  }
  func.func @transform_6(%arg0: i32, %arg1: i32) -> (i32, i32) {
    %c0_i32 = arith.constant 0 : i32
    %c0_i32_0 = arith.constant 0 : i32
    %c0_i32_1 = arith.constant 0 : i32
    return %c0_i32, %c0_i32_0 : i32, i32
  }
  func.func @transform_7(%arg0: i32, %arg1: i32) -> (i32, i32, i32) {
    %c0_i32 = arith.constant 0 : i32
    %c0_i32_0 = arith.constant 0 : i32
    return %arg0, %arg1, %c0_i32 : i32, i32, i32
  }
}

</mosaic_0001>

<bundles_post_ra>
// kernel: tpu_custom_call.1
= control target key start
LH: loop header
LB: loop body
LE: loop exit
PB: predicated region body
PF: predicated region fallthrough
CT: control target
= control target key end

     0   :  { %12 = vsyncpa [#allocation5], 0  ;;  %s13701_s0 = inlined_call_operand.vmem [shape: bf16[2,1024,4], index: 0, kind: input, shape index: {}]   ;;  %s13702_s1 = inlined_call_operand.vmem [shape: bf16[3,128,128], index: 1, kind: input, shape index: {}]   ;;  %s13703_s2 = inlined_call_operand.vmem [shape: f32[1,128], index: 2, kind: input, shape index: {}]   ;;  %s13704_s3 = inlined_call_operand.vmem [shape: bf16[3,128,128], index: 3, kind: input, shape index: {}]   ;;  %s13705_s4 = inlined_call_operand.vmem [shape: f32[1,128], index: 4, kind: input, shape index: {}]   ;;  %s13706_s5 = inlined_call_operand.vmem [shape: bf16[128,128], index: 5, kind: input, shape index: {}]   ;;  %s13707_s6 = inlined_call_operand.vmem [shape: f32[1,128], index: 6, kind: input, shape index: {}]   ;;  %s13708_s7 = inlined_call_operand.hbm [shape: bf16[2,1024,128], index: 7, kind: output, shape index: {}]  }
   0x1   :  { %14 = vsyncpa [#allocation5 + $0x1], 0  ;;  %s11226_s24 = smov 0   ;;  %s11228_s25 = smov 0  }
   0x2   :  { %s11230_s26 = smov 0   ;;  %s11232_s27 = smov 0  }
   0x3   :  { %s11234_s28 = smov 0   ;;  %s11236_s29 = smov 0  }
   0x4   :  { %s11238_s30 = smov 0   ;;  %s11240_s8 = smov 0  }
   0x5 LB: > { %s7738_s9 = sadd.s32 4294967295, %s11180_s8   ;;  %s7739_s10 = sadd.s32 4294967294, %s11180_s8   ;;  %s11180_s8 = sphi %s11240_s8, %s20_s8   ;;  %s11176_s30 = sphi %s11238_s30, %s13797_s30   ;;  %s11172_s29 = sphi %s11236_s29, %s13796_s29   ;;  %s11168_s28 = sphi %s11234_s28, %s13795_s28   ;;  %s11164_s27 = sphi %s11232_s27, %s13794_s27   ;;  %s11160_s26 = sphi %s11230_s26, %s13793_s26   ;;  %s11156_s25 = sphi %s11228_s25, %s13792_s25   ;;  %s11152_s24 = sphi %s11226_s24, %s13791_s24  }
   0x6   : > { %s29_s11 = sadd.s32 1, %s11172_s29  ;;  %s32_s12 = sadd.s32 1, %s11176_s30 }
   0x7   : > { %p30_p0 = scmp.ge.s32.totalorder %s29_s11, 2  ;;  %p205_p1 = scmp.ne.s32.totalorder %s11160_s26, %s11156_s25 }
   0x8   : > { %p206_p2 = scmp.eq.s32.totalorder %s7738_s9, 3  ;;  %p211_p5 = scmp.ne.s32.totalorder %s11156_s25, %s11152_s24 }
   0x9   : > { %s13799_s11 = smov (%p30_p0, %s29_s11), 0  ;;  %s13801_s12 = smov (!%p30_p0, %s32_s12), %s11176_s30 }
   0xa   : > { %13713 = sst [smem:[#allocation7_spill]] %s13799_s11  ;;  %s191_s13 = ssub.s32 %s11172_s29, %s13799_s11 }
   0xb   : > { %p11277_p3 = por %p206_p2, %p205_p1  ;;  %p34_p4 = scmp.ge.s32.totalorder %s13801_s12, 2 }
   0xc   : > { %p212_p6 = scmp.eq.s32.totalorder %s7739_s10, 3  ;;  %p7742_p7 = scmp.ge.s32.totalorder %s11180_s8, 1 }
   0xd   : > { %s13803_s12 = smov (%p34_p4, %s13801_s12), 0  ;;  %p261_p9 = scmp.lt.s32.totalorder %s11180_s8, 5 }
   0xe   : > { %13715 = sst [smem:[#allocation8_spill]] %s13803_s12  ;;  %p11286_p8 = por %p212_p6, %p211_p5 }
   0xf   : > { %s190_s16 = ssub.s32 %s11176_s30, %s13803_s12  ;;  %s195_s17 = sadd.s32 1, %s11160_s26 }
  0x10   : > { %s192_s18 = sor.u32 %s191_s13, %s190_s16  ;;  %p262_p10 = pnand %p7742_p7, %p261_p9 }
  0x11   : > { %p193_p11 = scmp.eq.s32.totalorder %s192_s18, 0 }
  0x12   : > { %265 = sbr.rel (%p262_p10) target bundleno = 934 (0x3a6), region = 48 }
  0x13   : > { %s11295_s19 = scalar_select %p193_p11, %s11160_s26, %s195_s17  }
  0x19   : > { %s294_s20 = sand.u32 1, %s11156_s25   ;;  %s11299_s21 = sshll.u32 %s11164_s27, 6 }
  0x1a   : > { %s7743_s22 = sshll.u32 %s294_s20, 8  ;;  %p298_p12 = scmp.lt.s32.totalorder %s11168_s28, 1 }
  0x1b   : > { %p300_p13 = scmp.lt.s32.totalorder %s11299_s21, 127  ;;  %s11312_s11 = scalar_lea.vmem [#allocation4], %s7743_s22 }
  0x1c   : > { %s299_s23 = scalar_select %p298_p12, %s11168_s28, 1 }
  0x1d   : > { %s301_s9 = scalar_select %p300_p13, %s11299_s21, 127 }
  0x1e   : > { %s7745_s10 = sshll.u32 %s299_s23, 7  ;;  %p7747_p0 = scmp.ne.s32.totalorder %s11164_s27, 0 }
  0x1f   : > { %s303_s13 = sadd.s32 %s7745_s10, %s301_s9  ;;  %v11182_v0 = vmov (!%p7747_p0), 0  }
  0x20   : > { %s7746_s16 = sshll.u32 %s303_s13, 2  ;;  %312 = sbr.rel (%p7747_p0) target bundleno = 97 (0x61), region = 52  ;;  %313 = vst [vmem:[#allocation2] sm:$0xf] (!%p7747_p0), %v11182_v0  ;;  %314 = vst [vmem:[#allocation2 + $0x4] sm:$0xf] (!%p7747_p0), %v11182_v0 }
  0x21   : > { %s11310_s12 = scalar_lea.vmem %s13701_s0, %s7746_s16  ;;  %315 = vst [vmem:[#allocation2 + $0x8] sm:$0xf] (!%p7747_p0), %v11182_v0  ;;  %316 = vst [vmem:[#allocation2 + $0xc] sm:$0xf] (!%p7747_p0), %v11182_v0 }
  0x22   : > { %317 = vst [vmem:[#allocation2 + $0x10] sm:$0xf] (!%p7747_p0), %v11182_v0  ;;  %318 = vst [vmem:[#allocation2 + $0x14] sm:$0xf] (!%p7747_p0), %v11182_v0 }
  0x23   : > { %319 = vst [vmem:[#allocation2 + $0x18] sm:$0xf] (!%p7747_p0), %v11182_v0  ;;  %320 = vst [vmem:[#allocation2 + $0x1c] sm:$0xf] (!%p7747_p0), %v11182_v0 }
  0x24   : > { %321 = vst [vmem:[#allocation2 + $0x20] sm:$0xf] (!%p7747_p0), %v11182_v0  ;;  %322 = vst [vmem:[#allocation2 + $0x24] sm:$0xf] (!%p7747_p0), %v11182_v0 }
  0x25   : > { %323 = vst [vmem:[#allocation2 + $0x28] sm:$0xf] (!%p7747_p0), %v11182_v0  ;;  %324 = vst [vmem:[#allocation2 + $0x2c] sm:$0xf] (!%p7747_p0), %v11182_v0 }
  0x26   : > { %325 = vst [vmem:[#allocation2 + $0x30] sm:$0xf] (!%p7747_p0), %v11182_v0  ;;  %326 = vst [vmem:[#allocation2 + $0x34] sm:$0xf] (!%p7747_p0), %v11182_v0 }
  0x27   : > { %327 = vst [vmem:[#allocation2 + $0x38] sm:$0xf] %v11182_v0  ;;  %328 = vst [vmem:[#allocation2 + $0x3c] sm:$0xf] %v11182_v0 }
  0x28   : > { %329 = vst [vmem:[#allocation2 + $0x40] sm:$0xf] %v11182_v0  ;;  %330 = vst [vmem:[#allocation2 + $0x44] sm:$0xf] %v11182_v0 }
  0x29   : > { %331 = vst [vmem:[#allocation2 + $0x48] sm:$0xf] %v11182_v0  ;;  %332 = vst [vmem:[#allocation2 + $0x4c] sm:$0xf] %v11182_v0 }
  0x2a   : > { %333 = vst [vmem:[#allocation2 + $0x50] sm:$0xf] %v11182_v0  ;;  %334 = vst [vmem:[#allocation2 + $0x54] sm:$0xf] %v11182_v0 }
  0x2b   : > { %335 = vst [vmem:[#allocation2 + $0x58] sm:$0xf] %v11182_v0  ;;  %336 = vst [vmem:[#allocation2 + $0x5c] sm:$0xf] %v11182_v0 }
  0x2c   : > { %337 = vst [vmem:[#allocation2 + $0x60] sm:$0xf] %v11182_v0  ;;  %338 = vst [vmem:[#allocation2 + $0x64] sm:$0xf] %v11182_v0 }
  0x2d   : > { %339 = vst [vmem:[#allocation2 + $0x68] sm:$0xf] %v11182_v0  ;;  %340 = vst [vmem:[#allocation2 + $0x6c] sm:$0xf] %v11182_v0 }
  0x2e   : > { %341 = vst [vmem:[#allocation2 + $0x70] sm:$0xf] %v11182_v0  ;;  %342 = vst [vmem:[#allocation2 + $0x74] sm:$0xf] %v11182_v0 }
  0x2f   : > { %343 = vst [vmem:[#allocation2 + $0x78] sm:$0xf] %v11182_v0  ;;  %344 = vst [vmem:[#allocation2 + $0x7c] sm:$0xf] %v11182_v0 }
  0x30   : > { %345 = vst [vmem:[#allocation2 + $0x80] sm:$0xf] %v11182_v0  ;;  %346 = vst [vmem:[#allocation2 + $0x84] sm:$0xf] %v11182_v0 }
  0x31   : > { %347 = vst [vmem:[#allocation2 + $0x88] sm:$0xf] %v11182_v0  ;;  %348 = vst [vmem:[#allocation2 + $0x8c] sm:$0xf] %v11182_v0 }
  0x32   : > { %349 = vst [vmem:[#allocation2 + $0x90] sm:$0xf] %v11182_v0  ;;  %350 = vst [vmem:[#allocation2 + $0x94] sm:$0xf] %v11182_v0 }
  0x33   : > { %351 = vst [vmem:[#allocation2 + $0x98] sm:$0xf] %v11182_v0  ;;  %352 = vst [vmem:[#allocation2 + $0x9c] sm:$0xf] %v11182_v0 }
  0x34   : > { %353 = vst [vmem:[#allocation2 + $0xa0] sm:$0xf] %v11182_v0  ;;  %354 = vst [vmem:[#allocation2 + $0xa4] sm:$0xf] %v11182_v0 }
  0x35   : > { %355 = vst [vmem:[#allocation2 + $0xa8] sm:$0xf] %v11182_v0  ;;  %356 = vst [vmem:[#allocation2 + $0xac] sm:$0xf] %v11182_v0 }
  0x36   : > { %357 = vst [vmem:[#allocation2 + $0xb0] sm:$0xf] %v11182_v0  ;;  %358 = vst [vmem:[#allocation2 + $0xb4] sm:$0xf] %v11182_v0 }
  0x37   : > { %359 = vst [vmem:[#allocation2 + $0xb8] sm:$0xf] %v11182_v0  ;;  %360 = vst [vmem:[#allocation2 + $0xbc] sm:$0xf] %v11182_v0 }
  0x38   : > { %361 = vst [vmem:[#allocation2 + $0xc0] sm:$0xf] %v11182_v0  ;;  %362 = vst [vmem:[#allocation2 + $0xc4] sm:$0xf] %v11182_v0 }
  0x39   : > { %363 = vst [vmem:[#allocation2 + $0xc8] sm:$0xf] %v11182_v0  ;;  %364 = vst [vmem:[#allocation2 + $0xcc] sm:$0xf] %v11182_v0 }
  0x3a   : > { %365 = vst [vmem:[#allocation2 + $0xd0] sm:$0xf] %v11182_v0  ;;  %366 = vst [vmem:[#allocation2 + $0xd4] sm:$0xf] %v11182_v0 }
  0x3b   : > { %367 = vst [vmem:[#allocation2 + $0xd8] sm:$0xf] %v11182_v0  ;;  %368 = vst [vmem:[#allocation2 + $0xdc] sm:$0xf] %v11182_v0 }
  0x3c   : > { %369 = vst [vmem:[#allocation2 + $0xe0] sm:$0xf] %v11182_v0  ;;  %370 = vst [vmem:[#allocation2 + $0xe4] sm:$0xf] %v11182_v0 }
  0x3d   : > { %371 = vst [vmem:[#allocation2 + $0xe8] sm:$0xf] %v11182_v0  ;;  %372 = vst [vmem:[#allocation2 + $0xec] sm:$0xf] %v11182_v0 }
  0x3e   : > { %373 = vst [vmem:[#allocation2 + $0xf0] sm:$0xf] %v11182_v0  ;;  %374 = vst [vmem:[#allocation2 + $0xf4] sm:$0xf] %v11182_v0 }
  0x3f   : > { %375 = vst [vmem:[#allocation2 + $0xf8] sm:$0xf] %v11182_v0  ;;  %376 = vst [vmem:[#allocation2 + $0xfc] sm:$0xf] %v11182_v0 }
  0x40   : > { %377 = vst [vmem:[#allocation2 + $0x100] sm:$0xf] %v11182_v0  ;;  %378 = vst [vmem:[#allocation3] sm:$0xf] %v11182_v0 }
  0x41   : > { %379 = vst [vmem:[#allocation3 + $0x4] sm:$0xf] %v11182_v0  ;;  %380 = vst [vmem:[#allocation3 + $0x8] sm:$0xf] %v11182_v0 }
  0x42   : > { %381 = vst [vmem:[#allocation3 + $0xc] sm:$0xf] %v11182_v0  ;;  %382 = vst [vmem:[#allocation3 + $0x10] sm:$0xf] %v11182_v0 }
  0x43   : > { %383 = vst [vmem:[#allocation3 + $0x14] sm:$0xf] %v11182_v0  ;;  %384 = vst [vmem:[#allocation3 + $0x18] sm:$0xf] %v11182_v0 }
  0x44   : > { %385 = vst [vmem:[#allocation3 + $0x1c] sm:$0xf] %v11182_v0  ;;  %386 = vst [vmem:[#allocation3 + $0x20] sm:$0xf] %v11182_v0 }
  0x45   : > { %387 = vst [vmem:[#allocation3 + $0x24] sm:$0xf] %v11182_v0  ;;  %388 = vst [vmem:[#allocation3 + $0x28] sm:$0xf] %v11182_v0 }
  0x46   : > { %389 = vst [vmem:[#allocation3 + $0x2c] sm:$0xf] %v11182_v0  ;;  %390 = vst [vmem:[#allocation3 + $0x30] sm:$0xf] %v11182_v0 }
  0x47   : > { %391 = vst [vmem:[#allocation3 + $0x34] sm:$0xf] %v11182_v0  ;;  %392 = vst [vmem:[#allocation3 + $0x38] sm:$0xf] %v11182_v0 }
  0x48   : > { %393 = vst [vmem:[#allocation3 + $0x3c] sm:$0xf] %v11182_v0  ;;  %394 = vst [vmem:[#allocation3 + $0x40] sm:$0xf] %v11182_v0 }
  0x49   : > { %395 = vst [vmem:[#allocation3 + $0x44] sm:$0xf] %v11182_v0  ;;  %396 = vst [vmem:[#allocation3 + $0x48] sm:$0xf] %v11182_v0 }
  0x4a   : > { %397 = vst [vmem:[#allocation3 + $0x4c] sm:$0xf] %v11182_v0  ;;  %398 = vst [vmem:[#allocation3 + $0x50] sm:$0xf] %v11182_v0 }
  0x4b   : > { %399 = vst [vmem:[#allocation3 + $0x54] sm:$0xf] %v11182_v0  ;;  %400 = vst [vmem:[#allocation3 + $0x58] sm:$0xf] %v11182_v0 }
  0x4c   : > { %401 = vst [vmem:[#allocation3 + $0x5c] sm:$0xf] %v11182_v0  ;;  %402 = vst [vmem:[#allocation3 + $0x60] sm:$0xf] %v11182_v0 }
  0x4d   : > { %403 = vst [vmem:[#allocation3 + $0x64] sm:$0xf] %v11182_v0  ;;  %404 = vst [vmem:[#allocation3 + $0x68] sm:$0xf] %v11182_v0 }
  0x4e   : > { %405 = vst [vmem:[#allocation3 + $0x6c] sm:$0xf] %v11182_v0  ;;  %406 = vst [vmem:[#allocation3 + $0x70] sm:$0xf] %v11182_v0 }
  0x4f   : > { %407 = vst [vmem:[#allocation3 + $0x74] sm:$0xf] %v11182_v0  ;;  %408 = vst [vmem:[#allocation3 + $0x78] sm:$0xf] %v11182_v0 }
  0x50   : > { %409 = vst [vmem:[#allocation3 + $0x7c] sm:$0xf] %v11182_v0  ;;  %410 = vst [vmem:[#allocation3 + $0x80] sm:$0xf] %v11182_v0 }
  0x51   : > { %411 = vst [vmem:[#allocation3 + $0x84] sm:$0xf] %v11182_v0  ;;  %412 = vst [vmem:[#allocation3 + $0x88] sm:$0xf] %v11182_v0 }
  0x52   : > { %413 = vst [vmem:[#allocation3 + $0x8c] sm:$0xf] %v11182_v0  ;;  %414 = vst [vmem:[#allocation3 + $0x90] sm:$0xf] %v11182_v0 }
  0x53   : > { %415 = vst [vmem:[#allocation3 + $0x94] sm:$0xf] %v11182_v0  ;;  %416 = vst [vmem:[#allocation3 + $0x98] sm:$0xf] %v11182_v0 }
  0x54   : > { %417 = vst [vmem:[#allocation3 + $0x9c] sm:$0xf] %v11182_v0  ;;  %418 = vst [vmem:[#allocation3 + $0xa0] sm:$0xf] %v11182_v0 }
  0x55   : > { %419 = vst [vmem:[#allocation3 + $0xa4] sm:$0xf] %v11182_v0  ;;  %420 = vst [vmem:[#allocation3 + $0xa8] sm:$0xf] %v11182_v0 }
  0x56   : > { %421 = vst [vmem:[#allocation3 + $0xac] sm:$0xf] %v11182_v0  ;;  %422 = vst [vmem:[#allocation3 + $0xb0] sm:$0xf] %v11182_v0 }
  0x57   : > { %423 = vst [vmem:[#allocation3 + $0xb4] sm:$0xf] %v11182_v0  ;;  %424 = vst [vmem:[#allocation3 + $0xb8] sm:$0xf] %v11182_v0 }
  0x58   : > { %425 = vst [vmem:[#allocation3 + $0xbc] sm:$0xf] %v11182_v0  ;;  %426 = vst [vmem:[#allocation3 + $0xc0] sm:$0xf] %v11182_v0 }
  0x59   : > { %427 = vst [vmem:[#allocation3 + $0xc4] sm:$0xf] %v11182_v0  ;;  %428 = vst [vmem:[#allocation3 + $0xc8] sm:$0xf] %v11182_v0 }
  0x5a   : > { %429 = vst [vmem:[#allocation3 + $0xcc] sm:$0xf] %v11182_v0  ;;  %430 = vst [vmem:[#allocation3 + $0xd0] sm:$0xf] %v11182_v0 }
  0x5b   : > { %431 = vst [vmem:[#allocation3 + $0xd4] sm:$0xf] %v11182_v0  ;;  %432 = vst [vmem:[#allocation3 + $0xd8] sm:$0xf] %v11182_v0 }
  0x5c   : > { %433 = vst [vmem:[#allocation3 + $0xdc] sm:$0xf] %v11182_v0  ;;  %434 = vst [vmem:[#allocation3 + $0xe0] sm:$0xf] %v11182_v0 }
  0x5d   : > { %435 = vst [vmem:[#allocation3 + $0xe4] sm:$0xf] %v11182_v0  ;;  %436 = vst [vmem:[#allocation3 + $0xe8] sm:$0xf] %v11182_v0 }
  0x5e   : > { %437 = vst [vmem:[#allocation3 + $0xec] sm:$0xf] %v11182_v0  ;;  %438 = vst [vmem:[#allocation3 + $0xf0] sm:$0xf] %v11182_v0 }
  0x5f   : > { %439 = vst [vmem:[#allocation3 + $0xf4] sm:$0xf] %v11182_v0  ;;  %440 = vst [vmem:[#allocation3 + $0xf8] sm:$0xf] %v11182_v0 }
  0x60   : > { %441 = vst [vmem:[#allocation3 + $0xfc] sm:$0xf] %v11182_v0  ;;  %442 = vst [vmem:[#allocation3 + $0x100] sm:$0xf] %v11182_v0 }
  0x61 PF: > { %p7748_p1 = scmp.le.s32.totalorder %s11164_s27, 0 }
  0x62   : > { %v447_v1 = vld [vmem:[#allocation2 + $0x100] sm:$0xc] (!%p7748_p1) }
  0x63   : > { %446 = sbr.rel (%p7748_p1) target bundleno = 106 (0x6a), region = 56  ;;  %448 = vst [vmem:[#allocation2] sm:$0xc] (!%p7748_p1), %v447_v1 }
  0x67   : > { %v449_v2 = vld [vmem:[#allocation3 + $0x100] sm:$0xc] (!%p7748_p1) }
  0x68   : > { %450 = vst [vmem:[#allocation3] sm:$0xc] (!%p7748_p1), %v449_v2 }
  0x6a PF: > { %v10714_v3 = vld [vmem:[%s13702_s1 + $0x40] sm:$0xff]   ;;  %v10716_v5 = vld [vmem:[%s13702_s1 + $0x48] sm:$0xff]   ;;  %v10718_v7 = vld [vmem:[%s13702_s1 + $0x50] sm:$0xff]   ;;  %vm515_vm0 = vcmask 27648   ;;  %vm677_vm1 = vcmask 1044480   ;;  %vm854_vm2 = vcmask 1045504  }
  0x6b   : > { %v10715_v4 = vld [vmem:[%s13702_s1 + $0x40] sm:$0xff]   ;;  %9488 = vmatprep.subr.bf16.mxu0 %v10714_v3  ;;  %v10717_v6 = vld [vmem:[%s13702_s1 + $0x48] sm:$0xff]   ;;  %v10719_v8 = vld [vmem:[%s13702_s1 + $0x50] sm:$0xff]   ;;  %s8549_s22 = sshll.u32 %s11168_s28, 7  ;;  %s7656_s9 = sshll.u32 %s11312_s11, 4  ;;  %s13643_s9 = int_to_ptr.vmem [resolvable:$true] %s7656_s9 }
  0x6c   : > { %9584 = vmatprep.subr.bf16.mxu1 %v10715_v4  ;;  %9489 = vmatpush3.bf16.msra.mxu0 %v10714_v3  ;;  %v10720_v9 = vld [vmem:[%s13702_s1 + $0x58] sm:$0xff]   ;;  %v10722_v11 = vld [vmem:[%s13702_s1 + $0x60] sm:$0xff]   ;;  %v10724_v13 = vld [vmem:[%s13702_s1 + $0x68] sm:$0xff]   ;;  %s7653_s23 = sadd.s32 %s8549_s22, %s11299_s21  ;;  %s13649_s13 = scalar_lea.sflag [#allocation5], %s294_s20 }
  0x6d   : > { %9585 = vmatpush3.bf16.msra.mxu1 %v10715_v4  ;;  %9490 = vmatprep.subr.bf16.mxu0 %v10716_v5  ;;  %v10721_v10 = vld [vmem:[%s13702_s1 + $0x58] sm:$0xff]   ;;  %v10723_v12 = vld [vmem:[%s13702_s1 + $0x60] sm:$0xff]   ;;  %v453_v16 = vld [vmem:[%s11310_s12 + $0x8] sm:$0xf]  ;;  %s8550_s28 = sshll.u32 %s7653_s23, 6  ;;  %s11086_s16 = scalar_lea.vmem %s13643_s9, 4096 }
  0x6e   : > { %9586 = vmatprep.subr.bf16.mxu1 %v10717_v6  ;;  %v451_v14 = vld [vmem:[%s11310_s12] sm:$0xf]  ;;  %v452_v15 = vld [vmem:[%s11310_s12 + $0x4] sm:$0xf]  ;;  %v10725_v17 = vld [vmem:[%s13702_s1 + $0x68] sm:$0xff]   ;;  %p11087_p2 = scmp.ne.s32.totalorder %s13643_s9, %s11086_s16  ;;  %s11183_s27 = smov [#allocation4]  }
  0x6f   : > { %v454_v18 = vld [vmem:[%s11310_s12 + $0xc] sm:$0xf]  ;;  %516 = vst.msk [vmem:[#allocation2 + $0x4] sm:$0xf] %vm515_vm0, %v451_v14  ;;  %517 = vst.msk [vmem:[#allocation2 + $0x8] sm:$0xf] %vm515_vm0, %v452_v15 }
  0x70   : > { %9491 = vmatpush3.bf16.msra.mxu0 %v10716_v5  ;;  %518 = vst.msk [vmem:[#allocation2 + $0xc] sm:$0xf] %vm515_vm0, %v453_v16  ;;  %v466_v19 = vld [vmem:[%s11310_s12 + $0x3c] sm:$0xf]  ;;  %519 = vst.msk [vmem:[#allocation2 + $0x10] sm:$0xf] %vm515_vm0, %v454_v18  ;;  %p11088_p4 = pnand %p11087_p2, %p11277_p3 }
  0x71   : > { %9587 = vmatpush3.bf16.msra.mxu1 %v10717_v6  ;;  %9492 = vmatprep.subr.bf16.mxu0 %v10718_v7  ;;  %v467_v20 = vld [vmem:[%s11310_s12 + $0x40] sm:$0xf]  ;;  %v468_v21 = vld [vmem:[%s11310_s12 + $0x44] sm:$0xf]  ;;  %v469_v22 = vld [vmem:[%s11310_s12 + $0x48] sm:$0xf] }
  0x72   : > { %9588 = vmatprep.subr.bf16.mxu1 %v10719_v8  ;;  %531 = vst.msk [vmem:[#allocation2 + $0x40] sm:$0xf] %vm515_vm0, %v466_v19  ;;  %v470_v23 = vld [vmem:[%s11310_s12 + $0x4c] sm:$0xf]  ;;  %532 = vst.msk [vmem:[#allocation2 + $0x44] sm:$0xf] %vm515_vm0, %v467_v20  ;;  %p11089_p5 = pneg %p11088_p4 }
  0x73   : > { %533 = vst.msk [vmem:[#allocation2 + $0x48] sm:$0xf] %vm515_vm0, %v468_v21  ;;  %534 = vst.msk [vmem:[#allocation2 + $0x4c] sm:$0xf] %vm515_vm0, %v469_v22  ;;  %v455_v24 = vld [vmem:[%s11310_s12 + $0x10] sm:$0xf] }
  0x74   : > { %9493 = vmatpush3.bf16.msra.mxu0 %v10718_v7  ;;  %v10726_v25 = vld [vmem:[%s13702_s1 + $0x70] sm:$0xff]   ;;  %535 = vst.msk [vmem:[#allocation2 + $0x50] sm:$0xf] %vm515_vm0, %v470_v23  ;;  %520 = vst.msk [vmem:[#allocation2 + $0x14] sm:$0xf] %vm515_vm0, %v455_v24  ;;  %v10728_v28 = vld [vmem:[%s13702_s1 + $0x78] sm:$0xff]  }
  0x75   : > { %9589 = vmatpush3.bf16.msra.mxu1 %v10719_v8  ;;  %9494 = vmatprep.subr.bf16.mxu0 %v10720_v9  ;;  %v471_v26 = vld [vmem:[%s11310_s12 + $0x50] sm:$0xf]  ;;  %v615_v29 = vld [vmem:[#allocation2] sm:$0x8]  ;;  %v10729_v30 = vld [vmem:[%s13702_s1 + $0x78] sm:$0xff]   ;;  %s11090_s17 = sshll.u32 %s11183_s27, 4  ;;  %s11091_s17 = int_to_ptr.vmem [resolvable:$false] %s11090_s17 }
  0x76   : > { %9590 = vmatprep.subr.bf16.mxu1 %v10721_v10  ;;  %v10727_v27 = vld [vmem:[%s13702_s1 + $0x70] sm:$0xff]   ;;  %536 = vst.msk [vmem:[#allocation2 + $0x54] sm:$0xf] %vm515_vm0, %v471_v26  ;;  %v11516_v31 = vld [vmem:[#allocation2 + $0x4] sm:$0xf]  ;;  %v10738_v1 = vld [vmem:[%s13702_s1 + $0x8] sm:$0xff]   ;;  %p11093_p6 = scmp.lt.s32.totalorder %s13643_s9, %s11091_s17 }
  0x77   : > { %v11518_v32 = vld [vmem:[#allocation2 + $0x8] sm:$0xf]  ;;  %v11520_v33 = vld [vmem:[#allocation2 + $0xc] sm:$0xf]  ;;  %v11522_v34 = vld [vmem:[#allocation2 + $0x10] sm:$0xf]  ;;  %v7765_v35 = vcombine.low %v615_v29, %v11516_v31 }
  0x78   : > { %9495 = vmatpush3.bf16.msra.mxu0 %v10720_v9  ;;  %v11527_v36 = vcombine.low %v11518_v32, %v11520_v33  ;;  %v456_v38 = vld [vmem:[%s11310_s12 + $0x14] sm:$0xf]  ;;  %v7808_v39 = vcombine.low %v11516_v31, %v11518_v32  ;;  %v10736_v50 = vld [vmem:[%s13702_s1] sm:$0xff]   ;;  %v457_v55 = vld [vmem:[%s11310_s12 + $0x18] sm:$0xf]  ;;  %s11092_s18 = scalar_lea.vmem %s11091_s17, 8192 }
  0x79   : > { %9591 = vmatpush3.bf16.msra.mxu1 %v10721_v10  ;;  %9496 = vmatprep.subr.bf16.mxu0 %v10722_v11  ;;  %v1373_v37 = vld [vmem:[#allocation2 + $0x40] sm:$0x8]  ;;  %v11534_v41 = vld [vmem:[#allocation2 + $0x44] sm:$0xf]  ;;  %521 = vst.msk [vmem:[#allocation2 + $0x18] sm:$0xf] %vm515_vm0, %v456_v38  ;;  %p11094_p7 = scmp.lt.s32.totalorder %s11092_s18, %s11086_s16 }
  0x7a   : > { %9592 = vmatprep.subr.bf16.mxu1 %v10723_v12  ;;  %v11536_v42 = vld [vmem:[#allocation2 + $0x48] sm:$0xf]  ;;  %v11538_v43 = vld [vmem:[#allocation2 + $0x4c] sm:$0xf]  ;;  %v678_v44 = vrot.slane %v7765_v35, 3  ;;  %v679_v45 = vrot.slane %v11527_v36, 3  ;;  %v7857_v47 = vcombine.low %v1373_v37, %v11534_v41 }
  0x7b   : > { %v11542_v46 = vld [vmem:[#allocation2 + $0x50] sm:$0xf]  ;;  %v11547_v48 = vcombine.low %v11536_v42, %v11538_v43  ;;  %v11549_v49 = vld [vmem:[#allocation2 + $0x14] sm:$0xf]  ;;  %v10737_v51 = vld [vmem:[%s13702_s1] sm:$0xff]   ;;  %p11095_p9 = por %p11094_p7, %p11093_p6 }
  0x7c   : > { %9497 = vmatpush3.bf16.msra.mxu0 %v10722_v11  ;;  %v11561_v53 = vcombine.low %v11522_v34, %v11549_v49  ;;  %v472_v56 = vld [vmem:[%s11310_s12 + $0x54] sm:$0xf]  ;;  %v680_v58 = vsel %vm677_vm1, %v678_v44, %v679_v45  ;;  %v1434_v59 = vrot.slane %v7857_v47, 3  ;;  %522 = vst.msk [vmem:[#allocation2 + $0x1c] sm:$0xf] %vm515_vm0, %v457_v55  ;;  %v10739_v5 = vld [vmem:[%s13702_s1 + $0x8] sm:$0xff]  }
  0x7d   : > { %9593 = vmatpush3.bf16.msra.mxu1 %v10723_v12  ;;  %9498 = vmatprep.subr.bf16.mxu0 %v10724_v13  ;;  %v11563_v54 = vld [vmem:[#allocation2 + $0x54] sm:$0xf]  ;;  %v1435_v60 = vrot.slane %v11547_v48, 3  ;;  %v473_v62 = vld [vmem:[%s11310_s12 + $0x58] sm:$0xf]  ;;  %v10784_v32 = vld [vmem:[%s13702_s1 + $0x48] sm:$0xff]   ;;  %p11096_p10 = pnand %p11095_p9, %p11089_p5 }
  0x7e   : > { %9594 = vmatprep.subr.bf16.mxu1 %v10725_v17  ;;  %v11573_v61 = vcombine.low %v11542_v46, %v11563_v54  ;;  %537 = vst.msk [vmem:[#allocation2 + $0x58] sm:$0xf] %vm515_vm0, %v472_v56  ;;  %v458_v63 = vld [vmem:[%s11310_s12 + $0x1c] sm:$0xf]  ;;  %9504 = vmatprep.mubr.bf16.mxu0 %v680_v58  ;;  %v681_v0 = vrot.slane %v11561_v53, 3  ;;  %v10743_v11 = vld [vmem:[%s13702_s1 + $0x10] sm:$0xff]  }
  0x7f   : > { %538 = vst.msk [vmem:[#allocation2 + $0x5c] sm:$0xf] %vm515_vm0, %v473_v62  ;;  %v459_v2 = vld [vmem:[%s11310_s12 + $0x20] sm:$0xf]  ;;  %523 = vst.msk [vmem:[#allocation2 + $0x20] sm:$0xf] %vm515_vm0, %v458_v63  ;;  %v1436_v3 = vsel %vm677_vm1, %v1434_v59, %v1435_v60 }
  0x80   : > { %9499 = vmatpush3.bf16.msra.mxu0 %v10724_v13  ;;  %v1437_v4 = vrot.slane %v11573_v61, 3  ;;  %524 = vst.msk [vmem:[#allocation2 + $0x24] sm:$0xf] %vm515_vm0, %v459_v2  ;;  %v474_v6 = vld [vmem:[%s11310_s12 + $0x5c] sm:$0xf]  ;;  %9600 = vmatprep.mubr.bf16.mxu1 %v1436_v3  ;;  %v682_v7 = vsel %vm677_vm1, %v679_v45, %v681_v0  ;;  %v10745_v13 = vld [vmem:[%s13702_s1 + $0x10] sm:$0xff]  }
  0x81   : > { %9595 = vmatpush3.bf16.msra.mxu1 %v10725_v17  ;;  %9500 = vmatprep.subr.bf16.mxu0 %v10726_v25  ;;  %v475_v8 = vld [vmem:[%s11310_s12 + $0x60] sm:$0xf]  ;;  %539 = vst.msk [vmem:[#allocation2 + $0x60] sm:$0xf] %vm515_vm0, %v474_v6  ;;  %v11599_v10 = vld [vmem:[#allocation2 + $0x18] sm:$0xf] }
  0x82   : > { %9596 = vmatprep.subr.bf16.mxu1 %v10727_v27  ;;  %v1438_v9 = vsel %vm677_vm1, %v1435_v60, %v1437_v4  ;;  %540 = vst.msk [vmem:[#allocation2 + $0x64] sm:$0xf] %vm515_vm0, %v475_v8  ;;  %v460_v14 = vld [vmem:[%s11310_s12 + $0x24] sm:$0xf]  ;;  %v461_v15 = vld [vmem:[%s11310_s12 + $0x28] sm:$0xf] }
  0x83   : > { %v11612_v16 = vld [vmem:[#allocation2 + $0x1c] sm:$0xf]  ;;  %525 = vst.msk [vmem:[#allocation2 + $0x28] sm:$0xf] %vm515_vm0, %v460_v14  ;;  %526 = vst.msk [vmem:[#allocation2 + $0x2c] sm:$0xf] %vm515_vm0, %v461_v15 }
  0x84   : > { %9501 = vmatpush3.bf16.msra.mxu0 %v10726_v25  ;;  %v476_v18 = vld [vmem:[%s11310_s12 + $0x64] sm:$0xf]  ;;  %v11621_v19 = vcombine.low %v11599_v10, %v11612_v16  ;;  %v477_v22 = vld [vmem:[%s11310_s12 + $0x68] sm:$0xf]  ;;  %v462_v26 = vld [vmem:[%s11310_s12 + $0x2c] sm:$0xf] }
  0x85   : > { %9597 = vmatpush3.bf16.msra.mxu1 %v10727_v27  ;;  %9502 = vmatprep.subr.bf16.mxu0 %v10728_v28  ;;  %v11614_v17 = vld [vmem:[#allocation2 + $0x58] sm:$0xf]  ;;  %541 = vst.msk [vmem:[#allocation2 + $0x68] sm:$0xf] %vm515_vm0, %v476_v18  ;;  %542 = vst.msk [vmem:[#allocation2 + $0x6c] sm:$0xf] %vm515_vm0, %v477_v22 }
  0x86   : > { %9598 = vmatprep.subr.bf16.mxu1 %v10729_v30  ;;  %v11623_v20 = vld [vmem:[#allocation2 + $0x5c] sm:$0xf]  ;;  %v11625_v21 = vld [vmem:[#allocation2 + $0x20] sm:$0xf]  ;;  %v463_v27 = vld [vmem:[%s11310_s12 + $0x30] sm:$0xf] }
  0x87   : > { %v11633_v24 = vcombine.low %v11614_v17, %v11623_v20  ;;  %v11635_v25 = vld [vmem:[#allocation2 + $0x24] sm:$0xf]  ;;  %v683_v29 = vrot.slane %v11621_v19, 3  ;;  %527 = vst.msk [vmem:[#allocation2 + $0x30] sm:$0xf] %vm515_vm0, %v462_v26  ;;  %v10746_v44 = vld [vmem:[%s13702_s1 + $0x18] sm:$0xff]  }
  0x88   : > { %9503 = vmatpush3.bf16.msra.mxu0 %v10728_v28  ;;  %v11647_v35 = vld [vmem:[#allocation2 + $0x60] sm:$0xf]  ;;  %528 = vst.msk [vmem:[#allocation2 + $0x34] sm:$0xf] %vm515_vm0, %v463_v27  ;;  %v10747_v55 = vld [vmem:[%s13702_s1 + $0x18] sm:$0xff]  }
  0x89   : > { %9599 = vmatpush3.bf16.msra.mxu1 %v10729_v30  ;;  %9520 = vmatprep.subr.bf16.mxu0 %v10736_v50  ;;  %v11645_v30 = vcombine.low %v11625_v21, %v11635_v25  ;;  %v1439_v37 = vrot.slane %v11633_v24, 3  ;;  %v11652_v38 = vld [vmem:[#allocation2 + $0x64] sm:$0xf]  ;;  %v684_v47 = vsel %vm677_vm1, %v681_v0, %v683_v29  ;;  %v478_v56 = vld [vmem:[%s11310_s12 + $0x6c] sm:$0xf] }
  0x8a   : > { %9616 = vmatprep.subr.bf16.mxu1 %v10737_v51  ;;  %v479_v58 = vld [vmem:[%s11310_s12 + $0x70] sm:$0xf]  ;;  %v10751_v60 = vld [vmem:[%s13702_s1 + $0x20] sm:$0xff]   ;;  %543 = vst.msk [vmem:[#allocation2 + $0x70] sm:$0xf] %vm515_vm0, %v478_v56 }
  0x8b   : > { %9505 = vmatmul.mubr.bf16.vlgmr.msra.gmra.mrb[0].mxu0 %v682_v7  ;;  %v1440_v59 = vsel %vm677_vm1, %v1437_v4, %v1439_v37  ;;  %544 = vst.msk [vmem:[#allocation2 + $0x74] sm:$0xf] %vm515_vm0, %v479_v58  ;;  %v11680_v0 = vld [vmem:[#allocation2 + $0x28] sm:$0xf]  ;;  %v10753_v2 = vld [vmem:[%s13702_s1 + $0x20] sm:$0xff]  }
  0x8c   : > { %9601 = vmatmul.mubr.bf16.vlgmr.msra.gmra.mrb[0].mxu1 %v1438_v9  ;;  %9521 = vmatpush3.bf16.msra.mxu0 %v10736_v50  ;;  %v685_v50 = vrot.slane %v11645_v30, 3  ;;  %v11691_v4 = vld [vmem:[#allocation2 + $0x68] sm:$0xf]  ;;  %v11696_v7 = vld [vmem:[#allocation2 + $0x6c] sm:$0xf] }
  0x8d   : > { %9617 = vmatpush3.bf16.msra.mxu1 %v10737_v51  ;;  %9522 = vmatprep.subr.bf16.mxu0 %v10738_v1  ;;  %v11663_v51 = vcombine.low %v11647_v35, %v11652_v38  ;;  %v464_v8 = vld [vmem:[%s11310_s12 + $0x34] sm:$0xf]  ;;  %v465_v22 = vld [vmem:[%s11310_s12 + $0x38] sm:$0xf]  ;;  %v10755_v58 = vld [vmem:[%s13702_s1 + $0x28] sm:$0xff]  }
  0x8e   : > { %9618 = vmatprep.subr.bf16.mxu1 %v10739_v5  ;;  %9508 = vmatprep.mubr.bf16.mxu0 %v684_v47  ;;  %v686_v62 = vsel %vm677_vm1, %v683_v29, %v685_v50  ;;  %v11706_v14 = vld [vmem:[#allocation2 + $0x30] sm:$0xf]  ;;  %529 = vst.msk [vmem:[#allocation2 + $0x38] sm:$0xf] %vm515_vm0, %v464_v8  ;;  %v480_v26 = vld [vmem:[%s11310_s12 + $0x74] sm:$0xf] }
  0x8f   : > { %9604 = vmatprep.mubr.bf16.mxu1 %v1440_v59  ;;  %v1441_v63 = vrot.slane %v11663_v51, 3  ;;  %v11708_v15 = vld [vmem:[#allocation2 + $0x34] sm:$0xf]  ;;  %v481_v27 = vld [vmem:[%s11310_s12 + $0x78] sm:$0xf] }
  0x90   : > { %9523 = vmatpush3.bf16.msra.mxu0 %v10738_v1  ;;  %v11682_v1 = vld [vmem:[#allocation2 + $0x2c] sm:$0xf]  ;;  %v11713_v18 = vcombine.low %v11706_v14, %v11708_v15  ;;  %530 = vst.msk [vmem:[#allocation2 + $0x3c] sm:$0xf] %vm515_vm0, %v465_v22  ;;  %545 = vst.msk [vmem:[#allocation2 + $0x78] sm:$0xf] %vm515_vm0, %v480_v26 }
  0x91   : > { %9619 = vmatpush3.bf16.msra.mxu1 %v10739_v5  ;;  %9524 = vmatprep.subr.bf16.mxu0 %v10743_v11  ;;  %v11689_v3 = vcombine.low %v11680_v0, %v11682_v1  ;;  %v1442_v6 = vsel %vm677_vm1, %v1439_v37, %v1441_v63  ;;  %546 = vst.msk [vmem:[#allocation2 + $0x7c] sm:$0xf] %vm515_vm0, %v481_v27  ;;  %v11729_v56 = vld [vmem:[#allocation2 + $0x70] sm:$0xf]  ;;  %v856_v22 = vrot.slane %v11527_v36, 2  ;;  %v862_v36 = vrot.slane %v11645_v30, 2 }
  0x92   : > { %9620 = vmatprep.subr.bf16.mxu1 %v10745_v13  ;;  %v10759_v8 = vld [vmem:[%s13702_s1 + $0x30] sm:$0xff]  }
  0x93   : > { %9509 = vmatmul.mubr.bf16.gmra.mrb[4].mxu0 %v686_v62  ;;  %v10761_v29 = vld [vmem:[%s13702_s1 + $0x30] sm:$0xff]  }
  0x94   : > { %9525 = vmatpush3.bf16.msra.mxu0 %v10743_v11  ;;  %9605 = vmatmul.mubr.bf16.gmra.mrb[4].mxu1 %v1442_v6  ;;  %v687_v11 = vrot.slane %v11689_v3, 3  ;;  %v10758_v6 = vld [vmem:[#allocation2 + $0x40] ss:$0 sps:$4 sm:$0x77]  }
  0x95   : > { %9621 = vmatpush3.bf16.msra.mxu1 %v10745_v13  ;;  %9526 = vmatprep.subr.bf16.mxu0 %v10746_v44  ;;  %v11704_v13 = vcombine.low %v11691_v4, %v11696_v7  ;;  %v11754_v9 = vld [vmem:[#allocation2 + $0x38] sm:$0xf] }
  0x96   : > { %9622 = vmatprep.subr.bf16.mxu1 %v10747_v55  ;;  %v688_v37 = vsel %vm677_vm1, %v685_v50, %v687_v11  ;;  %v11731_v50 = vld [vmem:[#allocation2 + $0x74] sm:$0xf] }
  0x97   : > { %v1443_v47 = vrot.slane %v11704_v13, 3  ;;  %9512 = vmatprep.mubr.bf16.mxu0 %v688_v37  ;;  %v11739_v62 = vcombine.low %v11729_v56, %v11731_v50  ;;  %v482_v37 = vld [vmem:[%s11310_s12 + $0x7c] sm:$0xf]  ;;  %v11763_v26 = vld [vmem:[#allocation2 + $0x78] sm:$0xf] }
  0x98   : > { %9527 = vmatpush3.bf16.msra.mxu0 %v10746_v44  ;;  %v10754_v44 = vld [vmem:[%s13702_s1 + $0x28] sm:$0xff]   ;;  %547 = vst.msk [vmem:[#allocation2 + $0x80] sm:$0xf] %vm515_vm0, %v482_v37  ;;  %v11761_v37 = vld [vmem:[#allocation2 + $0x3c] sm:$0xf] }
  0x99   : > { %9623 = vmatpush3.bf16.msra.mxu1 %v10747_v55  ;;  %9528 = vmatprep.subr.bf16.mxu0 %v10751_v60  ;;  %v689_v55 = vrot.slane %v11713_v18, 3  ;;  %v1444_v59 = vsel %vm677_vm1, %v1441_v63, %v1443_v47  ;;  %v1445_v63 = vrot.slane %v11739_v62, 3  ;;  %v11765_v45 = vld [vmem:[#allocation2 + $0x7c] sm:$0xf]  ;;  %v11771_v28 = vcombine.low %v11754_v9, %v11761_v37 }
  0x9a   : > { %9624 = vmatprep.subr.bf16.mxu1 %v10753_v2  ;;  %9608 = vmatprep.mubr.bf16.mxu1 %v1444_v59 }
  0x9b   : > { %v690_v27 = vsel %vm677_vm1, %v687_v11, %v689_v55  ;;  %v1446_v59 = vsel %vm677_vm1, %v1443_v47, %v1445_v63  ;;  %v582_v11 = vld [vmem:[#allocation2] sm:$0xc] }
  0x9c   : > { %9529 = vmatpush3.bf16.msra.mxu0 %v10751_v60  ;;  %v10762_v60 = vld [vmem:[%s13702_s1 + $0x38] sm:$0xff]   ;;  %9609 = vmatmul.mubr.bf16.gmra.mrb[8].mxu1 %v1446_v59  ;;  %v7782_v5 = vcombine.low %v582_v11, %v11516_v31  ;;  %v10783_v31 = vld [vmem:[%s13702_s1 + $0x40] sm:$0xff]  }
  0x9d   : > { %9513 = vmatmul.mubr.bf16.gmra.mrb[8].mxu0 %v690_v27  ;;  %9625 = vmatpush3.bf16.msra.mxu1 %v10753_v2  ;;  %v1340_v27 = vld [vmem:[#allocation2 + $0x40] sm:$0xc]  ;;  %v1611_v2 = vrot.slane %v11547_v48, 2  ;;  %v11775_v48 = vcombine.low %v11763_v26, %v11765_v45  ;;  %v10763_v59 = vld [vmem:[%s13702_s1 + $0x38] sm:$0xff]  }
  0x9e   : > { %9530 = vmatprep.subr.bf16.mxu0 %v10754_v44  ;;  %9626 = vmatprep.subr.bf16.mxu1 %v10755_v58  ;;  %v7874_v47 = vcombine.low %v1340_v27, %v11534_v41  ;;  %v855_v23 = vrot.slane %v7782_v5, 2  ;;  %v691_v27 = vrot.slane %v11771_v28, 3  ;;  %v10764_v5 = vld [vmem:[%s13702_s1 + $0x80] sm:$0xff]  }
  0x9f   : > { %v10760_v52 = vld [vmem:[#allocation2 + $0x80] ss:$0 sps:$4 sm:$0x77]  }
  0xa0   : > { %9531 = vmatpush3.bf16.msra.mxu0 %v10754_v44  ;;  %v693_v44 = vrot.slane %v10758_v6, 3  ;;  %v1610_v11 = vrot.slane %v7874_v47, 2  ;;  %v857_v12 = vsel %vm854_vm2, %v855_v23, %v856_v22  ;;  %v692_v6 = vsel %vm677_vm1, %v689_v55, %v691_v27  ;;  %v10765_v55 = vld [vmem:[%s13702_s1 + $0x80] sm:$0xff]  }
  0xa1   : > { %9627 = vmatpush3.bf16.msra.mxu1 %v10755_v58  ;;  %9532 = vmatprep.subr.bf16.mxu0 %v10759_v8  ;;  %v1447_v58 = vrot.slane %v11775_v48, 3  ;;  %v1449_v47 = vrot.slane %v10760_v52, 3  ;;  %v858_v23 = vrot.slane %v11561_v53, 2  ;;  %v1615_v52 = vrot.slane %v11633_v24, 2  ;;  %v10768_v24 = vld [vmem:[%s13702_s1 + $0x90] sm:$0xff]  }
  0xa2   : > { %9628 = vmatprep.subr.bf16.mxu1 %v10761_v29  ;;  %v694_v57 = vsel %vm677_vm1, %v691_v27, %v693_v44  ;;  %9516 = vmatprep.mubr.bf16.mxu0 %v692_v6  ;;  %v10769_v44 = vld [vmem:[%s13702_s1 + $0x90] sm:$0xff]   ;;  %v10772_v6 = vld [vmem:[%s13702_s1 + $0xa0] sm:$0xff]  }
  0xa3   : > { %v1448_v40 = vsel %vm677_vm1, %v1445_v63, %v1447_v58  ;;  %v860_v63 = vrot.slane %v11621_v19, 2  ;;  %v859_v53 = vsel %vm854_vm2, %v856_v22, %v858_v23  ;;  %v1617_v22 = vrot.slane %v11663_v51, 2 }
  0xa4   : > { %9533 = vmatpush3.bf16.msra.mxu0 %v10759_v8  ;;  %9612 = vmatprep.mubr.bf16.mxu1 %v1448_v40  ;;  %v1612_v8 = vsel %vm854_vm2, %v1610_v11, %v1611_v2  ;;  %v1613_v40 = vrot.slane %v11573_v61, 2  ;;  %v10767_v61 = vld [vmem:[%s13702_s1 + $0x88] sm:$0xff]   ;;  %v10770_v11 = vld [vmem:[%s13702_s1 + $0x98] sm:$0xff]  }
  0xa5   : > { %9629 = vmatpush3.bf16.msra.mxu1 %v10761_v29  ;;  %9534 = vmatprep.subr.bf16.mxu0 %v10762_v60  ;;  %v1450_v29 = vsel %vm677_vm1, %v1447_v58, %v1449_v47  ;;  %v863_v30 = vsel %vm854_vm2, %v860_v63, %v862_v36  ;;  %v866_v58 = vrot.slane %v11713_v18, 2  ;;  %v1621_v47 = vrot.slane %v11739_v62, 2 }
  0xa6   : > { %9517 = vmatmul.mubr.bf16.gmra.mrb[12].mxu0 %v694_v57  ;;  %9630 = vmatprep.subr.bf16.mxu1 %v10763_v59  ;;  %v10766_v57 = vld [vmem:[%s13702_s1 + $0x88] sm:$0xff]   ;;  %v1616_v19 = vsel %vm854_vm2, %v1613_v40, %v1615_v52  ;;  %v1623_v18 = vrot.slane %v11775_v48, 2 }
  0xa7   : > { %9536 = vmatprep.mubr.bf16.mxu0 %v857_v12  ;;  %9613 = vmatmul.mubr.bf16.gmra.mrb[12].mxu1 %v1450_v29  ;;  %v861_v12 = vsel %vm854_vm2, %v858_v23, %v860_v63  ;;  %v10773_v23 = vld [vmem:[%s13702_s1 + $0xa0] sm:$0xff]   ;;  %v10775_v48 = vld [vmem:[%s13702_s1 + $0xa8] sm:$0xff]  }
  0xa8   : > { %9535 = vmatpush3.bf16.msra.mxu0 %v10762_v60  ;;  %9632 = vmatprep.mubr.bf16.mxu1 %v1612_v8  ;;  %v1614_v60 = vsel %vm854_vm2, %v1611_v2, %v1613_v40  ;;  %v864_v2 = vrot.slane %v11689_v3, 2  ;;  %v1618_v3 = vsel %vm854_vm2, %v1615_v52, %v1617_v22  ;;  %v10776_v8 = vld [vmem:[#allocation2 + $0x40] ss:$0 sps:$4 sm:$0x33]   ;;  %v1624_v40 = vsel %vm854_vm2, %v1621_v47, %v1623_v18 }
  0xa9   : > { %9552 = vmatprep.subr.bf16.mxu0 %v10764_v5  ;;  %9631 = vmatpush3.bf16.msra.mxu1 %v10763_v59  ;;  %v1619_v59 = vrot.slane %v11704_v13, 2  ;;  %v10771_v13 = vld [vmem:[%s13702_s1 + $0x98] sm:$0xff]   ;;  %v10778_v29 = vld [vmem:[#allocation2 + $0x80] ss:$0 sps:$4 sm:$0x33]   ;;  %v870_v52 = vrot.slane %v10776_v8, 2 }
  0xaa   : > { %9648 = vmatprep.subr.bf16.mxu1 %v10765_v55  ;;  %v865_v51 = vsel %vm854_vm2, %v862_v36, %v864_v2  ;;  %v484_v36 = vld [vmem:[%s11310_s12 + $0x84] sm:$0xf] }
  0xab   : > { %v1620_v27 = vsel %vm854_vm2, %v1617_v22, %v1619_v59  ;;  %v1622_v62 = vsel %vm854_vm2, %v1619_v59, %v1621_v47  ;;  %v485_v22 = vld [vmem:[%s11310_s12 + $0x88] sm:$0xf]  ;;  %549 = vst.msk [vmem:[#allocation2 + $0x88] sm:$0xf] %vm515_vm0, %v484_v36  ;;  %v498_v59 = vld [vmem:[%s11310_s12 + $0xbc] sm:$0xf] }
  0xac   : > { %550 = vst.msk [vmem:[#allocation2 + $0x8c] sm:$0xf] %vm515_vm0, %v485_v22  ;;  %563 = vst.msk [vmem:[#allocation2 + $0xc0] sm:$0xf] %vm515_vm0, %v498_v59  ;;  %v507_v36 = vld [vmem:[%s11310_s12 + $0xe0] sm:$0xf]  ;;  %v13722_v22 = vcombine.low %v11612_v16, %v11625_v21  ;;  %v13724_v21 = vcombine.low %v11623_v20, %v11647_v35 }
  0xad   : > { %572 = vst.msk [vmem:[#allocation2 + $0xe4] sm:$0xf] %vm515_vm0, %v507_v36  ;;  %v492_v59 = vld [vmem:[%s11310_s12 + $0xa4] sm:$0xf]  ;;  %v13727_v36 = vcombine.low %v11696_v7, %v11729_v56 }
  0xae   : > { %9537 = vmatmul.mubr.bf16.vlgmr.msra.gmra.mrb[0].mxu0 %v859_v53  ;;  %v10777_v53 = vld [vmem:[%s13702_s1 + $0xb0] sm:$0xff]   ;;  %557 = vst.msk [vmem:[#allocation2 + $0xa8] sm:$0xf] %vm515_vm0, %v492_v59  ;;  %v508_v16 = vld [vmem:[%s11310_s12 + $0xe4] sm:$0xf] }
  0xaf   : > { %9553 = vmatpush3.bf16.msra.mxu0 %v10764_v5  ;;  %9540 = vmatprep.mubr.bf16.mxu0 %v861_v12  ;;  %v868_v5 = vrot.slane %v11771_v28, 2  ;;  %v10774_v28 = vld [vmem:[%s13702_s1 + $0xa8] sm:$0xff]   ;;  %v10779_v12 = vld [vmem:[%s13702_s1 + $0xb0] sm:$0xff]   ;;  %573 = vst.msk [vmem:[#allocation2 + $0xe8] sm:$0xf] %vm515_vm0, %v508_v16 }
  0xb0   : > { %9633 = vmatmul.mubr.bf16.vlgmr.msra.gmra.mrb[0].mxu1 %v1614_v60  ;;  %9554 = vmatprep.subr.bf16.mxu0 %v10766_v57  ;;  %v10795_v59 = vld [vmem:[%s13702_s1 + $0x70] sm:$0xff]  }
  0xb1   : > { %9649 = vmatpush3.bf16.msra.mxu1 %v10765_v55  ;;  %9636 = vmatprep.mubr.bf16.mxu1 %v1616_v19  ;;  %v867_v55 = vsel %vm854_vm2, %v864_v2, %v866_v58  ;;  %v869_v63 = vsel %vm854_vm2, %v866_v58, %v868_v5  ;;  %v871_v60 = vsel %vm854_vm2, %v868_v5, %v870_v52  ;;  %v483_v19 = vld [vmem:[%s11310_s12 + $0x80] sm:$0xf]  ;;  %v486_v2 = vld [vmem:[%s11310_s12 + $0x8c] sm:$0xf]  ;;  %v503_v58 = vld [vmem:[%s11310_s12 + $0xd0] sm:$0xf] }
  0xb2   : > { %9650 = vmatprep.subr.bf16.mxu1 %v10767_v61  ;;  %548 = vst.msk [vmem:[#allocation2 + $0x84] sm:$0xf] %vm515_vm0, %v483_v19  ;;  %551 = vst.msk [vmem:[#allocation2 + $0x90] sm:$0xf] %vm515_vm0, %v486_v2  ;;  %v11905_v5 = vld [vmem:[#allocation2 + $0x88] sm:$0xf]  ;;  %v13720_v52 = vcombine.low %v11538_v43, %v11542_v46 }
  0xb3   : > { %9555 = vmatpush3.bf16.msra.mxu0 %v10766_v57  ;;  %v1625_v57 = vrot.slane %v10778_v29, 2  ;;  %568 = vst.msk [vmem:[#allocation2 + $0xd4] sm:$0xf] %vm515_vm0, %v503_v58  ;;  %v11907_v47 = vld [vmem:[#allocation2 + $0x8c] sm:$0xf]  ;;  %v13718_v29 = vcombine.low %v11520_v33, %v11522_v34  ;;  %v10790_v2 = vld [vmem:[%s13702_s1 + $0x60] sm:$0xff]  }
  0xb4   : > { %9556 = vmatprep.subr.bf16.mxu0 %v10768_v24  ;;  %v489_v34 = vld [vmem:[%s11310_s12 + $0x98] sm:$0xf]  ;;  %v490_v46 = vld [vmem:[%s11310_s12 + $0x9c] sm:$0xf]  ;;  %v495_v58 = vld [vmem:[%s11310_s12 + $0xb0] sm:$0xf] }
  0xb5   : > { %9651 = vmatpush3.bf16.msra.mxu1 %v10767_v61  ;;  %v10780_v61 = vld [vmem:[%s13702_s1 + $0xb8] sm:$0xff]   ;;  %554 = vst.msk [vmem:[#allocation2 + $0x9c] sm:$0xf] %vm515_vm0, %v489_v34  ;;  %555 = vst.msk [vmem:[#allocation2 + $0xa0] sm:$0xf] %vm515_vm0, %v490_v46  ;;  %v10792_v34 = vld [vmem:[%s13702_s1 + $0x68] sm:$0xff]  }
  0xb6   : > { %9541 = vmatmul.mubr.bf16.gmra.mrb[4].mxu0 %v863_v30  ;;  %9652 = vmatprep.subr.bf16.mxu1 %v10769_v44  ;;  %v499_v30 = vld [vmem:[%s11310_s12 + $0xc0] sm:$0xf]  ;;  %v505_v43 = vld [vmem:[%s11310_s12 + $0xd8] sm:$0xf]  ;;  %560 = vst.msk [vmem:[#allocation2 + $0xb4] sm:$0xf] %vm515_vm0, %v495_v58 }
  0xb7   : > { %9557 = vmatpush3.bf16.msra.mxu0 %v10768_v24  ;;  %9544 = vmatprep.mubr.bf16.mxu0 %v865_v51  ;;  %v10781_v24 = vld [vmem:[%s13702_s1 + $0xb8] sm:$0xff]   ;;  %v501_v51 = vld [vmem:[%s11310_s12 + $0xc8] sm:$0xf]  ;;  %564 = vst.msk [vmem:[#allocation2 + $0xc4] sm:$0xf] %vm515_vm0, %v499_v30  ;;  %v13723_v30 = vcombine.low %v11635_v25, %v11680_v0 }
  0xb8   : > { %9637 = vmatmul.mubr.bf16.gmra.mrb[4].mxu1 %v1618_v3  ;;  %9558 = vmatprep.subr.bf16.mxu0 %v10770_v11  ;;  %v502_v3 = vld [vmem:[%s11310_s12 + $0xcc] sm:$0xf]  ;;  %566 = vst.msk [vmem:[#allocation2 + $0xcc] sm:$0xf] %vm515_vm0, %v501_v51  ;;  %570 = vst.msk [vmem:[#allocation2 + $0xdc] sm:$0xf] %vm515_vm0, %v505_v43 }
  0xb9   : > { %9653 = vmatpush3.bf16.msra.mxu1 %v10769_v44  ;;  %9640 = vmatprep.mubr.bf16.mxu1 %v1620_v27  ;;  %v1626_v44 = vsel %vm854_vm2, %v1623_v18, %v1625_v57  ;;  %v10782_v27 = vld [vmem:[%s13702_s1 + $0x40] sm:$0xff]   ;;  %567 = vst.msk [vmem:[#allocation2 + $0xd0] sm:$0xf] %vm515_vm0, %v502_v3  ;;  %v504_v57 = vld [vmem:[%s11310_s12 + $0xd4] sm:$0xf] }
  0xba   : > { %9654 = vmatprep.subr.bf16.mxu1 %v10771_v13  ;;  %569 = vst.msk [vmem:[#allocation2 + $0xd8] sm:$0xf] %vm515_vm0, %v504_v57  ;;  %v493_v51 = vld [vmem:[%s11310_s12 + $0xa8] sm:$0xf]  ;;  %v10791_v3 = vld [vmem:[%s13702_s1 + $0x60] sm:$0xff]   ;;  %v10794_v43 = vld [vmem:[%s13702_s1 + $0x70] sm:$0xff]  }
  0xbb   : > { %9559 = vmatpush3.bf16.msra.mxu0 %v10770_v11  ;;  %v500_v11 = vld [vmem:[%s11310_s12 + $0xc4] sm:$0xf]  ;;  %558 = vst.msk [vmem:[#allocation2 + $0xac] sm:$0xf] %vm515_vm0, %v493_v51  ;;  %v509_v25 = vld [vmem:[%s11310_s12 + $0xe8] sm:$0xf] }
  0xbc   : > { %9560 = vmatprep.subr.bf16.mxu0 %v10772_v6  ;;  %565 = vst.msk [vmem:[#allocation2 + $0xc8] sm:$0xf] %vm515_vm0, %v500_v11  ;;  %v11986_v11 = vld [vmem:[#allocation2 + $0xd4] sm:$0xf]  ;;  %v494_v0 = vld [vmem:[%s11310_s12 + $0xac] sm:$0xf] }
  0xbd   : > { %9655 = vmatpush3.bf16.msra.mxu1 %v10771_v13  ;;  %v487_v13 = vld [vmem:[%s11310_s12 + $0x90] sm:$0xf]  ;;  %v12006_v20 = vld [vmem:[#allocation2 + $0x9c] sm:$0xf]  ;;  %v12008_v35 = vld [vmem:[#allocation2 + $0xa0] sm:$0xf] }
  0xbe   : > { %9545 = vmatmul.mubr.bf16.gmra.mrb[8].mxu0 %v867_v55  ;;  %9656 = vmatprep.subr.bf16.mxu1 %v10773_v23  ;;  %552 = vst.msk [vmem:[#allocation2 + $0x94] sm:$0xf] %vm515_vm0, %v487_v13  ;;  %v11916_v18 = vld [vmem:[#allocation2 + $0xc4] sm:$0xf]  ;;  %574 = vst.msk [vmem:[#allocation2 + $0xec] sm:$0xf] %vm515_vm0, %v509_v25 }
  0xbf   : > { %9561 = vmatpush3.bf16.msra.mxu0 %v10772_v6  ;;  %9548 = vmatprep.mubr.bf16.mxu0 %v869_v63  ;;  %v13717_v6 = vcombine.low %v11534_v41, %v11536_v42  ;;  %v11909_v41 = vld [vmem:[#allocation2 + $0x90] sm:$0xf]  ;;  %v488_v42 = vld [vmem:[%s11310_s12 + $0x94] sm:$0xf]  ;;  %v11927_v63 = vld [vmem:[#allocation2 + $0xcc] sm:$0xf] }
  0xc0   : > { %9641 = vmatmul.mubr.bf16.gmra.mrb[8].mxu1 %v1622_v62  ;;  %9562 = vmatprep.subr.bf16.mxu0 %v10774_v28  ;;  %553 = vst.msk [vmem:[#allocation2 + $0x98] sm:$0xf] %vm515_vm0, %v488_v42  ;;  %v11929_v62 = vld [vmem:[#allocation2 + $0xd0] sm:$0xf]  ;;  %559 = vst.msk [vmem:[#allocation2 + $0xb0] sm:$0xf] %vm515_vm0, %v494_v0 }
  0xc1   : > { %9657 = vmatpush3.bf16.msra.mxu1 %v10773_v23  ;;  %9644 = vmatprep.mubr.bf16.mxu1 %v1624_v40  ;;  %v13719_v40 = vcombine.low %v11549_v49, %v11599_v10  ;;  %v13721_v49 = vcombine.low %v11563_v54, %v11614_v17  ;;  %v10787_v10 = vld [vmem:[%s13702_s1 + $0x50] sm:$0xff]   ;;  %v506_v17 = vld [vmem:[%s11310_s12 + $0xdc] sm:$0xf]  ;;  %v11997_v13 = vld [vmem:[#allocation2 + $0xd8] sm:$0xf] }
  0xc2   : > { %9658 = vmatprep.subr.bf16.mxu1 %v10775_v48  ;;  %571 = vst.msk [vmem:[#allocation2 + $0xe0] sm:$0xf] %vm515_vm0, %v506_v17  ;;  %v1025_v57 = vld [vmem:[#allocation2 + $0x40] sm:$0xf]  ;;  %v12061_v17 = vld [vmem:[#allocation2 + $0xe8] sm:$0xf] }
  0xc3   : > { %9563 = vmatpush3.bf16.msra.mxu0 %v10774_v28  ;;  %v11918_v55 = vld [vmem:[#allocation2 + $0xc8] sm:$0xf]  ;;  %v7815_v56 = vcombine.low %v11761_v37, %v1025_v57  ;;  %v513_v37 = vld [vmem:[%s11310_s12 + $0xf8] sm:$0xf] }
  0xc4   : > { %9564 = vmatprep.subr.bf16.mxu0 %v10777_v53  ;;  %v10785_v28 = vld [vmem:[%s13702_s1 + $0x48] sm:$0xff]   ;;  %578 = vst.msk [vmem:[#allocation2 + $0xfc] sm:$0xf] %vm515_vm0, %v513_v37  ;;  %v10826_v33 = vld [vmem:[#allocation2 + $0xc0] ss:$0 sps:$4 sm:$0x77]  }
  0xc5   : > { %9659 = vmatpush3.bf16.msra.mxu1 %v10775_v48  ;;  %v11962_v54 = vld [vmem:[#allocation2 + $0x94] sm:$0xf] }
  0xc6   : > { %9549 = vmatmul.mubr.bf16.gmra.mrb[12].mxu0 %v871_v60  ;;  %9660 = vmatprep.subr.bf16.mxu1 %v10779_v12  ;;  %v491_v60 = vld [vmem:[%s11310_s12 + $0xa0] sm:$0xf]  ;;  %v12087_v25 = vcombine.low %v11909_v41, %v11962_v54 }
  0xc7   : > { %9565 = vmatpush3.bf16.msra.mxu0 %v10777_v53  ;;  %9568 = vmatprep.mubr.bf16.mxu0 %v7808_v39  ;;  %v11903_v39 = vld [vmem:[#allocation2 + $0x84] sm:$0xf]  ;;  %v10786_v53 = vld [vmem:[%s13702_s1 + $0x50] sm:$0xff]   ;;  %556 = vst.msk [vmem:[#allocation2 + $0xa4] sm:$0xf] %vm515_vm0, %v491_v60 }
  0xc8   : > { %9645 = vmatmul.mubr.bf16.gmra.mrb[12].mxu1 %v1626_v44  ;;  %9566 = vmatprep.subr.bf16.mxu0 %v10780_v61  ;;  %v11969_v19 = vld [vmem:[#allocation2 + $0x98] sm:$0xf]  ;;  %v2121_v44 = vld [vmem:[#allocation2 + $0x80] sm:$0x8] }
  0xc9   : > { %9661 = vmatpush3.bf16.msra.mxu1 %v10779_v12  ;;  %9664 = vmatprep.mubr.bf16.mxu1 %v13717_v6  ;;  %v10788_v12 = vld [vmem:[%s13702_s1 + $0x58] sm:$0xff]   ;;  %v7948_v42 = vcombine.low %v2121_v44, %v11903_v39  ;;  %v12091_v0 = vcombine.low %v11969_v19, %v12006_v20  ;;  %v2088_v6 = vld [vmem:[#allocation2 + $0x80] sm:$0xc] }
  0xca   : > { %9662 = vmatprep.subr.bf16.mxu1 %v10781_v24  ;;  %v10814_v44 = vld [vmem:[%s13702_s1 + $0x18] sm:$0xff]  }
  0xcb   : > { %9567 = vmatpush3.bf16.msra.mxu0 %v10780_v61  ;;  %v10789_v61 = vld [vmem:[%s13702_s1 + $0x58] sm:$0xff]   ;;  %v2182_v60 = vrot.slane %v7948_v42, 3 }
  0xcc   : > { %9680 = vmatprep.subr.bf16.mxu0 %v10782_v27 }
  0xcd   : > { %9663 = vmatpush3.bf16.msra.mxu1 %v10781_v24  ;;  %v2836_v24 = vld [vmem:[#allocation2 + $0xc0] sm:$0xc] }
  0xce   : > { %9569 = vmatmul.mubr.bf16.vlgmr.msra.gmra.mrb[0].mxu0 %v13718_v29  ;;  %9776 = vmatprep.subr.bf16.mxu1 %v10783_v31  ;;  %v12025_v29 = vcombine.low %v11905_v5, %v11907_v47 }
  0xcf   : > { %9681 = vmatpush3.bf16.msra.mxu0 %v10782_v27  ;;  %9572 = vmatprep.mubr.bf16.mxu0 %v13719_v40  ;;  %v13725_v27 = vcombine.low %v11652_v38, %v11691_v4  ;;  %v7814_v4 = vcombine.low %v11708_v15, %v11754_v9  ;;  %v510_v40 = vld [vmem:[%s11310_s12 + $0xec] sm:$0xf]  ;;  %v7906_v15 = vcombine.low %v11731_v50, %v11763_v26  ;;  %v12056_v50 = vld [vmem:[#allocation2 + $0xa8] sm:$0xf]  ;;  %v1780_v26 = vld [vmem:[#allocation2 + $0x80] sm:$0xf] }
  0xd0   : > { %9665 = vmatmul.mubr.bf16.vlgmr.msra.gmra.mrb[0].mxu1 %v13720_v52  ;;  %9682 = vmatprep.subr.bf16.mxu0 %v10784_v32  ;;  %v10793_v52 = vld [vmem:[%s13702_s1 + $0x68] sm:$0xff]   ;;  %575 = vst.msk [vmem:[#allocation2 + $0xf0] sm:$0xf] %vm515_vm0, %v510_v40  ;;  %v10815_v9 = vld [vmem:[%s13702_s1 + $0x18] sm:$0xff]   ;;  %v2359_v8 = vrot.slane %v12025_v29, 2 }
  0xd1   : > { %9777 = vmatpush3.bf16.msra.mxu1 %v10783_v31  ;;  %9668 = vmatprep.mubr.bf16.mxu1 %v13721_v49  ;;  %v2869_v31 = vld [vmem:[#allocation2 + $0xc0] sm:$0x8]  ;;  %v12042_v49 = vld [vmem:[#allocation2 + $0xa4] sm:$0xf] }
  0xd2   : > { %9778 = vmatprep.subr.bf16.mxu1 %v10785_v28  ;;  %v8039_v46 = vcombine.low %v2869_v31, %v11916_v18  ;;  %v7907_v31 = vcombine.low %v11765_v45, %v1780_v26  ;;  %v12115_v45 = vcombine.low %v11929_v62, %v11986_v11 }
  0xd3   : > { %9683 = vmatpush3.bf16.msra.mxu0 %v10784_v32  ;;  %v12015_v32 = vld [vmem:[#allocation2 + $0xdc] sm:$0xf] }
  0xd4   : > { %9684 = vmatprep.subr.bf16.mxu0 %v10786_v53  ;;  %v2930_v51 = vrot.slane %v8039_v46, 3  ;;  %v12123_v57 = vcombine.low %v11997_v13, %v12015_v32  ;;  %v2187_v46 = vrot.slane %v12091_v0, 3  ;;  %v2933_v26 = vrot.slane %v12115_v45, 3 }
  0xd5   : > { %9779 = vmatpush3.bf16.msra.mxu1 %v10785_v28  ;;  %v12027_v28 = vld [vmem:[#allocation2 + $0xe0] sm:$0xf] }
  0xd6   : > { %9573 = vmatmul.mubr.bf16.gmra.mrb[4].mxu0 %v13722_v22  ;;  %9780 = vmatprep.subr.bf16.mxu1 %v10787_v10  ;;  %v12068_v22 = vld [vmem:[#allocation2 + $0xac] sm:$0xf] }
  0xd7   : > { %9685 = vmatpush3.bf16.msra.mxu0 %v10786_v53  ;;  %9576 = vmatprep.mubr.bf16.mxu0 %v13723_v30  ;;  %v511_v53 = vld [vmem:[%s11310_s12 + $0xf0] sm:$0xf]  ;;  %v496_v30 = vld [vmem:[%s11310_s12 + $0xb4] sm:$0xf] }
  0xd8   : > { %9669 = vmatmul.mubr.bf16.gmra.mrb[4].mxu1 %v13724_v21  ;;  %9686 = vmatprep.subr.bf16.mxu0 %v10788_v12  ;;  %576 = vst.msk [vmem:[#allocation2 + $0xf4] sm:$0xf] %vm515_vm0, %v511_v53  ;;  %v497_v21 = vld [vmem:[%s11310_s12 + $0xb8] sm:$0xf]  ;;  %561 = vst.msk [vmem:[#allocation2 + $0xb8] sm:$0xf] %vm515_vm0, %v496_v30 }
  0xd9   : > { %9781 = vmatpush3.bf16.msra.mxu1 %v10787_v10  ;;  %9672 = vmatprep.mubr.bf16.mxu1 %v13725_v27  ;;  %v13726_v10 = vcombine.low %v11682_v1, %v11706_v14  ;;  %v2183_v1 = vrot.slane %v12025_v29, 3  ;;  %v12059_v14 = vld [vmem:[#allocation2 + $0xe4] sm:$0xf]  ;;  %v12093_v27 = vld [vmem:[#allocation2 + $0xec] sm:$0xf]  ;;  %v2935_v30 = vrot.slane %v12123_v57, 3 }
  0xda   : > { %9782 = vmatprep.subr.bf16.mxu1 %v10789_v61  ;;  %v12095_v58 = vld [vmem:[#allocation2 + $0xf0] sm:$0xf]  ;;  %562 = vst.msk [vmem:[#allocation2 + $0xbc] sm:$0xf] %vm515_vm0, %v497_v21 }
  0xdb   : > { %9687 = vmatpush3.bf16.msra.mxu0 %v10788_v12  ;;  %v12054_v12 = vcombine.low %v11918_v55, %v11927_v63  ;;  %v2184_v42 = vsel %vm677_vm1, %v2182_v60, %v2183_v1  ;;  %v12130_v60 = vld [vmem:[#allocation2 + $0xb4] sm:$0xf]  ;;  %v2936_v37 = vsel %vm677_vm1, %v2933_v26, %v2935_v30 }
  0xdc   : > { %9688 = vmatprep.subr.bf16.mxu0 %v10790_v2  ;;  %v10811_v21 = vld [vmem:[%s13702_s1 + $0x10] sm:$0xff]  }
  0xdd   : > { %9783 = vmatpush3.bf16.msra.mxu1 %v10789_v61  ;;  %v2931_v16 = vrot.slane %v12054_v12, 3 }
  0xde   : > { %9577 = vmatmul.mubr.bf16.gmra.mrb[8].mxu0 %v13726_v10  ;;  %9784 = vmatprep.subr.bf16.mxu1 %v10791_v3  ;;  %v2185_v10 = vrot.slane %v12087_v25, 3 }
  0xdf   : > { %9689 = vmatpush3.bf16.msra.mxu0 %v10790_v2  ;;  %9580 = vmatprep.mubr.bf16.mxu0 %v7814_v4  ;;  %v12070_v2 = vld [vmem:[#allocation2 + $0xb0] sm:$0xf]  ;;  %v10796_v4 = vld [vmem:[%s13702_s1 + $0x78] sm:$0xff]   ;;  %v2932_v53 = vsel %vm677_vm1, %v2930_v51, %v2931_v16  ;;  %v12142_v51 = vld [vmem:[#allocation2 + $0xf4] sm:$0xf] }
  0xe0   : > { %9673 = vmatmul.mubr.bf16.gmra.mrb[8].mxu1 %v13727_v36  ;;  %9690 = vmatprep.subr.bf16.mxu0 %v10792_v34  ;;  %v12132_v36 = vld [vmem:[#allocation2 + $0xb8] sm:$0xf]  ;;  %v12186_v7 = vcombine.low %v12070_v2, %v12130_v60 }
  0xe1   : > { %9785 = vmatpush3.bf16.msra.mxu1 %v10791_v3  ;;  %9676 = vmatprep.mubr.bf16.mxu1 %v7906_v15  ;;  %v512_v3 = vld [vmem:[%s11310_s12 + $0xf4] sm:$0xf]  ;;  %v10804_v15 = vld [vmem:[%s13702_s1] sm:$0xff]  }
  0xe2   : > { %9786 = vmatprep.subr.bf16.mxu1 %v10793_v52  ;;  %577 = vst.msk [vmem:[#allocation2 + $0xf8] sm:$0xf] %vm515_vm0, %v512_v3  ;;  %v2186_v3 = vsel %vm677_vm1, %v2183_v1, %v2185_v10  ;;  %v12167_v1 = vcombine.low %v12061_v17, %v12093_v27 }
  0xe3   : > { %9691 = vmatpush3.bf16.msra.mxu0 %v10792_v34  ;;  %v10797_v34 = vld [vmem:[%s13702_s1 + $0x78] sm:$0xff]  }
  0xe4   : > { %9692 = vmatprep.subr.bf16.mxu0 %v10794_v43 }
  0xe5   : > { %9787 = vmatpush3.bf16.msra.mxu1 %v10793_v52  ;;  %v514_v52 = vld [vmem:[%s11310_s12 + $0xfc] sm:$0xf]  ;;  %s13641_s12 = scalar_lea.hbm %s13708_s7, %s8550_s28 }
  0xe6   : > { %9581 = vmatmul.mubr.bf16.gmra.mrb[12].mxu0 %v7815_v56  ;;  %9788 = vmatprep.subr.bf16.mxu1 %v10795_v59  ;;  %579 = vst.msk [vmem:[#allocation2 + $0x100] sm:$0xf] %vm515_vm0, %v514_v52  ;;  %v12140_v56 = vcombine.low %v12008_v35, %v12042_v49  ;;  %v2934_v52 = vsel %vm677_vm1, %v2931_v16, %v2933_v26  ;;  %v2939_v26 = vrot.slane %v12167_v1, 3 }
  0xe7   : > { %9693 = vmatpush3.bf16.msra.mxu0 %v10794_v43  ;;  %9696 = vmatprep.mubr.bf16.mxu0 %v2184_v42  ;;  %v10805_v43 = vld [vmem:[%s13702_s1] sm:$0xff]   ;;  %v2188_v42 = vsel %vm677_vm1, %v2185_v10, %v2187_v46  ;;  %v10807_v10 = vld [vmem:[%s13702_s1 + $0x8] sm:$0xff]  }
  0xe8   : > { %9677 = vmatmul.mubr.bf16.gmra.mrb[12].mxu1 %v7907_v31  ;;  %9694 = vmatprep.subr.bf16.mxu0 %v10796_v4  ;;  %v10806_v31 = vld [vmem:[%s13702_s1 + $0x8] sm:$0xff]   ;;  %v2189_v40 = vrot.slane %v12140_v56, 3 }
  0xe9   : > { %9789 = vmatpush3.bf16.msra.mxu1 %v10795_v59  ;;  %9792 = vmatprep.mubr.bf16.mxu1 %v2932_v53  ;;  %v12144_v59 = vld [vmem:[#allocation2 + $0xf8] sm:$0xf]  ;;  %v12159_v53 = vcombine.low %v12027_v28, %v12059_v14 }
  0xea   : > { %9790 = vmatprep.subr.bf16.mxu1 %v10797_v34 }
  0xeb   : > { %9695 = vmatpush3.bf16.msra.mxu0 %v10796_v4  ;;  %v12163_v4 = vcombine.low %v12056_v50, %v12068_v22  ;;  %v2937_v16 = vrot.slane %v12159_v53, 3 }
  0xec   : > { %9712 = vmatprep.subr.bf16.mxu0 %v10804_v15 }
  0xed   : > { %9791 = vmatpush3.bf16.msra.mxu1 %v10797_v34  ;;  %v10813_v34 = vld [vmem:[%s13702_s1 + $0x10] sm:$0xff]   ;;  %v10828_v48 = vld [vmem:[#allocation2 + $0x100] ss:$0 sps:$4 sm:$0x77]  }
  0xee   : > { %9697 = vmatmul.mubr.bf16.vlgmr.msra.gmra.mrb[16].mxu0 %v2186_v3  ;;  %9808 = vmatprep.subr.bf16.mxu1 %v10805_v43  ;;  %v2191_v3 = vrot.slane %v12163_v4, 3 }
  0xef   : > { %9713 = vmatpush3.bf16.msra.mxu0 %v10804_v15  ;;  %9700 = vmatprep.mubr.bf16.mxu0 %v2188_v42  ;;  %v12188_v15 = vld [vmem:[#allocation2 + $0xbc] sm:$0xf] }
  0xf0   : > { %9793 = vmatmul.mubr.bf16.vlgmr.msra.gmra.mrb[16].mxu1 %v2934_v52  ;;  %9714 = vmatprep.subr.bf16.mxu0 %v10806_v31  ;;  %13728 = vst [vmem:[#allocation9_spill] sm:$0xff] %v12188_v15  ;;  %v12190_v42 = vld [vmem:[#allocation2 + $0xfc] sm:$0xf]  ;;  %v2190_v52 = vsel %vm677_vm1, %v2187_v46, %v2189_v40  ;;  %v12203_v61 = vcombine.low %v12132_v36, %v12188_v15  ;;  %v2197_v15 = vrot.slane %v10826_v33, 3  ;;  %v2945_v33 = vrot.slane %v10828_v48, 3 }
  0xf1   : > { %9809 = vmatpush3.bf16.msra.mxu1 %v10805_v43  ;;  %9796 = vmatprep.mubr.bf16.mxu1 %v2936_v37  ;;  %13729 = vst [vmem:[#allocation10_spill] sm:$0xff] %v12190_v42  ;;  %v2192_v43 = vsel %vm677_vm1, %v2189_v40, %v2191_v3  ;;  %v2193_v37 = vrot.slane %v12186_v7, 3  ;;  %v2938_v46 = vsel %vm677_vm1, %v2935_v30, %v2937_v16  ;;  %v10819_v30 = vld [vmem:[%s13702_s1 + $0x20] sm:$0xff]   ;;  %v2365_v48 = vrot.slane %v12140_v56, 2  ;;  %v10831_v56 = vld [vmem:[%s13702_s1 + $0x38] sm:$0xff]  }
  0xf2   : > { %9810 = vmatprep.subr.bf16.mxu1 %v10807_v10  ;;  %v12212_v38 = vcombine.low %v12144_v59, %v12190_v42  ;;  %v2940_v40 = vsel %vm677_vm1, %v2937_v16, %v2939_v26  ;;  %v10821_v16 = vld [vmem:[%s13702_s1 + $0x20] sm:$0xff]  }
  0xf3   : > { %9715 = vmatpush3.bf16.msra.mxu0 %v10806_v31  ;;  %v12208_v31 = vcombine.low %v12095_v58, %v12142_v51 }
  0xf4   : > { %9716 = vmatprep.subr.bf16.mxu0 %v10811_v21 }
  0xf5   : > { %9811 = vmatpush3.bf16.msra.mxu1 %v10807_v10  ;;  %v2195_v10 = vrot.slane %v12203_v61, 3  ;;  %v2941_v23 = vrot.slane %v12208_v31, 3 }
  0xf6   : > { %9701 = vmatmul.mubr.bf16.gmra.mrb[20].mxu0 %v2190_v52  ;;  %9812 = vmatprep.subr.bf16.mxu1 %v10813_v34  ;;  %v7965_v52 = vcombine.low %v2088_v6, %v11903_v39  ;;  %v3107_v6 = vrot.slane %v12054_v12, 2  ;;  %v3109_v12 = vrot.slane %v12115_v45, 2  ;;  %v10830_v45 = vld [vmem:[%s13702_s1 + $0x38] sm:$0xff]  }
  0xf7   : > { %9717 = vmatpush3.bf16.msra.mxu0 %v10811_v21  ;;  %9704 = vmatprep.mubr.bf16.mxu0 %v2192_v43  ;;  %v2943_v21 = vrot.slane %v12212_v38, 3  ;;  %v8056_v43 = vcombine.low %v2836_v24, %v11916_v18  ;;  %v2942_v42 = vsel %vm677_vm1, %v2939_v26, %v2941_v23  ;;  %v10823_v24 = vld [vmem:[%s13702_s1 + $0x28] sm:$0xff]   ;;  %v12243_v26 = vld [vmem:[#allocation2 + $0xc0] ss:$0 sps:$4 sm:$0x33]  }
  0xf8   : > { %9797 = vmatmul.mubr.bf16.gmra.mrb[20].mxu1 %v2938_v46  ;;  %9718 = vmatprep.subr.bf16.mxu0 %v10814_v44  ;;  %v2194_v46 = vsel %vm677_vm1, %v2191_v3, %v2193_v37  ;;  %v10827_v3 = vld [vmem:[%s13702_s1 + $0x30] sm:$0xff]  }
  0xf9   : > { %9813 = vmatpush3.bf16.msra.mxu1 %v10813_v34  ;;  %9800 = vmatprep.mubr.bf16.mxu1 %v2940_v40  ;;  %v10822_v34 = vld [vmem:[%s13702_s1 + $0x28] sm:$0xff]   ;;  %v2196_v40 = vsel %vm677_vm1, %v2193_v37, %v2195_v10  ;;  %v2358_v37 = vrot.slane %v7965_v52, 2  ;;  %v3106_v29 = vrot.slane %v8056_v43, 2  ;;  %v2363_v52 = vrot.slane %v12091_v0, 2 }
  0xfa   : > { %9814 = vmatprep.subr.bf16.mxu1 %v10815_v9  ;;  %v3111_v43 = vrot.slane %v12123_v57, 2  ;;  %v2198_v0 = vsel %vm677_vm1, %v2195_v10, %v2197_v15  ;;  %v2373_v15 = vrot.slane %v12243_v26, 2  ;;  %v10832_v57 = vld [vmem:[%s13702_s1 + $0x80] sm:$0xff]   ;;  %v13734_v26 = vcombine.low %v11903_v39, %v11905_v5  ;;  %v10856_v39 = vld [vmem:[%s13704_s3 + $0x48] sm:$0xff]  }
  0xfb   : > { %9719 = vmatpush3.bf16.msra.mxu0 %v10814_v44  ;;  %v2944_v44 = vsel %vm677_vm1, %v2941_v23, %v2943_v21  ;;  %v10829_v23 = vld [vmem:[%s13702_s1 + $0x30] sm:$0xff]   ;;  %v13736_v5 = vcombine.low %v11907_v47, %v11909_v41  ;;  %v13739_v41 = vcombine.low %v11986_v11, %v11997_v13  ;;  %v13741_v11 = vcombine.low %v12042_v49, %v12056_v50  ;;  %v10855_v49 = vld [vmem:[%s13706_s5 + $0x20] sm:$0xff]   ;;  %v10857_v50 = vld [vmem:[%s13706_s5 + $0x28] sm:$0xff]  }
  0xfc   : > { %9720 = vmatprep.subr.bf16.mxu0 %v10819_v30  ;;  %v10858_v47 = vld [vmem:[%s13704_s3 + $0x50] sm:$0xff]   ;;  %v13742_v13 = vcombine.low %v12015_v32, %v12027_v28  ;;  %v10866_v32 = vld [vmem:[%s13704_s3 + $0x68] sm:$0xff]   ;;  %v13744_v28 = vcombine.low %v12068_v22, %v12070_v2  ;;  %v13747_v2 = vcombine.low %v12142_v51, %v12144_v59  ;;  %v10861_v51 = vld [vmem:[%s13706_s5 + $0x38] sm:$0xff]  }
  0xfd   : > { %9815 = vmatpush3.bf16.msra.mxu1 %v10815_v9  ;;  %v2361_v9 = vrot.slane %v12087_v25, 2  ;;  %v3113_v25 = vrot.slane %v12159_v53, 2  ;;  %v2360_v53 = vsel %vm854_vm2, %v2358_v37, %v2359_v8  ;;  %v10868_v22 = vld [vmem:[%s13704_s3 + $0x70] sm:$0xff]   ;;  %v10865_v59 = vld [vmem:[%s13704_s3 + $0x40] sm:$0xff]  }
  0xfe   : > { %9705 = vmatmul.mubr.bf16.gmra.mrb[24].mxu0 %v2194_v46  ;;  %9816 = vmatprep.subr.bf16.mxu1 %v10821_v16  ;;  %v12245_v46 = vld [vmem:[#allocation2 + $0x100] ss:$0 sps:$4 sm:$0x33]  }
  0xff   : > { %9721 = vmatpush3.bf16.msra.mxu0 %v10819_v30  ;;  %9708 = vmatprep.mubr.bf16.mxu0 %v2196_v40  ;;  %v3115_v30 = vrot.slane %v12167_v1, 2  ;;  %v2371_v40 = vrot.slane %v12203_v61, 2  ;;  %v3121_v10 = vrot.slane %v12245_v46, 2  ;;  %v2362_v37 = vsel %vm854_vm2, %v2359_v8, %v2361_v9  ;;  %v10837_v8 = vld [vmem:[%s13702_s1 + $0x90] sm:$0xff]   ;;  %v10849_v61 = vld [vmem:[%s13702_s1 + $0xb8] sm:$0xff]   ;;  %v10854_v46 = vld [vmem:[%s13704_s3 + $0x40] sm:$0xff]  }
 0x100   : > { %9801 = vmatmul.mubr.bf16.gmra.mrb[24].mxu1 %v2942_v42  ;;  %9722 = vmatprep.subr.bf16.mxu0 %v10822_v34  ;;  %v2367_v42 = vrot.slane %v12163_v4, 2  ;;  %v10847_v1 = vld [vmem:[%s13702_s1 + $0xb0] sm:$0xff]  }
 0x101   : > { %9817 = vmatpush3.bf16.msra.mxu1 %v10821_v16  ;;  %9804 = vmatprep.mubr.bf16.mxu1 %v2944_v44  ;;  %v3119_v44 = vrot.slane %v12212_v38, 2  ;;  %v3108_v16 = vsel %vm854_vm2, %v3106_v29, %v3107_v6  ;;  %v2364_v29 = vsel %vm854_vm2, %v2361_v9, %v2363_v52  ;;  %v2366_v9 = vsel %vm854_vm2, %v2363_v52, %v2365_v48  ;;  %v10840_v52 = vld [vmem:[%s13702_s1 + $0xa0] sm:$0xff]  }
 0x102   : > { %9818 = vmatprep.subr.bf16.mxu1 %v10823_v24  ;;  %v13735_v38 = vcombine.low %v11916_v18, %v11918_v55  ;;  %v10851_v18 = vld [vmem:[%s13706_s5 + $0x8] sm:$0xff]   ;;  %v13737_v55 = vcombine.low %v11962_v54, %v11969_v19  ;;  %v10852_v54 = vld [vmem:[%s13706_s5 + $0x10] sm:$0xff]   ;;  %v10853_v19 = vld [vmem:[%s13706_s5 + $0x18] sm:$0xff]  }
 0x103   : > { %9723 = vmatpush3.bf16.msra.mxu0 %v10822_v34  ;;  %v2946_v34 = vsel %vm677_vm1, %v2943_v21, %v2945_v33  ;;  %v10833_v21 = vld [vmem:[%s13702_s1 + $0x80] sm:$0xff]   ;;  %v3110_v33 = vsel %vm854_vm2, %v3107_v6, %v3109_v12  ;;  %v10838_v6 = vld [vmem:[%s13702_s1 + $0x98] sm:$0xff]  }
 0x104   : > { %9724 = vmatprep.subr.bf16.mxu0 %v10827_v3 }
 0x105   : > { %9819 = vmatpush3.bf16.msra.mxu1 %v10823_v24  ;;  %v10834_v24 = vld [vmem:[%s13702_s1 + $0x88] sm:$0xff]  }
 0x106   : > { %9709 = vmatmul.mubr.bf16.gmra.mrb[28].mxu0 %v2198_v0  ;;  %9820 = vmatprep.subr.bf16.mxu1 %v10829_v23  ;;  %v2368_v0 = vsel %vm854_vm2, %v2365_v48, %v2367_v42  ;;  %v10841_v48 = vld [vmem:[%s13702_s1 + $0xa0] sm:$0xff]  }
 0x107   : > { %9725 = vmatpush3.bf16.msra.mxu0 %v10827_v3  ;;  %9728 = vmatprep.mubr.bf16.mxu0 %v2360_v53  ;;  %v10835_v3 = vld [vmem:[%s13702_s1 + $0x88] sm:$0xff]  }
 0x108   : > { %9805 = vmatmul.mubr.bf16.gmra.mrb[28].mxu1 %v2946_v34  ;;  %9726 = vmatprep.subr.bf16.mxu0 %v10830_v45  ;;  %v10843_v53 = vld [vmem:[%s13702_s1 + $0xa8] sm:$0xff]  }
 0x109   : > { %9821 = vmatpush3.bf16.msra.mxu1 %v10829_v23  ;;  %9824 = vmatprep.mubr.bf16.mxu1 %v3108_v16  ;;  %v3112_v23 = vsel %vm854_vm2, %v3109_v12, %v3111_v43  ;;  %v10839_v12 = vld [vmem:[%s13702_s1 + $0x98] sm:$0xff]   ;;  %v3116_v16 = vsel %vm854_vm2, %v3113_v25, %v3115_v30 }
 0x10a   : > { %9822 = vmatprep.subr.bf16.mxu1 %v10831_v56 }
 0x10b   : > { %9727 = vmatpush3.bf16.msra.mxu0 %v10830_v45  ;;  %v10836_v45 = vld [vmem:[%s13702_s1 + $0x90] sm:$0xff]  }
 0x10c   : > { %9744 = vmatprep.subr.bf16.mxu0 %v10832_v57 }
 0x10d   : > { %9823 = vmatpush3.bf16.msra.mxu1 %v10831_v56 }
 0x10e   : > { %9729 = vmatmul.mubr.bf16.vlgmr.msra.gmra.mrb[16].mxu0 %v2362_v37  ;;  %9840 = vmatprep.subr.bf16.mxu1 %v10833_v21 }
 0x10f   : > { %9745 = vmatpush3.bf16.msra.mxu0 %v10832_v57  ;;  %9732 = vmatprep.mubr.bf16.mxu0 %v2364_v29  ;;  %v3114_v57 = vsel %vm854_vm2, %v3111_v43, %v3113_v25  ;;  %v10842_v43 = vld [vmem:[%s13702_s1 + $0xa8] sm:$0xff]   ;;  %v13730_v25 = vrot.slane %v12186_v7, 2  ;;  %v10845_v7 = vld [vmem:[%s13702_s1 + $0xb0] sm:$0xff]  }
 0x110   : > { %9825 = vmatmul.mubr.bf16.vlgmr.msra.gmra.mrb[16].mxu1 %v3110_v33  ;;  %9746 = vmatprep.subr.bf16.mxu0 %v10834_v24  ;;  %v13748_v29 = vld [vmem:[#allocation9_spill] sm:$0xff] }
 0x111   : > { %9841 = vmatpush3.bf16.msra.mxu1 %v10833_v21  ;;  %9828 = vmatprep.mubr.bf16.mxu1 %v3112_v23  ;;  %v2370_v56 = vsel %vm854_vm2, %v2367_v42, %v13730_v25  ;;  %v13731_v34 = vmov %v13730_v25  ;;  %v10875_v23 = vld [vmem:[%s13704_s3 + $0x78] sm:$0xff]  }
 0x112   : > { %9842 = vmatprep.subr.bf16.mxu1 %v10835_v3  ;;  %v2372_v21 = vsel %vm854_vm2, %v13731_v34, %v2371_v40  ;;  %v10887_v25 = vld [vmem:[#allocation2 + $0x34] sm:$0xff]  }
 0x113   : > { %9747 = vmatpush3.bf16.msra.mxu0 %v10834_v24  ;;  %v13732_v24 = vrot.slane %v12208_v31, 2  ;;  %v2374_v31 = vsel %vm854_vm2, %v2371_v40, %v2373_v15  ;;  %v10850_v40 = vld [vmem:[%s13706_s5] sm:$0xff]   ;;  %v13746_v15 = vcombine.low %v12093_v27, %v12095_v58  ;;  %v13749_v58 = vld [vmem:[#allocation10_spill] sm:$0xff]  ;;  %v10892_v34 = vld [vmem:[%s13704_s3 + $0x78] sm:$0xff]  }
 0x114   : > { %9748 = vmatprep.subr.bf16.mxu0 %v10836_v45  ;;  %v10863_v27 = vld [vmem:[#allocation2 + $0x4] sm:$0xff]  }
 0x115   : > { %9843 = vmatpush3.bf16.msra.mxu1 %v10835_v3  ;;  %v3118_v4 = vsel %vm854_vm2, %v3115_v30, %v13732_v24  ;;  %v13733_v42 = vmov %v13732_v24  ;;  %v10848_v30 = vld [vmem:[%s13702_s1 + $0xb8] sm:$0xff]   ;;  %v3122_v3 = vsel %vm854_vm2, %v3119_v44, %v3121_v10  ;;  %v3276_v10 = vld [vmem:[#allocation2 + $0x100] sm:$0xf] }
 0x116   : > { %9733 = vmatmul.mubr.bf16.gmra.mrb[20].mxu0 %v2366_v9  ;;  %9844 = vmatprep.subr.bf16.mxu1 %v10837_v8  ;;  %v3120_v37 = vsel %vm854_vm2, %v13733_v42, %v3119_v44  ;;  %v13738_v44 = vcombine.low %v11927_v63, %v11929_v62  ;;  %v10860_v63 = vld [vmem:[%s13704_s3 + $0x58] sm:$0xff]   ;;  %v13740_v62 = vcombine.low %v12006_v20, %v12008_v35  ;;  %v10862_v20 = vld [vmem:[%s13704_s3 + $0x60] sm:$0xff]   ;;  %v10867_v9 = vld [vmem:[%s13704_s3 + $0x48] sm:$0xff]  }
 0x117   : > { %9749 = vmatpush3.bf16.msra.mxu0 %v10836_v45  ;;  %9736 = vmatprep.mubr.bf16.mxu0 %v2368_v0  ;;  %v13743_v35 = vcombine.low %v12059_v14, %v12061_v17  ;;  %v13745_v14 = vcombine.low %v12130_v60, %v12132_v36  ;;  %v2528_v17 = vld [vmem:[#allocation2 + $0xc0] sm:$0xf]  ;;  %v10859_v36 = vld [vmem:[%s13706_s5 + $0x30] sm:$0xff]   ;;  %v8089_v33 = vcombine.low %v13749_v58, %v3276_v10 }
 0x118   : > { %9829 = vmatmul.mubr.bf16.gmra.mrb[20].mxu1 %v3114_v57  ;;  %9750 = vmatprep.subr.bf16.mxu0 %v10838_v6  ;;  %v7998_v60 = vcombine.low %v13748_v29, %v2528_v17  ;;  %v12460_v45 = vld [vmem:[%s13704_s3] sm:$0xff]   ;;  %v10874_v0 = vld [vmem:[%s13704_s3 + $0x50] sm:$0xff]   ;;  %v10876_v57 = vld [vmem:[%s13704_s3 + $0x58] sm:$0xff]  }
 0x119   : > { %9845 = vmatpush3.bf16.msra.mxu1 %v10837_v8  ;;  %9832 = vmatprep.mubr.bf16.mxu1 %v3116_v16  ;;  %v10864_v8 = vld [vmem:[#allocation2 + $0xc] sm:$0xff]   ;;  %v10879_v16 = vld [vmem:[#allocation2 + $0x24] sm:$0xff]   ;;  %v12493_v24 = vld [vmem:[%s13703_s2] ss:$0 sm:$0xff] }
 0x11a   : > { %9846 = vmatprep.subr.bf16.mxu1 %v10839_v12 }
 0x11b   : > { %9751 = vmatpush3.bf16.msra.mxu0 %v10838_v6  ;;  %v10869_v6 = vld [vmem:[#allocation2 + $0x14] sm:$0xff]  }
 0x11c   : > { %9752 = vmatprep.subr.bf16.mxu0 %v10840_v52 }
 0x11d   : > { %9847 = vmatpush3.bf16.msra.mxu1 %v10839_v12  ;;  %v10873_v12 = vld [vmem:[#allocation2 + $0x1c] sm:$0xff]  }
 0x11e   : > { %9737 = vmatmul.mubr.bf16.gmra.mrb[24].mxu0 %v2370_v56  ;;  %9848 = vmatprep.subr.bf16.mxu1 %v10841_v48  ;;  %v10889_v56 = vld [vmem:[#allocation2 + $0x3c] sm:$0xff]  }
 0x11f   : > { %9753 = vmatpush3.bf16.msra.mxu0 %v10840_v52  ;;  %9740 = vmatprep.mubr.bf16.mxu0 %v2372_v21  ;;  %v10881_v52 = vld [vmem:[#allocation2 + $0x2c] sm:$0xff]   ;;  %v12487_v21 = vld [vmem:[%s13704_s3] sm:$0xff]  }
 0x120   : > { %9833 = vmatmul.mubr.bf16.gmra.mrb[24].mxu1 %v3118_v4  ;;  %9754 = vmatprep.subr.bf16.mxu0 %v10842_v43 }
 0x121   : > { %9849 = vmatpush3.bf16.msra.mxu1 %v10841_v48  ;;  %9836 = vmatprep.mubr.bf16.mxu1 %v3120_v37  ;;  %v10882_v48 = vld [vmem:[%s13704_s3 + $0x60] sm:$0xff]  }
 0x122   : > { %9850 = vmatprep.subr.bf16.mxu1 %v10843_v53 }
 0x123   : > { %9755 = vmatpush3.bf16.msra.mxu0 %v10842_v43  ;;  %v10884_v43 = vld [vmem:[%s13704_s3 + $0x68] sm:$0xff]  }
 0x124   : > { %9756 = vmatprep.subr.bf16.mxu0 %v10845_v7 }
 0x125   : > { %9851 = vmatpush3.bf16.msra.mxu1 %v10843_v53  ;;  %v10890_v53 = vld [vmem:[%s13704_s3 + $0x70] sm:$0xff]  }
 0x126   : > { %9741 = vmatmul.mubr.bf16.gmra.mrb[28].mxu0 %v2374_v31  ;;  %9852 = vmatprep.subr.bf16.mxu1 %v10847_v1 }
 0x127   : > { %9757 = vmatpush3.bf16.msra.mxu0 %v10845_v7  ;;  %9760 = vmatprep.mubr.bf16.mxu0 %v13734_v26 }
 0x128   : > { %9837 = vmatmul.mubr.bf16.gmra.mrb[28].mxu1 %v3122_v3  ;;  %9758 = vmatprep.subr.bf16.mxu0 %v10848_v30 }
 0x129   : > { %9853 = vmatpush3.bf16.msra.mxu1 %v10847_v1  ;;  %9856 = vmatprep.mubr.bf16.mxu1 %v13735_v38 }
 0x12a   : > { %9854 = vmatprep.subr.bf16.mxu1 %v10849_v61 }
 0x12b   : > { %9759 = vmatpush3.bf16.msra.mxu0 %v10848_v30 }
 0x12c   : > { %9872 = vmatprep.subr.bf16.mxu0 %v10854_v46 }
 0x12d   : > { %9855 = vmatpush3.bf16.msra.mxu1 %v10849_v61 }
 0x12e   : > { %9761 = vmatmul.mubr.bf16.vlgmr.msra.gmra.mrb[16].mxu0 %v13736_v5  ;;  %9968 = vmatprep.subr.bf16.mxu1 %v10850_v40 }
 0x12f   : > { %9764 = vmatprep.mubr.bf16.mxu0 %v13737_v55  ;;  %9873 = vmatpush3.bf16.msra.mxu0 %v10854_v46 }
 0x130   : > { %9857 = vmatmul.mubr.bf16.vlgmr.msra.gmra.mrb[16].mxu1 %v13738_v44  ;;  %9874 = vmatprep.subr.bf16.mxu0 %v10856_v39 }
 0x131   : > { %9860 = vmatprep.mubr.bf16.mxu1 %v13739_v41  ;;  %9969 = vmatpush3.bf16.msra.mxu1 %v10850_v40 }
 0x132   : > { %9970 = vmatprep.subr.bf16.mxu1 %v10851_v18 }
 0x133   : > { %9875 = vmatpush3.bf16.msra.mxu0 %v10856_v39 }
 0x134   : > { %9876 = vmatprep.subr.bf16.mxu0 %v10858_v47 }
 0x135   : > { %9971 = vmatpush3.bf16.msra.mxu1 %v10851_v18 }
 0x136   : > { %9765 = vmatmul.mubr.bf16.gmra.mrb[20].mxu0 %v13740_v62  ;;  %9972 = vmatprep.subr.bf16.mxu1 %v10852_v54 }
 0x137   : > { %9768 = vmatprep.mubr.bf16.mxu0 %v13741_v11  ;;  %9877 = vmatpush3.bf16.msra.mxu0 %v10858_v47 }
 0x138   : > { %9861 = vmatmul.mubr.bf16.gmra.mrb[20].mxu1 %v13742_v13  ;;  %9878 = vmatprep.subr.bf16.mxu0 %v10860_v63 }
 0x139   : > { %9864 = vmatprep.mubr.bf16.mxu1 %v13743_v35  ;;  %9973 = vmatpush3.bf16.msra.mxu1 %v10852_v54 }
 0x13a   : > { %9974 = vmatprep.subr.bf16.mxu1 %v10853_v19 }
 0x13b   : > { %9879 = vmatpush3.bf16.msra.mxu0 %v10860_v63 }
 0x13c   : > { %9880 = vmatprep.subr.bf16.mxu0 %v10862_v20 }
 0x13d   : > { %9975 = vmatpush3.bf16.msra.mxu1 %v10853_v19 }
 0x13e   : > { %9769 = vmatmul.mubr.bf16.gmra.mrb[24].mxu0 %v13744_v28  ;;  %9976 = vmatprep.subr.bf16.mxu1 %v10855_v49 }
 0x13f   : > { %9772 = vmatprep.mubr.bf16.mxu0 %v13745_v14  ;;  %9881 = vmatpush3.bf16.msra.mxu0 %v10862_v20 }
 0x140   : > { %9865 = vmatmul.mubr.bf16.gmra.mrb[24].mxu1 %v13746_v15  ;;  %9882 = vmatprep.subr.bf16.mxu0 %v10866_v32 }
 0x141   : > { %9868 = vmatprep.mubr.bf16.mxu1 %v13747_v2  ;;  %9977 = vmatpush3.bf16.msra.mxu1 %v10855_v49 }
 0x142   : > { %9978 = vmatprep.subr.bf16.mxu1 %v10857_v50 }
 0x143   : > { %9883 = vmatpush3.bf16.msra.mxu0 %v10866_v32 }
 0x144   : > { %9884 = vmatprep.subr.bf16.mxu0 %v10868_v22 }
 0x145   : > { %9979 = vmatpush3.bf16.msra.mxu1 %v10857_v50 }
 0x146   : > { %9773 = vmatmul.mubr.bf16.gmra.mrb[28].mxu0 %v7998_v60  ;;  %9980 = vmatprep.subr.bf16.mxu1 %v10859_v36 }
 0x147   : > { %9885 = vmatpush3.bf16.msra.mxu0 %v10868_v22 }
 0x148   : > { %9869 = vmatmul.mubr.bf16.gmra.mrb[28].mxu1 %v8089_v33  ;;  %9886 = vmatprep.subr.bf16.mxu0 %v10875_v23 }
 0x149   : > { %9981 = vmatpush3.bf16.msra.mxu1 %v10859_v36  ;;  %9984 = vmatprep.mubr.bf16.mxu1 %v10863_v27 }
 0x14a   : > { %9982 = vmatprep.subr.bf16.mxu1 %v10861_v51 }
 0x14b   : > { %9887 = vmatpush3.bf16.msra.mxu0 %v10875_v23 }
 0x14c   : > { %9904 = vmatprep.subr.bf16.mxu0 %v12460_v45 }
 0x14d   : > { %9983 = vmatpush3.bf16.msra.mxu1 %v10861_v51 }
 0x14e   : > { %10000 = vmatprep.subr.bf16.mxu1 %v10865_v59 }
 0x150   : > { %9985 = vmatmul.mubr.bf16.vlgmr.msra.gmra.mrb[32].mxu1 %v10864_v8  ;;  %v3617_v8 = vld [vmem:[#allocation3] sm:$0x8] }
 0x151   : > { %10001 = vmatpush3.bf16.msra.mxu1 %v10865_v59  ;;  %9988 = vmatprep.mubr.bf16.mxu1 %v10869_v6 }
 0x152   : > { %10002 = vmatprep.subr.bf16.mxu1 %v10867_v9 }
 0x155   : > { %10003 = vmatpush3.bf16.msra.mxu1 %v10867_v9 }
 0x156   : > { %10004 = vmatprep.subr.bf16.mxu1 %v10874_v0 }
 0x158   : > { %9989 = vmatmul.mubr.bf16.gmra.mrb[36].mxu1 %v10873_v12 }
 0x159   : > { %10005 = vmatpush3.bf16.msra.mxu1 %v10874_v0  ;;  %9992 = vmatprep.mubr.bf16.mxu1 %v10879_v16 }
 0x15a   : > { %10006 = vmatprep.subr.bf16.mxu1 %v10876_v57 }
 0x15d   : > { %10007 = vmatpush3.bf16.msra.mxu1 %v10876_v57 }
 0x15e   : > { %10008 = vmatprep.subr.bf16.mxu1 %v10882_v48 }
 0x160   : > { %9993 = vmatmul.mubr.bf16.gmra.mrb[40].mxu1 %v10881_v52 }
 0x161   : > { %10009 = vmatpush3.bf16.msra.mxu1 %v10882_v48  ;;  %9996 = vmatprep.mubr.bf16.mxu1 %v10887_v25 }
 0x162   : > { %10010 = vmatprep.subr.bf16.mxu1 %v10884_v43 }
 0x165   : > { %10011 = vmatpush3.bf16.msra.mxu1 %v10884_v43 }
 0x166   : > { %10012 = vmatprep.subr.bf16.mxu1 %v10890_v53 }
 0x168   : > { %9997 = vmatmul.mubr.bf16.gmra.mrb[44].mxu1 %v10889_v56 }
 0x169   : > { %10013 = vmatpush3.bf16.msra.mxu1 %v10890_v53 }
 0x16a   : > { %10014 = vmatprep.subr.bf16.mxu1 %v10892_v34 }
 0x16d   : > { %10015 = vmatpush3.bf16.msra.mxu1 %v10892_v34 }
 0x16e   : > { %10032 = vmatprep.subr.bf16.mxu1 %v12487_v21 }
 0x1a1   : > { %v9570_v4 = vpop.f32.mrb[0].mxu0 }
 0x1a2   : > { %v1230_v42 = vadd.f32 %v9570_v4, %v12493_v24  ;;  %v1143_v37 = vpop.f32.mrb[1].mxu0 }
 0x1a3   : > { %v9666_v7 = vpop.f32.mrb[0].mxu1  ;;  %v1228_v1 = vadd.f32 %v12493_v24, %v1143_v37  ;;  %v9571_v31 = vpop.f32.mrb[2].mxu0 }
 0x1a4   : > { %v1897_v30 = vpop.f32.mrb[1].mxu1  ;;  %v1146_v3 = vpop.f32.mrb[3].mxu0  ;;  %v1978_v61 = vadd.f32 %v9666_v7, %v12493_v24  ;;  %v1246_v39 = vmax.f32 %v1230_v42, 0.0  ;;  %v1231_v41 = vadd.f32 %v9571_v31, %v12493_v24 }
 0x1a5   : > { %v1244_v26 = vmax.f32 %v1228_v1, 0.0  ;;  %v1976_v46 = vadd.f32 %v12493_v24, %v1897_v30  ;;  %v9667_v38 = vpop.f32.mrb[2].mxu1  ;;  %v1229_v40 = vadd.f32 %v12493_v24, %v1146_v3 }
 0x1a6   : > { %v1900_v5 = vpop.f32.mrb[3].mxu1  ;;  %v1994_v54 = vmax.f32 %v1978_v61, 0.0  ;;  %v1979_v13 = vadd.f32 %v9667_v38, %v12493_v24  ;;  %v1247_v14 = vmax.f32 %v1231_v41, 0.0 }
 0x1a7   : > { %v8553_v18 = vpack.c.bf16 %v1244_v26, %v1244_v26  ;;  %v1992_v55 = vmax.f32 %v1976_v46, 0.0  ;;  %v1245_v44 = vmax.f32 %v1229_v40, 0.0  ;;  %v1977_v47 = vadd.f32 %v12493_v24, %v1900_v5 }
 0x1a8   : > { %v1995_v36 = vmax.f32 %v1979_v13, 0.0 }
 0x1a9   : > { %1324 = vst [vmem:[#allocation3 + $0x4] sm:$0xf] %v8553_v18  ;;  %v8569_v63 = vpack.c.bf16 %v1992_v55, %v1992_v55  ;;  %v8684_v62 = vpack.c.bf16 %v1246_v39, %v1245_v44  ;;  %v1993_v19 = vmax.f32 %v1977_v47, 0.0  ;;  %v9574_v11 = vpop.f32.mrb[4].mxu0 }
 0x1aa   : > { %v1234_v20 = vadd.f32 %v9574_v11, %v12493_v24  ;;  %v1159_v35 = vpop.f32.mrb[5].mxu0 }
 0x1ab   : > { %2072 = vst [vmem:[#allocation3 + $0x44] sm:$0xf] %v8569_v63  ;;  %8981 = vst [vmem:[#allocation3 + $0x8] sm:$0xff] %v8684_v62   ;;  %v8719_v49 = vpack.c.bf16 %v1994_v54, %v1993_v19  ;;  %v9670_v32 = vpop.f32.mrb[4].mxu1  ;;  %v1232_v28 = vadd.f32 %v12493_v24, %v1159_v35  ;;  %v9575_v50 = vpop.f32.mrb[6].mxu0 }
 0x1ac   : > { %v1913_v17 = vpop.f32.mrb[5].mxu1  ;;  %v1162_v15 = vpop.f32.mrb[7].mxu0  ;;  %v1982_v10 = vadd.f32 %v9670_v32, %v12493_v24  ;;  %v1250_v27 = vmax.f32 %v1234_v20, 0.0  ;;  %v1235_v6 = vadd.f32 %v9575_v50, %v12493_v24 }
 0x1ad   : > { %8988 = vst [vmem:[#allocation3 + $0x48] sm:$0xff] %v8719_v49   ;;  %v1248_v22 = vmax.f32 %v1232_v28, 0.0  ;;  %v1980_v2 = vadd.f32 %v12493_v24, %v1913_v17  ;;  %v9671_v29 = vpop.f32.mrb[6].mxu1  ;;  %v1233_v60 = vadd.f32 %v12493_v24, %v1162_v15 }
 0x1ae   : > { %v1916_v58 = vpop.f32.mrb[7].mxu1  ;;  %v1998_v12 = vmax.f32 %v1982_v10, 0.0  ;;  %v1983_v48 = vadd.f32 %v9671_v29, %v12493_v24  ;;  %v1251_v31 = vmax.f32 %v1235_v6, 0.0 }
 0x1af   : > { %v8689_v33 = vpack.c.bf16 %v1248_v22, %v1247_v14  ;;  %v1996_v23 = vmax.f32 %v1980_v2, 0.0  ;;  %v1249_v51 = vmax.f32 %v1233_v60, 0.0  ;;  %v1981_v59 = vadd.f32 %v12493_v24, %v1916_v58 }
 0x1b0   : > { %v12510_v9 = vld [vmem:[#allocation3 + $0x4] sm:$0xf]  ;;  %v1999_v18 = vmax.f32 %v1983_v48, 0.0 }
 0x1b1   : > { %8982 = vst [vmem:[#allocation3 + $0x10] sm:$0xff] %v8689_v33   ;;  %v8724_v0 = vpack.c.bf16 %v1996_v23, %v1995_v36  ;;  %v8694_v57 = vpack.c.bf16 %v1250_v27, %v1249_v51  ;;  %v1997_v16 = vmax.f32 %v1981_v59, 0.0  ;;  %v9578_v52 = vpop.f32.mrb[8].mxu0  ;;  %v8130_v34 = vcombine.low %v3617_v8, %v12510_v9 }
 0x1b2   : > { %v1238_v43 = vadd.f32 %v9578_v52, %v12493_v24  ;;  %v1175_v25 = vpop.f32.mrb[9].mxu0  ;;  %v12514_v56 = vld [vmem:[#allocation3 + $0x8] sm:$0xf]  ;;  %v12516_v53 = vld [vmem:[#allocation3 + $0xc] sm:$0xf] }
 0x1b3   : > { %8989 = vst [vmem:[#allocation3 + $0x50] sm:$0xff] %v8724_v0   ;;  %8983 = vst [vmem:[#allocation3 + $0x18] sm:$0xff] %v8694_v57   ;;  %v8729_v4 = vpack.c.bf16 %v1998_v12, %v1997_v16  ;;  %v9674_v42 = vpop.f32.mrb[8].mxu1  ;;  %v1236_v37 = vadd.f32 %v12493_v24, %v1175_v25  ;;  %v9579_v7 = vpop.f32.mrb[10].mxu0  ;;  %v12522_v1 = vcombine.low %v12514_v56, %v12516_v53  ;;  %v3679_v41 = vrot.slane %v8130_v34, 3 }
 0x1b4   : > { %v1986_v30 = vadd.f32 %v9674_v42, %v12493_v24  ;;  %v1929_v3 = vpop.f32.mrb[9].mxu1  ;;  %v12526_v61 = vadd.f32 %v9579_v7, %v12493_v24  ;;  %v1178_v26 = vpop.f32.mrb[11].mxu0  ;;  %v1254_v55 = vmax.f32 %v1238_v43, 0.0  ;;  %v8173_v32 = vcombine.low %v12510_v9, %v12514_v56 }
 0x1b5   : > { %8990 = vst [vmem:[#allocation3 + $0x58] sm:$0xff] %v8729_v4   ;;  %v1252_v46 = vmax.f32 %v1236_v37, 0.0  ;;  %v1984_v38 = vadd.f32 %v12493_v24, %v1929_v3  ;;  %v9675_v40 = vpop.f32.mrb[10].mxu1  ;;  %v1237_v39 = vadd.f32 %v12493_v24, %v1178_v26  ;;  %v3680_v5 = vrot.slane %v12522_v1, 3  ;;  %v10883_v4 = vld [vmem:[%s13704_s3 + $0x8] sm:$0xff]  }
 0x1b6   : > { %v12532_v44 = vadd.f32 %v9675_v40, %v12493_v24  ;;  %v1932_v47 = vpop.f32.mrb[11].mxu1  ;;  %v2002_v11 = vmax.f32 %v1986_v30, 0.0  ;;  %v1255_v13 = vmax.f32 %v12526_v61, 0.0  ;;  %v12576_v40 = vld [vmem:[#allocation3 + $0x4c] sm:$0xf] }
 0x1b7   : > { %v8699_v54 = vpack.c.bf16 %v1252_v46, %v1251_v31  ;;  %v2000_v63 = vmax.f32 %v1984_v38, 0.0  ;;  %v1253_v62 = vmax.f32 %v1237_v39, 0.0  ;;  %v1985_v19 = vadd.f32 %v12493_v24, %v1932_v47 }
 0x1b8   : > { %v12536_v20 = vld [vmem:[#allocation3 + $0x10] sm:$0xf]  ;;  %v3681_v35 = vsel %vm677_vm1, %v3679_v41, %v3680_v5  ;;  %v12539_v49 = vld [vmem:[#allocation3 + $0x14] sm:$0xf]  ;;  %v2003_v10 = vmax.f32 %v12532_v44, 0.0 }
 0x1b9   : > { %8984 = vst [vmem:[#allocation3 + $0x20] sm:$0xff] %v8699_v54   ;;  %v8734_v28 = vpack.c.bf16 %v2000_v63, %v1999_v18  ;;  %v8704_v50 = vpack.c.bf16 %v1254_v55, %v1253_v62  ;;  %v2001_v14 = vmax.f32 %v1985_v19, 0.0  ;;  %9888 = vmatprep.mubr.bf16.mxu0 %v3681_v35  ;;  %v8174_v17 = vcombine.low %v12516_v53, %v12536_v20  ;;  %v9582_v15 = vpop.f32.mrb[12].mxu0  ;;  %v10940_v53 = vld [vmem:[%s13706_s5 + $0x10] sm:$0xff]  }
 0x1ba   : > { %v1242_v22 = vadd.f32 %v9582_v15, %v12493_v24  ;;  %v1191_v2 = vpop.f32.mrb[13].mxu0  ;;  %v12549_v29 = vcombine.low %v12536_v20, %v12539_v49  ;;  %v12551_v60 = vld [vmem:[#allocation3 + $0x18] sm:$0xf]  ;;  %v12553_v36 = vld [vmem:[#allocation3 + $0x1c] sm:$0xf] }
 0x1bb   : > { %8991 = vst [vmem:[#allocation3 + $0x60] sm:$0xff] %v8734_v28   ;;  %8985 = vst [vmem:[#allocation3 + $0x28] sm:$0xff] %v8704_v50   ;;  %v8739_v27 = vpack.c.bf16 %v2002_v11, %v2001_v14  ;;  %v9678_v58 = vpop.f32.mrb[12].mxu1  ;;  %v1240_v33 = vadd.f32 %v12493_v24, %v1191_v2  ;;  %v9583_v23 = vpop.f32.mrb[14].mxu0  ;;  %v12558_v51 = vcombine.low %v12551_v60, %v12553_v36  ;;  %v12571_v42 = vld [vmem:[#allocation3 + $0x50] sm:$0xf] }
 0x1bc   : > { %v8175_v59 = vcombine.low %v12539_v49, %v12551_v60  ;;  %v1258_v8 = vmax.f32 %v1242_v22, 0.0  ;;  %v1990_v6 = vadd.f32 %v9678_v58, %v12493_v24  ;;  %v1945_v12 = vpop.f32.mrb[13].mxu1  ;;  %v1243_v0 = vadd.f32 %v9583_v23, %v12493_v24  ;;  %v1194_v57 = vpop.f32.mrb[15].mxu0  ;;  %v12602_v14 = vld [vmem:[#allocation3 + $0x48] sm:$0xf]  ;;  %v10891_v2 = vld [vmem:[%s13704_s3 + $0x18] sm:$0xff]  }
 0x1bd   : > { %v3682_v16 = vrot.slane %v12549_v29, 3  ;;  %8992 = vst [vmem:[#allocation3 + $0x68] sm:$0xff] %v8739_v27   ;;  %v1256_v52 = vmax.f32 %v1240_v33, 0.0  ;;  %v1988_v48 = vadd.f32 %v12493_v24, %v1945_v12  ;;  %v9679_v43 = vpop.f32.mrb[14].mxu1  ;;  %v1241_v25 = vadd.f32 %v12493_v24, %v1194_v57  ;;  %v12611_v27 = vld [vmem:[#allocation3 + $0x54] sm:$0xf] }
 0x1be   : > { %v3684_v34 = vrot.slane %v12558_v51, 3  ;;  %v2006_v37 = vmax.f32 %v1990_v6, 0.0  ;;  %v1259_v7 = vmax.f32 %v1243_v0, 0.0  ;;  %v1991_v31 = vadd.f32 %v9679_v43, %v12493_v24  ;;  %v1948_v30 = vpop.f32.mrb[15].mxu1  ;;  %v12617_v33 = vld [vmem:[#allocation3 + $0x58] sm:$0xf] }
 0x1bf   : > { %v3683_v3 = vsel %vm677_vm1, %v3680_v5, %v3682_v16  ;;  %v8709_v61 = vpack.c.bf16 %v1256_v52, %v1255_v13  ;;  %v2004_v26 = vmax.f32 %v1988_v48, 0.0  ;;  %v1257_v46 = vmax.f32 %v1241_v25, 0.0  ;;  %v12619_v23 = vld [vmem:[#allocation3 + $0x5c] sm:$0xf]  ;;  %v12637_v52 = vld [vmem:[#allocation3 + $0x44] sm:$0xf] }
 0x1c0   : > { %v1989_v38 = vadd.f32 %v12493_v24, %v1948_v30  ;;  %9889 = vmatmul.mubr.bf16.vlgmr.msra.gmra.mrb[32].mxu0 %v3683_v3  ;;  %v8568_v39 = vpack.c.bf16 %v1259_v7, %v1259_v7  ;;  %v2007_v18 = vmax.f32 %v1991_v31, 0.0  ;;  %v3685_v55 = vsel %vm677_vm1, %v3682_v16, %v3684_v34  ;;  %v12580_v44 = vld [vmem:[#allocation3 + $0x20] sm:$0xf]  ;;  %v12582_v47 = vld [vmem:[#allocation3 + $0x24] sm:$0xf] }
 0x1c1   : > { %9905 = vmatpush3.bf16.msra.mxu0 %v12460_v45  ;;  %8986 = vst [vmem:[#allocation3 + $0x30] sm:$0xff] %v8709_v61   ;;  %v8744_v41 = vpack.c.bf16 %v2004_v26, %v2003_v10  ;;  %v8714_v54 = vpack.c.bf16 %v1258_v8, %v1257_v46  ;;  %9892 = vmatprep.mubr.bf16.mxu0 %v3685_v55  ;;  %v10886_v45 = vld [vmem:[%s13704_s3 + $0x10] sm:$0xff]   ;;  %v10894_v0 = vld [vmem:[%s13704_s3 + $0x20] sm:$0xff]   ;;  %v10902_v3 = vld [vmem:[%s13704_s3 + $0x28] sm:$0xff]  }
 0x1c2   : > { %v2005_v63 = vmax.f32 %v1989_v38, 0.0  ;;  %9906 = vmatprep.subr.bf16.mxu0 %v10883_v4  ;;  %v12588_v62 = vcombine.low %v12580_v44, %v12582_v47  ;;  %1339 = vst [vmem:[#allocation3 + $0x40] sm:$0xf] %v8568_v39  ;;  %v8584_v19 = vpack.c.bf16 %v2007_v18, %v2007_v18  ;;  %v12593_v11 = vld [vmem:[#allocation3 + $0x28] sm:$0xf]  ;;  %v8176_v15 = vcombine.low %v12553_v36, %v12580_v44  ;;  %v10911_v61 = vld [vmem:[%s13704_s3 + $0x18] sm:$0xff]  }
 0x1c3   : > { %v12595_v13 = vld [vmem:[#allocation3 + $0x2c] sm:$0xf]  ;;  %8993 = vst [vmem:[#allocation3 + $0x70] sm:$0xff] %v8744_v41   ;;  %8987 = vst [vmem:[#allocation3 + $0x38] sm:$0xff] %v8714_v54   ;;  %v12615_v58 = vcombine.low %v12602_v14, %v12576_v40  ;;  %v12631_v57 = vcombine.low %v12571_v42, %v12611_v27  ;;  %v12641_v43 = vcombine.low %v12617_v33, %v12619_v23  ;;  %v12664_v39 = vld [vmem:[#allocation3 + $0x60] sm:$0xf] }
 0x1c4   : > { %v8749_v35 = vpack.c.bf16 %v2006_v37, %v2005_v63  ;;  %v3686_v28 = vrot.slane %v12588_v62, 3  ;;  %v12600_v50 = vcombine.low %v12593_v11, %v12595_v13  ;;  %2087 = vst [vmem:[#allocation3 + $0x80] sm:$0xf] %v8584_v19  ;;  %v8177_v7 = vcombine.low %v12582_v47, %v12593_v11  ;;  %v12666_v18 = vld [vmem:[#allocation3 + $0x64] sm:$0xf] }
 0x1c5   : > { %9907 = vmatpush3.bf16.msra.mxu0 %v10883_v4  ;;  %v4701_v38 = vrot.slane %v12631_v57, 3  ;;  %v4703_v63 = vrot.slane %v12641_v43, 3  ;;  %v3584_v19 = vld [vmem:[#allocation3] sm:$0xc] }
 0x1c6   : > { %8994 = vst [vmem:[#allocation3 + $0x78] sm:$0xff] %v8749_v35   ;;  %v3687_v10 = vsel %vm677_vm1, %v3684_v34, %v3686_v28  ;;  %9908 = vmatprep.subr.bf16.mxu0 %v10886_v45  ;;  %v3688_v22 = vrot.slane %v12600_v50, 3  ;;  %v4699_v34 = vrot.slane %v12615_v58, 3  ;;  %v12674_v35 = vld [vmem:[#allocation3 + $0x68] sm:$0xf] }
 0x1c7   : > { %v8286_v5 = vcombine.low %v12666_v18, %v12674_v35 }
 0x1c8   : > { %9893 = vmatmul.mubr.bf16.gmra.mrb[36].mxu0 %v3687_v10  ;;  %v3689_v8 = vsel %vm677_vm1, %v3686_v28, %v3688_v22  ;;  %v12622_v6 = vld [vmem:[#allocation3 + $0x30] sm:$0xf]  ;;  %v12624_v12 = vld [vmem:[#allocation3 + $0x34] sm:$0xf]  ;;  %v12676_v28 = vld [vmem:[#allocation3 + $0x6c] sm:$0xf] }
 0x1c9   : > { %9909 = vmatpush3.bf16.msra.mxu0 %v10886_v45  ;;  %9896 = vmatprep.mubr.bf16.mxu0 %v3689_v8  ;;  %v12635_v16 = vcombine.low %v12622_v6, %v12624_v12  ;;  %v4637_v48 = vld [vmem:[#allocation3 + $0x40] sm:$0x8]  ;;  %v10904_v8 = vld [vmem:[#allocation3 + $0x40] ss:$0 sps:$4 sm:$0x77]  }
 0x1ca   : > { %9910 = vmatprep.subr.bf16.mxu0 %v10891_v2  ;;  %v8239_v25 = vcombine.low %v4637_v48, %v12637_v52  ;;  %v12645_v4 = vld [vmem:[#allocation3 + $0x38] sm:$0xf]  ;;  %v12647_v37 = vld [vmem:[#allocation3 + $0x3c] sm:$0xf]  ;;  %v12685_v48 = vcombine.low %v12664_v39, %v12666_v18  ;;  %v12712_v55 = vld [vmem:[#allocation3 + $0x74] sm:$0xf] }
 0x1cb   : > { %v3690_v31 = vrot.slane %v12635_v16, 3  ;;  %v12654_v30 = vcombine.low %v12645_v4, %v12647_v37  ;;  %v10962_v18 = vld [vmem:[#allocation2 + $0x4c] sm:$0xff]  }
 0x1cc   : > { %v4698_v46 = vrot.slane %v8239_v25, 3  ;;  %v4704_v25 = vsel %vm677_vm1, %v4701_v38, %v4703_v63 }
 0x1cd   : > { %9911 = vmatpush3.bf16.msra.mxu0 %v10891_v2  ;;  %v3691_v41 = vsel %vm677_vm1, %v3688_v22, %v3690_v31  ;;  %v3692_v54 = vrot.slane %v12654_v30, 3  ;;  %v10903_v22 = vld [vmem:[%s13704_s3 + $0x8] sm:$0xff]   ;;  %v4702_v2 = vsel %vm677_vm1, %v4699_v34, %v4701_v38  ;;  %v10908_v38 = vld [vmem:[%s13704_s3 + $0x10] sm:$0xff]  }
 0x1ce   : > { %9912 = vmatprep.subr.bf16.mxu0 %v10894_v0  ;;  %v4700_v45 = vsel %vm677_vm1, %v4698_v46, %v4699_v34  ;;  %v8147_v46 = vcombine.low %v3584_v19, %v12510_v9  ;;  %v12697_v34 = vld [vmem:[#allocation3 + $0x70] sm:$0xf]  ;;  %v3694_v19 = vrot.slane %v10904_v8, 3 }
 0x1cf   : > { %10016 = vmatprep.mubr.bf16.mxu1 %v4700_v45  ;;  %v3693_v10 = vsel %vm677_vm1, %v3690_v31, %v3692_v54  ;;  %v10905_v31 = vld [vmem:[%s13704_s3 + $0x30] sm:$0xff]   ;;  %v12703_v45 = vld [vmem:[#allocation3 + $0x78] sm:$0xf] }
 0x1d0   : > { %9897 = vmatmul.mubr.bf16.gmra.mrb[40].mxu0 %v3691_v41  ;;  %10017 = vmatmul.mubr.bf16.vlgmr.msra.gmra.mrb[48].mxu1 %v4702_v2  ;;  %v3856_v41 = vrot.slane %v12522_v1, 2  ;;  %v10910_v1 = vld [vmem:[%s13704_s3 + $0x38] sm:$0xff]   ;;  %v3695_v8 = vsel %vm677_vm1, %v3692_v54, %v3694_v19  ;;  %v12719_v2 = vld [vmem:[#allocation3 + $0x7c] sm:$0xf]  ;;  %v12730_v54 = vcombine.low %v12697_v34, %v12712_v55 }
 0x1d1   : > { %9913 = vmatpush3.bf16.msra.mxu0 %v10894_v0  ;;  %9900 = vmatprep.mubr.bf16.mxu0 %v3693_v10  ;;  %v12694_v0 = vcombine.low %v12674_v35, %v12676_v28  ;;  %v4705_v10 = vrot.slane %v12685_v48, 3  ;;  %v10912_v19 = vld [vmem:[%s13704_s3 + $0x80] sm:$0xff]  }
 0x1d2   : > { %9914 = vmatprep.subr.bf16.mxu0 %v10902_v3  ;;  %10020 = vmatprep.mubr.bf16.mxu1 %v4704_v25  ;;  %v4885_v9 = vrot.slane %v12730_v54, 2 }
 0x1d3   : > { %10033 = vmatpush3.bf16.msra.mxu1 %v12487_v21  ;;  %v3855_v21 = vrot.slane %v8147_v46, 2  ;;  %v4707_v25 = vrot.slane %v12694_v0, 3 }
 0x1d4   : > { %10034 = vmatprep.subr.bf16.mxu1 %v10903_v22 }
 0x1d5   : > { %9915 = vmatpush3.bf16.msra.mxu0 %v10902_v3  ;;  %v3857_v26 = vsel %vm854_vm2, %v3855_v21, %v3856_v41  ;;  %v4706_v3 = vsel %vm677_vm1, %v4703_v63, %v4705_v10  ;;  %v12738_v21 = vcombine.low %v12703_v45, %v12719_v2  ;;  %v3860_v63 = vrot.slane %v12558_v51, 2 }
 0x1d6   : > { %9916 = vmatprep.subr.bf16.mxu0 %v10905_v31 }
 0x1d7   : > { %10035 = vmatpush3.bf16.msra.mxu1 %v10903_v22  ;;  %v4708_v22 = vsel %vm677_vm1, %v4705_v10, %v4707_v25  ;;  %v4709_v10 = vrot.slane %v12730_v54, 3  ;;  %v4887_v56 = vrot.slane %v12738_v21, 2 }
 0x1d8   : > { %9901 = vmatmul.mubr.bf16.gmra.mrb[44].mxu0 %v3695_v8  ;;  %10036 = vmatprep.subr.bf16.mxu1 %v10908_v38  ;;  %v10916_v8 = vld [vmem:[%s13704_s3 + $0x88] sm:$0xff]  }
 0x1d9   : > { %9917 = vmatpush3.bf16.msra.mxu0 %v10905_v31  ;;  %9920 = vmatprep.mubr.bf16.mxu0 %v3857_v26  ;;  %v3858_v26 = vrot.slane %v12549_v29, 2  ;;  %v10914_v31 = vld [vmem:[%s13704_s3 + $0x20] sm:$0xff]  }
 0x1da   : > { %10021 = vmatmul.mubr.bf16.gmra.mrb[52].mxu1 %v4706_v3  ;;  %9918 = vmatprep.subr.bf16.mxu0 %v10910_v1  ;;  %v4711_v3 = vrot.slane %v12738_v21, 3 }
 0x1db   : > { %10024 = vmatprep.mubr.bf16.mxu1 %v4708_v22  ;;  %10037 = vmatpush3.bf16.msra.mxu1 %v10908_v38  ;;  %v3859_v29 = vsel %vm854_vm2, %v3856_v41, %v3858_v26  ;;  %v4604_v38 = vld [vmem:[#allocation3 + $0x40] sm:$0xc]  ;;  %v3861_v51 = vsel %vm854_vm2, %v3858_v26, %v3860_v63  ;;  %v4710_v22 = vsel %vm677_vm1, %v4707_v25, %v4709_v10  ;;  %v3862_v26 = vrot.slane %v12588_v62, 2  ;;  %v10920_v25 = vld [vmem:[%s13704_s3 + $0x30] sm:$0xff]  }
 0x1dc   : > { %10038 = vmatprep.subr.bf16.mxu1 %v10911_v61  ;;  %v4712_v46 = vsel %vm677_vm1, %v4709_v10, %v4711_v3  ;;  %v8256_v41 = vcombine.low %v4604_v38, %v12637_v52 }
 0x1dd   : > { %9919 = vmatpush3.bf16.msra.mxu0 %v10910_v1  ;;  %v10917_v1 = vld [vmem:[%s13704_s3 + $0x28] sm:$0xff]  }
 0x1de   : > { %9936 = vmatprep.subr.bf16.mxu0 %v10912_v19  ;;  %v4874_v10 = vrot.slane %v8256_v41, 2  ;;  %v4879_v41 = vrot.slane %v12641_v43, 2  ;;  %v10928_v43 = vld [vmem:[#allocation3 + $0x40] ss:$0 sps:$4 sm:$0x33]  }
 0x1df   : > { %10039 = vmatpush3.bf16.msra.mxu1 %v10911_v61  ;;  %v10918_v61 = vld [vmem:[%s13704_s3 + $0x90] sm:$0xff]  }
 0x1e0   : > { %9921 = vmatmul.mubr.bf16.vlgmr.msra.gmra.mrb[32].mxu0 %v3859_v29  ;;  %10040 = vmatprep.subr.bf16.mxu1 %v10914_v31  ;;  %v10919_v29 = vld [vmem:[#allocation3 + $0x80] ss:$0 sps:$4 sm:$0x77]  }
 0x1e1   : > { %9924 = vmatprep.mubr.bf16.mxu0 %v3861_v51  ;;  %9937 = vmatpush3.bf16.msra.mxu0 %v10912_v19  ;;  %v3864_v19 = vrot.slane %v12600_v50, 2  ;;  %v10922_v51 = vld [vmem:[%s13704_s3 + $0x98] sm:$0xff]   ;;  %v4875_v50 = vrot.slane %v12615_v58, 2  ;;  %v3866_v58 = vrot.slane %v12635_v16, 2 }
 0x1e2   : > { %10025 = vmatmul.mubr.bf16.gmra.mrb[56].mxu1 %v4710_v22  ;;  %9938 = vmatprep.subr.bf16.mxu0 %v10916_v8  ;;  %v3868_v22 = vrot.slane %v12654_v30, 2 }
 0x1e3   : > { %10028 = vmatprep.mubr.bf16.mxu1 %v4712_v46  ;;  %10041 = vmatpush3.bf16.msra.mxu1 %v10914_v31  ;;  %v3863_v46 = vsel %vm854_vm2, %v3860_v63, %v3862_v26  ;;  %v4713_v31 = vrot.slane %v10919_v29, 3  ;;  %v3865_v62 = vsel %vm854_vm2, %v3862_v26, %v3864_v19  ;;  %v10924_v63 = vld [vmem:[%s13704_s3 + $0xa0] sm:$0xff]   ;;  %v10926_v26 = vld [vmem:[%s13704_s3 + $0xa8] sm:$0xff]   ;;  %v3867_v16 = vsel %vm854_vm2, %v3864_v19, %v3866_v58  ;;  %v10929_v19 = vld [vmem:[%s13704_s3 + $0xb0] sm:$0xff]  }
 0x1e4   : > { %10042 = vmatprep.subr.bf16.mxu1 %v10917_v1  ;;  %v3869_v30 = vsel %vm854_vm2, %v3866_v58, %v3868_v22  ;;  %v10927_v29 = vld [vmem:[%s13704_s3 + $0x88] sm:$0xff]   ;;  %v4888_v58 = vsel %vm854_vm2, %v4885_v9, %v4887_v56 }
 0x1e5   : > { %9939 = vmatpush3.bf16.msra.mxu0 %v10916_v8  ;;  %v10923_v8 = vld [vmem:[%s13704_s3 + $0x38] sm:$0xff]   ;;  %v4714_v38 = vsel %vm677_vm1, %v4711_v3, %v4713_v31  ;;  %v4877_v3 = vrot.slane %v12631_v57, 2  ;;  %v4883_v31 = vrot.slane %v12694_v0, 2 }
 0x1e6   : > { %9940 = vmatprep.subr.bf16.mxu0 %v10918_v61 }
 0x1e7   : > { %10043 = vmatpush3.bf16.msra.mxu1 %v10917_v1  ;;  %v4876_v1 = vsel %vm854_vm2, %v4874_v10, %v4875_v50  ;;  %v4878_v57 = vsel %vm854_vm2, %v4875_v50, %v4877_v3  ;;  %v10931_v10 = vld [vmem:[%s13704_s3 + $0x90] sm:$0xff]   ;;  %v4886_v54 = vsel %vm854_vm2, %v4883_v31, %v4885_v9  ;;  %v10948_v9 = vld [vmem:[%s13706_s5 + $0x20] sm:$0xff]  }
 0x1e8   : > { %9925 = vmatmul.mubr.bf16.gmra.mrb[36].mxu0 %v3863_v46  ;;  %10044 = vmatprep.subr.bf16.mxu1 %v10920_v25  ;;  %v4881_v46 = vrot.slane %v12685_v48, 2 }
 0x1e9   : > { %9928 = vmatprep.mubr.bf16.mxu0 %v3865_v62  ;;  %9941 = vmatpush3.bf16.msra.mxu0 %v10918_v61  ;;  %v10925_v61 = vld [vmem:[%s13704_s3 + $0x80] sm:$0xff]   ;;  %v10932_v62 = vld [vmem:[%s13704_s3 + $0xb8] sm:$0xff]  }
 0x1ea   : > { %10029 = vmatmul.mubr.bf16.gmra.mrb[60].mxu1 %v4714_v38  ;;  %9942 = vmatprep.subr.bf16.mxu0 %v10922_v51  ;;  %v4882_v48 = vsel %vm854_vm2, %v4879_v41, %v4881_v46  ;;  %v4884_v0 = vsel %vm854_vm2, %v4881_v46, %v4883_v31  ;;  %v10934_v38 = vld [vmem:[%s13706_s5] sm:$0xff]  }
 0x1eb   : > { %10045 = vmatpush3.bf16.msra.mxu1 %v10920_v25  ;;  %10048 = vmatprep.mubr.bf16.mxu1 %v4876_v1  ;;  %v4880_v25 = vsel %vm854_vm2, %v4877_v3, %v4879_v41  ;;  %v10936_v1 = vld [vmem:[%s13704_s3 + $0xa0] sm:$0xff]  }
 0x1ec   : > { %10046 = vmatprep.subr.bf16.mxu1 %v10923_v8 }
 0x1ed   : > { %9943 = vmatpush3.bf16.msra.mxu0 %v10922_v51  ;;  %v3870_v51 = vrot.slane %v10928_v43, 2  ;;  %v10945_v43 = vld [vmem:[%s13706_s5 + $0x18] sm:$0xff]  }
 0x1ee   : > { %9944 = vmatprep.subr.bf16.mxu0 %v10924_v63 }
 0x1ef   : > { %10047 = vmatpush3.bf16.msra.mxu1 %v10923_v8  ;;  %v3871_v50 = vsel %vm854_vm2, %v3868_v22, %v3870_v51  ;;  %v10933_v8 = vld [vmem:[%s13704_s3 + $0x98] sm:$0xff]   ;;  %v10942_v22 = vld [vmem:[#allocation3 + $0x80] ss:$0 sps:$4 sm:$0x33]  }
 0x1f0   : > { %9929 = vmatmul.mubr.bf16.gmra.mrb[40].mxu0 %v3867_v16  ;;  %10064 = vmatprep.subr.bf16.mxu1 %v10925_v61 }
 0x1f1   : > { %9932 = vmatprep.mubr.bf16.mxu0 %v3869_v30  ;;  %9945 = vmatpush3.bf16.msra.mxu0 %v10924_v63  ;;  %v10938_v63 = vld [vmem:[%s13704_s3 + $0xa8] sm:$0xff]  }
 0x1f2   : > { %10049 = vmatmul.mubr.bf16.vlgmr.msra.gmra.mrb[48].mxu1 %v4878_v57  ;;  %9946 = vmatprep.subr.bf16.mxu0 %v10926_v26 }
 0x1f3   : > { %10052 = vmatprep.mubr.bf16.mxu1 %v4880_v25  ;;  %10065 = vmatpush3.bf16.msra.mxu1 %v10925_v61  ;;  %v10943_v61 = vld [vmem:[%s13704_s3 + $0xb0] sm:$0xff]  }
 0x1f4   : > { %10066 = vmatprep.subr.bf16.mxu1 %v10927_v29 }
 0x1f5   : > { %9947 = vmatpush3.bf16.msra.mxu0 %v10926_v26 }
 0x1f6   : > { %9948 = vmatprep.subr.bf16.mxu0 %v10929_v19 }
 0x1f7   : > { %10067 = vmatpush3.bf16.msra.mxu1 %v10927_v29 }
 0x1f8   : > { %9933 = vmatmul.mubr.bf16.gmra.mrb[44].mxu0 %v3871_v50  ;;  %10068 = vmatprep.subr.bf16.mxu1 %v10931_v10  ;;  %v10946_v50 = vld [vmem:[%s13704_s3 + $0xb8] sm:$0xff]  }
 0x1f9   : > { %9949 = vmatpush3.bf16.msra.mxu0 %v10929_v19  ;;  %9952 = vmatprep.mubr.bf16.mxu0 %v8173_v32  ;;  %v10937_v32 = vld [vmem:[%s13706_s5 + $0x8] sm:$0xff]  }
 0x1fa   : > { %10053 = vmatmul.mubr.bf16.gmra.mrb[52].mxu1 %v4882_v48  ;;  %9950 = vmatprep.subr.bf16.mxu0 %v10932_v62 }
 0x1fb   : > { %10056 = vmatprep.mubr.bf16.mxu1 %v4884_v0  ;;  %10069 = vmatpush3.bf16.msra.mxu1 %v10931_v10  ;;  %v4889_v10 = vrot.slane %v10942_v22, 2  ;;  %v8282_v0 = vcombine.low %v12637_v52, %v12602_v14 }
 0x1fc   : > { %10070 = vmatprep.subr.bf16.mxu1 %v10933_v8 }
 0x1fd   : > { %9951 = vmatpush3.bf16.msra.mxu0 %v10932_v62  ;;  %v4890_v48 = vsel %vm854_vm2, %v4887_v56, %v4889_v10 }
 0x1fe   : > { %10096 = vmatprep.subr.bf16.mxu0 %v10934_v38 }
 0x1ff   : > { %10071 = vmatpush3.bf16.msra.mxu1 %v10933_v8 }
 0x200   : > { %9953 = vmatmul.mubr.bf16.vlgmr.msra.gmra.mrb[32].mxu0 %v8174_v17  ;;  %10072 = vmatprep.subr.bf16.mxu1 %v10936_v1 }
 0x201   : > { %9956 = vmatprep.mubr.bf16.mxu0 %v8175_v59  ;;  %10097 = vmatpush3.bf16.msra.mxu0 %v10934_v38  ;;  %v9762_v21 = vpop.f32.mrb[16].mxu0 }
 0x202   : > { %10057 = vmatmul.mubr.bf16.gmra.mrb[56].mxu1 %v4886_v54  ;;  %10098 = vmatprep.subr.bf16.mxu0 %v10937_v32  ;;  %v2726_v20 = vadd.f32 %v9762_v21, %v12493_v24  ;;  %v2645_v17 = vpop.f32.mrb[17].mxu0 }
 0x203   : > { %10060 = vmatprep.mubr.bf16.mxu1 %v4888_v58  ;;  %10073 = vmatpush3.bf16.msra.mxu1 %v10936_v1  ;;  %v9858_v49 = vpop.f32.mrb[16].mxu1  ;;  %v2724_v60 = vadd.f32 %v12493_v24, %v2645_v17  ;;  %v9763_v59 = vpop.f32.mrb[18].mxu0 }
 0x204   : > { %10074 = vmatprep.subr.bf16.mxu1 %v10938_v63  ;;  %v3393_v3 = vpop.f32.mrb[17].mxu1  ;;  %v2648_v41 = vpop.f32.mrb[19].mxu0  ;;  %v3474_v26 = vadd.f32 %v9858_v49, %v12493_v24  ;;  %v2742_v25 = vmax.f32 %v2726_v20, 0.0  ;;  %v2727_v8 = vadd.f32 %v9763_v59, %v12493_v24 }
 0x205   : > { %10099 = vmatpush3.bf16.msra.mxu0 %v10937_v32  ;;  %v2740_v16 = vmax.f32 %v2724_v60, 0.0  ;;  %v3472_v30 = vadd.f32 %v12493_v24, %v3393_v3  ;;  %v9859_v29 = vpop.f32.mrb[18].mxu1  ;;  %v2725_v57 = vadd.f32 %v12493_v24, %v2648_v41  ;;  %v10952_v60 = vld [vmem:[%s13706_s5 + $0x28] sm:$0xff]  }
 0x206   : > { %10100 = vmatprep.subr.bf16.mxu0 %v10940_v53  ;;  %v3396_v19 = vpop.f32.mrb[19].mxu1  ;;  %v3490_v38 = vmax.f32 %v3474_v26, 0.0  ;;  %v3475_v47 = vadd.f32 %v9859_v29, %v12493_v24  ;;  %v2743_v54 = vmax.f32 %v2727_v8, 0.0  ;;  %v13750_v29 = vcombine.low %v12595_v13, %v12622_v6 }
 0x207   : > { %10075 = vmatpush3.bf16.msra.mxu1 %v10938_v63  ;;  %v8585_v51 = vpack.c.bf16 %v2740_v16, %v2740_v16  ;;  %v3488_v46 = vmax.f32 %v3472_v30, 0.0  ;;  %v2741_v31 = vmax.f32 %v2725_v57, 0.0  ;;  %v3473_v62 = vadd.f32 %v12493_v24, %v3396_v19  ;;  %v10950_v63 = vld [vmem:[%s13706_s5] sm:$0xff]   ;;  %v10953_v57 = vld [vmem:[%s13706_s5 + $0x8] sm:$0xff]  }
 0x208   : > { %9957 = vmatmul.mubr.bf16.gmra.mrb[36].mxu0 %v8176_v15  ;;  %10076 = vmatprep.subr.bf16.mxu1 %v10943_v61  ;;  %v3491_v59 = vmax.f32 %v3475_v47, 0.0  ;;  %v13752_v13 = vcombine.low %v12576_v40, %v12571_v42 }
 0x209   : > { %9960 = vmatprep.mubr.bf16.mxu0 %v8177_v7  ;;  %10101 = vmatpush3.bf16.msra.mxu0 %v10940_v53  ;;  %2820 = vst [vmem:[#allocation3 + $0x84] sm:$0xf] %v8585_v51  ;;  %v8601_v36 = vpack.c.bf16 %v3488_v46, %v3488_v46  ;;  %v8754_v44 = vpack.c.bf16 %v2742_v25, %v2741_v31  ;;  %v3489_v15 = vmax.f32 %v3473_v62, 0.0  ;;  %v9766_v1 = vpop.f32.mrb[20].mxu0  ;;  %v4025_v31 = vld [vmem:[#allocation3 + $0x40] sm:$0xf] }
 0x20a   : > { %10061 = vmatmul.mubr.bf16.gmra.mrb[60].mxu1 %v4890_v48  ;;  %10102 = vmatprep.subr.bf16.mxu0 %v10945_v43  ;;  %v2730_v11 = vadd.f32 %v9766_v1, %v12493_v24  ;;  %v2661_v7 = vpop.f32.mrb[21].mxu0  ;;  %v13751_v25 = vcombine.low %v12624_v12, %v12645_v4  ;;  %v10955_v62 = vld [vmem:[%s13706_s5 + $0x30] sm:$0xff]  }
 0x20b   : > { %10077 = vmatpush3.bf16.msra.mxu1 %v10943_v61  ;;  %10080 = vmatprep.mubr.bf16.mxu1 %v8282_v0  ;;  %3568 = vst [vmem:[#allocation3 + $0xc4] sm:$0xf] %v8601_v36  ;;  %8995 = vst [vmem:[#allocation3 + $0x88] sm:$0xff] %v8754_v44   ;;  %v8789_v14 = vpack.c.bf16 %v3490_v38, %v3489_v15  ;;  %v9862_v52 = vpop.f32.mrb[20].mxu1  ;;  %v2728_v56 = vadd.f32 %v12493_v24, %v2661_v7  ;;  %v9767_v32 = vpop.f32.mrb[22].mxu0  ;;  %v10957_v38 = vld [vmem:[%s13706_s5 + $0x10] sm:$0xff]  }
 0x20c   : > { %10078 = vmatprep.subr.bf16.mxu1 %v10946_v50  ;;  %v3409_v21 = vpop.f32.mrb[21].mxu1  ;;  %v2664_v58 = vpop.f32.mrb[23].mxu0  ;;  %v3478_v53 = vadd.f32 %v9862_v52, %v12493_v24  ;;  %v2746_v61 = vmax.f32 %v2730_v11, 0.0  ;;  %v10961_v15 = vld [vmem:[#allocation2 + $0x44] sm:$0xff]   ;;  %v12914_v7 = vld [vmem:[%s13703_s2] ss:$0 sm:$0xff] }
 0x20d   : > { %10103 = vmatpush3.bf16.msra.mxu0 %v10945_v43  ;;  %9002 = vst [vmem:[#allocation3 + $0xc8] sm:$0xff] %v8789_v14   ;;  %v2744_v20 = vmax.f32 %v2728_v56, 0.0  ;;  %v3476_v17 = vadd.f32 %v12493_v24, %v3409_v21  ;;  %v9863_v22 = vpop.f32.mrb[22].mxu1  ;;  %v2729_v49 = vadd.f32 %v12493_v24, %v2664_v58  ;;  %v2731_v43 = vadd.f32 %v9767_v32, %v12493_v24  ;;  %v10959_v52 = vld [vmem:[%s13706_s5 + $0x38] sm:$0xff]  }
 0x20e   : > { %10104 = vmatprep.subr.bf16.mxu0 %v10948_v9  ;;  %v3412_v3 = vpop.f32.mrb[23].mxu1  ;;  %v3494_v19 = vmax.f32 %v3478_v53, 0.0  ;;  %v3479_v12 = vadd.f32 %v9863_v22, %v12493_v24 }
 0x20f   : > { %10079 = vmatpush3.bf16.msra.mxu1 %v10946_v50  ;;  %v8759_v41 = vpack.c.bf16 %v2744_v20, %v2743_v54  ;;  %v3492_v26 = vmax.f32 %v3476_v17, 0.0  ;;  %v2745_v16 = vmax.f32 %v2729_v49, 0.0  ;;  %v3477_v30 = vadd.f32 %v12493_v24, %v3412_v3 }
 0x210   : > { %9961 = vmatmul.mubr.bf16.gmra.mrb[40].mxu0 %v13750_v29  ;;  %10224 = vmatprep.subr.bf16.mxu1 %v10950_v63  ;;  %v13753_v50 = vcombine.low %v12611_v27, %v12617_v33  ;;  %v8180_v33 = vcombine.low %v12647_v37, %v4025_v31  ;;  %v2747_v1 = vmax.f32 %v2731_v43, 0.0  ;;  %v3495_v56 = vmax.f32 %v3479_v12, 0.0  ;;  %v12928_v20 = vld [vmem:[#allocation3 + $0x84] sm:$0xf]  ;;  %v10963_v29 = vld [vmem:[%s13704_s3 + $0x40] sm:$0xff]  }
 0x211   : > { %9964 = vmatprep.mubr.bf16.mxu0 %v13751_v25  ;;  %10105 = vmatpush3.bf16.msra.mxu0 %v10948_v9  ;;  %8996 = vst [vmem:[#allocation3 + $0x90] sm:$0xff] %v8759_v41   ;;  %v8794_v10 = vpack.c.bf16 %v3492_v26, %v3491_v59  ;;  %v8764_v51 = vpack.c.bf16 %v2746_v61, %v2745_v16  ;;  %v3493_v46 = vmax.f32 %v3477_v30, 0.0  ;;  %v9770_v6 = vpop.f32.mrb[24].mxu0 }
 0x212   : > { %10081 = vmatmul.mubr.bf16.vlgmr.msra.gmra.mrb[48].mxu1 %v13752_v13  ;;  %10106 = vmatprep.subr.bf16.mxu0 %v10952_v60  ;;  %v2734_v4 = vadd.f32 %v9770_v6, %v12493_v24  ;;  %v2677_v8 = vpop.f32.mrb[25].mxu0  ;;  %v12920_v37 = vld [vmem:[#allocation3 + $0x88] sm:$0xf]  ;;  %v13754_v16 = vcombine.low %v12619_v23, %v12664_v39  ;;  %v12947_v43 = vld [vmem:[#allocation3 + $0xc4] sm:$0xf] }
 0x213   : > { %10084 = vmatprep.mubr.bf16.mxu1 %v13753_v50  ;;  %10225 = vmatpush3.bf16.msra.mxu1 %v10950_v63  ;;  %9003 = vst [vmem:[#allocation3 + $0xd0] sm:$0xff] %v8794_v10   ;;  %8997 = vst [vmem:[#allocation3 + $0x98] sm:$0xff] %v8764_v51   ;;  %v8799_v42 = vpack.c.bf16 %v3494_v19, %v3493_v46  ;;  %v9866_v40 = vpop.f32.mrb[24].mxu1  ;;  %v2732_v48 = vadd.f32 %v12493_v24, %v2677_v8  ;;  %v9771_v0 = vpop.f32.mrb[26].mxu0  ;;  %v10969_v8 = vld [vmem:[#allocation2 + $0x54] sm:$0xff]  }
 0x214   : > { %10226 = vmatprep.subr.bf16.mxu1 %v10953_v57  ;;  %v3482_v36 = vadd.f32 %v9866_v40, %v12493_v24  ;;  %v3425_v44 = vpop.f32.mrb[25].mxu1  ;;  %v2680_v27 = vpop.f32.mrb[27].mxu0  ;;  %v2750_v32 = vmax.f32 %v2734_v4, 0.0  ;;  %v12930_v17 = vld [vmem:[#allocation3 + $0xc8] sm:$0xf]  ;;  %v2735_v49 = vadd.f32 %v12914_v7, %v9771_v0 }
 0x215   : > { %10107 = vmatpush3.bf16.msra.mxu0 %v10952_v60  ;;  %9004 = vst [vmem:[#allocation3 + $0xd8] sm:$0xff] %v8799_v42   ;;  %v2748_v9 = vmax.f32 %v2732_v48, 0.0  ;;  %v3480_v47 = vadd.f32 %v12493_v24, %v3425_v44  ;;  %v9867_v11 = vpop.f32.mrb[26].mxu1  ;;  %v2733_v14 = vadd.f32 %v12914_v7, %v2680_v27  ;;  %v12925_v24 = vld [vmem:[%s13706_s5 + $0x18] sm:$0xff]   ;;  %v12933_v60 = vld [vmem:[#allocation3 + $0x8c] sm:$0xf] }
 0x216   : > { %10108 = vmatprep.subr.bf16.mxu0 %v10955_v62  ;;  %v3428_v63 = vpop.f32.mrb[27].mxu1  ;;  %v3498_v22 = vmax.f32 %v3482_v36, 0.0  ;;  %v3483_v25 = vadd.f32 %v12914_v7, %v9867_v11  ;;  %v10967_v36 = vld [vmem:[%s13704_s3 + $0x48] sm:$0xff]  }
 0x217   : > { %10227 = vmatpush3.bf16.msra.mxu1 %v10953_v57  ;;  %v8769_v54 = vpack.c.bf16 %v2748_v9, %v2747_v1  ;;  %v3496_v21 = vmax.f32 %v3480_v47, 0.0  ;;  %v2749_v58 = vmax.f32 %v2733_v14, 0.0  ;;  %v3481_v53 = vadd.f32 %v12914_v7, %v3428_v63 }
 0x218   : > { %9965 = vmatmul.mubr.bf16.gmra.mrb[44].mxu0 %v8180_v33  ;;  %10228 = vmatprep.subr.bf16.mxu1 %v10957_v38  ;;  %v12935_v59 = vld [vmem:[#allocation3 + $0x90] sm:$0xf]  ;;  %v12954_v39 = vld [vmem:[#allocation3 + $0x94] sm:$0xf]  ;;  %v3499_v27 = vmax.f32 %v3483_v25, 0.0 }
 0x219   : > { %10109 = vmatpush3.bf16.msra.mxu0 %v10955_v62  ;;  %10112 = vmatprep.mubr.bf16.mxu0 %v10961_v15  ;;  %8998 = vst [vmem:[#allocation3 + $0xa0] sm:$0xff] %v8769_v54   ;;  %v8804_v3 = vpack.c.bf16 %v3496_v21, %v3495_v56  ;;  %v8774_v41 = vpack.c.bf16 %v2750_v32, %v2749_v58  ;;  %v3497_v26 = vmax.f32 %v3481_v53, 0.0  ;;  %v9774_v30 = vpop.f32.mrb[28].mxu0  ;;  %v2751_v62 = vmax.f32 %v2735_v49, 0.0  ;;  %v10968_v56 = vld [vmem:[%s13706_s5 + $0x28] sm:$0xff]   ;;  %v10971_v49 = vld [vmem:[%s13704_s3 + $0x50] sm:$0xff]  }
 0x21a   : > { %10085 = vmatmul.mubr.bf16.gmra.mrb[52].mxu1 %v13754_v16  ;;  %10110 = vmatprep.subr.bf16.mxu0 %v10959_v52  ;;  %v2738_v19 = vadd.f32 %v12914_v7, %v9774_v30  ;;  %v2693_v23 = vpop.f32.mrb[29].mxu0  ;;  %v12956_v10 = vld [vmem:[#allocation3 + $0x98] sm:$0xf]  ;;  %v12974_v44 = vld [vmem:[#allocation3 + $0xd0] sm:$0xf] }
 0x21b   : > { %10088 = vmatprep.mubr.bf16.mxu1 %v8286_v5  ;;  %10229 = vmatpush3.bf16.msra.mxu1 %v10957_v38  ;;  %9005 = vst [vmem:[#allocation3 + $0xe0] sm:$0xff] %v8804_v3   ;;  %8999 = vst [vmem:[#allocation3 + $0xa8] sm:$0xff] %v8774_v41   ;;  %v8809_v46 = vpack.c.bf16 %v3498_v22, %v3497_v26  ;;  %v9870_v13 = vpop.f32.mrb[28].mxu1  ;;  %v2736_v6 = vadd.f32 %v12914_v7, %v2693_v23  ;;  %v9775_v31 = vpop.f32.mrb[30].mxu0  ;;  %v10965_v5 = vld [vmem:[%s13706_s5 + $0x20] sm:$0xff]  }
 0x21c   : > { %10230 = vmatprep.subr.bf16.mxu1 %v12925_v24  ;;  %v3441_v12 = vpop.f32.mrb[29].mxu1  ;;  %v2739_v4 = vadd.f32 %v12914_v7, %v9775_v31  ;;  %v2696_v50 = vpop.f32.mrb[31].mxu0  ;;  %v3486_v42 = vadd.f32 %v12914_v7, %v9870_v13  ;;  %v2754_v33 = vmax.f32 %v2738_v19, 0.0  ;;  %v12982_v32 = vld [vmem:[#allocation3 + $0xcc] sm:$0xf]  ;;  %v13755_v22 = vcombine.low %v12676_v28, %v12697_v34  ;;  %v10970_v28 = vld [vmem:[#allocation2 + $0x5c] sm:$0xff]  }
 0x21d   : > { %10111 = vmatpush3.bf16.msra.mxu0 %v10959_v52  ;;  %9006 = vst [vmem:[#allocation3 + $0xe8] sm:$0xff] %v8809_v46   ;;  %v2752_v40 = vmax.f32 %v2736_v6, 0.0  ;;  %v3484_v48 = vadd.f32 %v12914_v7, %v3441_v12  ;;  %v9871_v0 = vpop.f32.mrb[30].mxu1  ;;  %v2737_v38 = vadd.f32 %v12914_v7, %v2696_v50  ;;  %v13756_v26 = vcombine.low %v12712_v55, %v12703_v45  ;;  %v10972_v34 = vld [vmem:[%s13706_s5 + $0x30] sm:$0xff]   ;;  %v13000_v30 = vld [vmem:[#allocation3 + $0x9c] sm:$0xf] }
 0x21e   : > { %10128 = vmatprep.subr.bf16.mxu0 %v10963_v29  ;;  %v2755_v15 = vmax.f32 %v2739_v4, 0.0  ;;  %v3487_v1 = vadd.f32 %v12914_v7, %v9871_v0  ;;  %v3444_v9 = vpop.f32.mrb[31].mxu1  ;;  %v3502_v21 = vmax.f32 %v3486_v42, 0.0  ;;  %v5044_v25 = vld [vmem:[#allocation3 + $0x80] sm:$0xf]  ;;  %v10973_v45 = vld [vmem:[%s13704_s3 + $0x58] sm:$0xff]  }
 0x21f   : > { %10231 = vmatpush3.bf16.msra.mxu1 %v12925_v24  ;;  %v8779_v47 = vpack.c.bf16 %v2752_v40, %v2751_v62  ;;  %v3500_v11 = vmax.f32 %v3484_v48, 0.0  ;;  %v2753_v14 = vmax.f32 %v2737_v38, 0.0  ;;  %v3485_v52 = vadd.f32 %v12914_v7, %v3444_v9  ;;  %v10975_v19 = vld [vmem:[#allocation2 + $0x64] sm:$0xff]   ;;  %v10974_v31 = vld [vmem:[%s13706_s5 + $0x38] sm:$0xff]   ;;  %v10976_v12 = vld [vmem:[#allocation2 + $0x6c] sm:$0xff]  }
 0x220   : > { %10113 = vmatmul.mubr.bf16.vlgmr.msra.gmra.mrb[48].mxu0 %v10962_v18  ;;  %10232 = vmatprep.subr.bf16.mxu1 %v10965_v5  ;;  %v8600_v63 = vpack.c.bf16 %v2755_v15, %v2755_v15  ;;  %v3503_v54 = vmax.f32 %v3487_v1, 0.0  ;;  %v12992_v3 = vld [vmem:[#allocation3 + $0xa0] sm:$0xf]  ;;  %v8289_v6 = vcombine.low %v12719_v2, %v5044_v25  ;;  %v13024_v2 = vld [vmem:[#allocation3 + $0xa4] sm:$0xf]  ;;  %v10983_v42 = vld [vmem:[#allocation2 + $0x74] sm:$0xff]  }
 0x221   : > { %10129 = vmatpush3.bf16.msra.mxu0 %v10963_v29  ;;  %10116 = vmatprep.mubr.bf16.mxu0 %v10969_v8  ;;  %9000 = vst [vmem:[#allocation3 + $0xb0] sm:$0xff] %v8779_v47   ;;  %v8814_v58 = vpack.c.bf16 %v3500_v11, %v3499_v27  ;;  %v8784_v53 = vpack.c.bf16 %v2754_v33, %v2753_v14  ;;  %v3501_v7 = vmax.f32 %v3485_v52, 0.0  ;;  %v10978_v46 = vld [vmem:[#allocation2 + $0x84] sm:$0xff]   ;;  %v10979_v8 = vld [vmem:[#allocation2 + $0x8c] sm:$0xff]   ;;  %v10989_v48 = vld [vmem:[#allocation2 + $0x94] sm:$0xff]  }
 0x222   : > { %10089 = vmatmul.mubr.bf16.gmra.mrb[56].mxu1 %v13755_v22  ;;  %10130 = vmatprep.subr.bf16.mxu0 %v10967_v36  ;;  %2835 = vst [vmem:[#allocation3 + $0xc0] sm:$0xf] %v8600_v63  ;;  %v8616_v41 = vpack.c.bf16 %v3503_v54, %v3503_v54  ;;  %v10977_v62 = vld [vmem:[%s13704_s3 + $0x60] sm:$0xff]   ;;  %v10981_v40 = vld [vmem:[%s13704_s3 + $0x68] sm:$0xff]   ;;  %v10985_v15 = vld [vmem:[%s13704_s3 + $0x70] sm:$0xff]   ;;  %v13142_v25 = vcombine.low %v12992_v3, %v13024_v2 }
 0x223   : > { %10092 = vmatprep.mubr.bf16.mxu1 %v13756_v26  ;;  %10233 = vmatpush3.bf16.msra.mxu1 %v10965_v5  ;;  %9007 = vst [vmem:[#allocation3 + $0xf0] sm:$0xff] %v8814_v58   ;;  %9001 = vst [vmem:[#allocation3 + $0xb8] sm:$0xff] %v8784_v53   ;;  %v8819_v16 = vpack.c.bf16 %v3502_v21, %v3501_v7  ;;  %v13002_v29 = vpop.f32.mrb[32].mxu1  ;;  %v13019_v5 = vld [vmem:[#allocation3 + $0xa8] sm:$0xf]  ;;  %v10980_v4 = vld [vmem:[%s13704_s3 + $0x40] sm:$0xff]  }
 0x224   : > { %10234 = vmatprep.subr.bf16.mxu1 %v10968_v56  ;;  %3583 = vst [vmem:[#allocation3 + $0x100] sm:$0xf] %v8616_v41  ;;  %v13009_v23 = vpop.f32.mrb[33].mxu1  ;;  %v10982_v38 = vld [vmem:[%s13704_s3 + $0x48] sm:$0xff]   ;;  %v5649_v33 = vld [vmem:[#allocation3 + $0x80] sm:$0x8] }
 0x225   : > { %10131 = vmatpush3.bf16.msra.mxu0 %v10967_v36  ;;  %9008 = vst [vmem:[#allocation3 + $0xf8] sm:$0xff] %v8819_v16   ;;  %v13011_v13 = vpop.f32.mrb[34].mxu1  ;;  %v13041_v36 = vcombine.low %v12920_v37, %v12933_v60  ;;  %v8347_v1 = vcombine.low %v5649_v33, %v12928_v20  ;;  %v10984_v11 = vld [vmem:[#allocation2 + $0x7c] sm:$0xff]   ;;  %v10991_v14 = vld [vmem:[%s13704_s3 + $0x50] sm:$0xff]   ;;  %v11001_v55 = vld [vmem:[%s13704_s3 + $0x68] sm:$0xff]  }
 0x226   : > { %10132 = vmatprep.subr.bf16.mxu0 %v10971_v49  ;;  %v13017_v18 = vpop.f32.mrb[35].mxu1  ;;  %v10990_v54 = vld [vmem:[#allocation2 + $0x9c] sm:$0xff]   ;;  %v13061_v21 = vld [vmem:[#allocation3 + $0xac] sm:$0xf]  ;;  %v11005_v41 = vld [vmem:[#allocation2 + $0xb4] sm:$0xff]  }
 0x227   : > { %10235 = vmatpush3.bf16.msra.mxu1 %v10968_v56  ;;  %v5711_v63 = vrot.slane %v13041_v36, 3  ;;  %v13063_v58 = vld [vmem:[#allocation3 + $0xd8] sm:$0xf]  ;;  %v5710_v16 = vrot.slane %v8347_v1, 3  ;;  %v10995_v1 = vld [vmem:[%s13704_s3] sm:$0xff]  }
 0x228   : > { %10117 = vmatmul.mubr.bf16.gmra.mrb[52].mxu0 %v10970_v28  ;;  %10236 = vmatprep.subr.bf16.mxu1 %v10972_v34  ;;  %v13049_v9 = vld [vmem:[#allocation3 + $0xb0] sm:$0xf]  ;;  %v10992_v7 = vld [vmem:[%s13704_s3 + $0x78] sm:$0xff]   ;;  %v13078_v28 = vld [vmem:[#allocation3 + $0xe0] sm:$0xf] }
 0x229   : > { %10133 = vmatpush3.bf16.msra.mxu0 %v10971_v49  ;;  %10120 = vmatprep.mubr.bf16.mxu0 %v10975_v19  ;;  %v13070_v22 = vld [vmem:[#allocation3 + $0xb4] sm:$0xf]  ;;  %v6661_v51 = vld [vmem:[#allocation3 + $0xc0] sm:$0x8] }
 0x22a   : > { %10093 = vmatmul.mubr.bf16.gmra.mrb[60].mxu1 %v8289_v6  ;;  %10134 = vmatprep.subr.bf16.mxu0 %v10973_v45  ;;  %v13056_v52 = vld [vmem:[#allocation3 + $0xb8] sm:$0xf]  ;;  %v13072_v49 = vld [vmem:[#allocation3 + $0xd4] sm:$0xf]  ;;  %v10997_v6 = vld [vmem:[#allocation2 + $0xa4] sm:$0xff]   ;;  %v13175_v61 = vcombine.low %v13049_v9, %v13070_v22 }
 0x22b   : > { %10237 = vmatpush3.bf16.msra.mxu1 %v10972_v34  ;;  %10240 = vmatprep.mubr.bf16.mxu1 %v10978_v46  ;;  %v13034_v0 = vpop.f32.mrb[36].mxu1  ;;  %v13080_v34 = vld [vmem:[#allocation3 + $0xe8] sm:$0xf]  ;;  %v13091_v46 = vcombine.low %v12935_v59, %v12954_v39 }
 0x22c   : > { %10238 = vmatprep.subr.bf16.mxu1 %v10974_v31  ;;  %v13043_v27 = vpop.f32.mrb[37].mxu1 }
 0x22d   : > { %10135 = vmatpush3.bf16.msra.mxu0 %v10973_v45  ;;  %v13051_v47 = vpop.f32.mrb[38].mxu1  ;;  %v10993_v45 = vld [vmem:[%s13704_s3 + $0x58] sm:$0xff]  }
 0x22e   : > { %10136 = vmatprep.subr.bf16.mxu0 %v10977_v62  ;;  %v13058_v56 = vpop.f32.mrb[39].mxu1 }
 0x22f   : > { %10239 = vmatpush3.bf16.msra.mxu1 %v10974_v31  ;;  %13757 = vst [vmem:[#allocation9_spill] sm:$0xff] %v13058_v56  ;;  %v13093_v31 = vld [vmem:[#allocation3 + $0xdc] sm:$0xf] }
 0x230   : > { %10121 = vmatmul.mubr.bf16.gmra.mrb[56].mxu0 %v10976_v12  ;;  %10256 = vmatprep.subr.bf16.mxu1 %v10980_v4 }
 0x231   : > { %10137 = vmatpush3.bf16.msra.mxu0 %v10977_v62  ;;  %10124 = vmatprep.mubr.bf16.mxu0 %v10983_v42  ;;  %v13104_v42 = vld [vmem:[#allocation3 + $0xe4] sm:$0xf] }
 0x232   : > { %10241 = vmatmul.mubr.bf16.vlgmr.msra.gmra.mrb[64].mxu1 %v10979_v8  ;;  %10138 = vmatprep.subr.bf16.mxu0 %v10981_v40  ;;  %v13102_v8 = vcombine.low %v12956_v10, %v13000_v30 }
 0x233   : > { %10257 = vmatpush3.bf16.msra.mxu1 %v10980_v4  ;;  %10244 = vmatprep.mubr.bf16.mxu1 %v10989_v48  ;;  %v13065_v53 = vpop.f32.mrb[40].mxu1  ;;  %v5712_v4 = vsel %vm677_vm1, %v5710_v16, %v5711_v63  ;;  %v13108_v48 = vld [vmem:[#allocation3 + $0xf8] sm:$0xf]  ;;  %v13119_v16 = vld [vmem:[#allocation3 + $0xf4] sm:$0xf] }
 0x234   : > { %10258 = vmatprep.subr.bf16.mxu1 %v10982_v38  ;;  %13758 = vst [vmem:[#allocation10_spill] sm:$0xff] %v13065_v53  ;;  %v13076_v26 = vpop.f32.mrb[41].mxu1  ;;  %v13216_v53 = vcombine.low %v13078_v28, %v13104_v42 }
 0x235   : > { %10139 = vmatpush3.bf16.msra.mxu0 %v10981_v40  ;;  %13759 = vst [vmem:[#allocation11_spill] sm:$0xff] %v13076_v26  ;;  %v13084_v19 = vpop.f32.mrb[42].mxu1  ;;  %v13106_v40 = vld [vmem:[#allocation3 + $0xf0] sm:$0xf]  ;;  %v5616_v26 = vld [vmem:[#allocation3 + $0x80] sm:$0xc] }
 0x236   : > { %10140 = vmatprep.subr.bf16.mxu0 %v10985_v15  ;;  %13760 = vst [vmem:[#allocation12_spill] sm:$0xff] %v13084_v19  ;;  %v13097_v12 = vpop.f32.mrb[43].mxu1  ;;  %v11021_v19 = vld [vmem:[#allocation3 + $0xc0] ss:$0 sps:$4 sm:$0x77]  }
 0x237   : > { %10259 = vmatpush3.bf16.msra.mxu1 %v10982_v38  ;;  %13761 = vst [vmem:[#allocation13_spill] sm:$0xff] %v13097_v12  ;;  %v10999_v38 = vld [vmem:[%s13704_s3 + $0x60] sm:$0xff]  }
 0x238   : > { %10125 = vmatmul.mubr.bf16.gmra.mrb[60].mxu0 %v10984_v11  ;;  %10260 = vmatprep.subr.bf16.mxu1 %v10991_v14  ;;  %v13117_v11 = vld [vmem:[#allocation3 + $0xec] sm:$0xf] }
 0x239   : > { %10141 = vmatpush3.bf16.msra.mxu0 %v10985_v15  ;;  %10144 = vmatprep.mubr.bf16.mxu0 %v5712_v4  ;;  %v5713_v15 = vrot.slane %v13091_v46, 3  ;;  %v11000_v4 = vld [vmem:[%s13704_s3 + $0x8] sm:$0xff]  }
 0x23a   : > { %10245 = vmatmul.mubr.bf16.gmra.mrb[68].mxu1 %v10990_v54  ;;  %10142 = vmatprep.subr.bf16.mxu0 %v10992_v7  ;;  %v5715_v54 = vrot.slane %v13102_v8, 3 }
 0x23b   : > { %10261 = vmatpush3.bf16.msra.mxu1 %v10991_v14  ;;  %10248 = vmatprep.mubr.bf16.mxu1 %v10997_v6  ;;  %v13130_v62 = vpop.f32.mrb[44].mxu1  ;;  %v10998_v6 = vld [vmem:[#allocation2 + $0xac] sm:$0xff]   ;;  %v5714_v33 = vsel %vm677_vm1, %v5711_v63, %v5713_v15 }
 0x23c   : > { %10262 = vmatprep.subr.bf16.mxu1 %v10993_v45  ;;  %13762 = vst [vmem:[#allocation14_spill] sm:$0xff] %v13130_v62  ;;  %v13132_v14 = vpop.f32.mrb[45].mxu1  ;;  %v5716_v50 = vsel %vm677_vm1, %v5713_v15, %v5715_v54  ;;  %v11003_v63 = vld [vmem:[%s13704_s3 + $0x10] sm:$0xff]   ;;  %v5717_v15 = vrot.slane %v13142_v25, 3 }
 0x23d   : > { %10143 = vmatpush3.bf16.msra.mxu0 %v10992_v7  ;;  %13763 = vst [vmem:[#allocation15_spill] sm:$0xff] %v13132_v14  ;;  %v13137_v24 = vpop.f32.mrb[46].mxu1 }
 0x23e   : > { %10160 = vmatprep.subr.bf16.mxu0 %v10995_v1  ;;  %13764 = vst [vmem:[#allocation16_spill] sm:$0xff] %v13137_v24  ;;  %v13144_v7 = vpop.f32.mrb[47].mxu1  ;;  %v5718_v57 = vsel %vm677_vm1, %v5715_v54, %v5717_v15  ;;  %v11014_v54 = vld [vmem:[%s13704_s3 + $0x20] sm:$0xff]  }
 0x23f   : > { %10263 = vmatpush3.bf16.msra.mxu1 %v10993_v45  ;;  %13765 = vst [vmem:[#allocation17_spill] sm:$0xff] %v13144_v7  ;;  %v13152_v45 = vcombine.low %v13019_v5, %v13061_v21 }
 0x240   : > { %10145 = vmatmul.mubr.bf16.vlgmr.msra.gmra.mrb[64].mxu0 %v5714_v33  ;;  %10264 = vmatprep.subr.bf16.mxu1 %v10999_v38  ;;  %v8455_v33 = vcombine.low %v6661_v51, %v12947_v43  ;;  %v11006_v51 = vld [vmem:[#allocation2 + $0xbc] sm:$0xff]  }
 0x241   : > { %10148 = vmatprep.mubr.bf16.mxu0 %v5716_v50  ;;  %10161 = vmatpush3.bf16.msra.mxu0 %v10995_v1  ;;  %v5719_v35 = vrot.slane %v13152_v45, 3  ;;  %v11007_v50 = vld [vmem:[%s13704_s3 + $0x70] sm:$0xff]   ;;  %v13165_v1 = vcombine.low %v12930_v17, %v12982_v32 }
 0x242   : > { %10249 = vmatmul.mubr.bf16.gmra.mrb[72].mxu1 %v10998_v6  ;;  %10162 = vmatprep.subr.bf16.mxu0 %v11000_v4  ;;  %v13167_v6 = vld [vmem:[#allocation3 + $0xbc] sm:$0xf] }
 0x243   : > { %10265 = vmatpush3.bf16.msra.mxu1 %v10999_v38  ;;  %10252 = vmatprep.mubr.bf16.mxu1 %v11005_v41  ;;  %v6722_v38 = vrot.slane %v8455_v33, 3  ;;  %v11011_v41 = vld [vmem:[%s13704_s3 + $0x18] sm:$0xff]   ;;  %v5720_v7 = vsel %vm677_vm1, %v5717_v15, %v5719_v35  ;;  %v13184_v24 = vcombine.low %v13056_v52, %v13167_v6  ;;  %v13196_v15 = vcombine.low %v13063_v58, %v13093_v31 }
 0x244   : > { %10266 = vmatprep.subr.bf16.mxu1 %v11001_v55  ;;  %v11012_v33 = vld [vmem:[%s13704_s3 + $0x78] sm:$0xff]  }
 0x245   : > { %10163 = vmatpush3.bf16.msra.mxu0 %v11000_v4  ;;  %v6723_v4 = vrot.slane %v13165_v1, 3  ;;  %v6727_v14 = vrot.slane %v13196_v15, 3 }
 0x246   : > { %10164 = vmatprep.subr.bf16.mxu0 %v11003_v63 }
 0x247   : > { %10267 = vmatpush3.bf16.msra.mxu1 %v11001_v55  ;;  %v13188_v55 = vcombine.low %v12974_v44, %v13072_v49 }
 0x248   : > { %10149 = vmatmul.mubr.bf16.gmra.mrb[68].mxu0 %v5718_v57  ;;  %10268 = vmatprep.subr.bf16.mxu1 %v11007_v50  ;;  %v6724_v57 = vsel %vm677_vm1, %v6722_v38, %v6723_v4 }
 0x249   : > { %10152 = vmatprep.mubr.bf16.mxu0 %v5720_v7  ;;  %10165 = vmatpush3.bf16.msra.mxu0 %v11003_v63  ;;  %v5721_v7 = vrot.slane %v13175_v61, 3  ;;  %v5723_v63 = vrot.slane %v13184_v24, 3  ;;  %v6725_v38 = vrot.slane %v13188_v55, 3 }
 0x24a   : > { %10253 = vmatmul.mubr.bf16.gmra.mrb[76].mxu1 %v11006_v51  ;;  %10166 = vmatprep.subr.bf16.mxu0 %v11011_v41  ;;  %v11017_v51 = vld [vmem:[%s13704_s3] sm:$0xff]  }
 0x24b   : > { %10269 = vmatpush3.bf16.msra.mxu1 %v11007_v50  ;;  %10272 = vmatprep.mubr.bf16.mxu1 %v6724_v57  ;;  %v11019_v50 = vld [vmem:[%s13704_s3 + $0x28] sm:$0xff]   ;;  %v5722_v57 = vsel %vm677_vm1, %v5719_v35, %v5721_v7  ;;  %v5724_v62 = vsel %vm677_vm1, %v5721_v7, %v5723_v63  ;;  %v6726_v12 = vsel %vm677_vm1, %v6723_v4, %v6725_v38  ;;  %v5887_v4 = vrot.slane %v13041_v36, 2  ;;  %v13237_v36 = vld [vmem:[#allocation3 + $0xfc] sm:$0xf] }
 0x24c   : > { %10270 = vmatprep.subr.bf16.mxu1 %v11012_v33  ;;  %v6728_v35 = vsel %vm677_vm1, %v6725_v38, %v6727_v14  ;;  %v8364_v7 = vcombine.low %v5616_v26, %v12928_v20  ;;  %v6729_v38 = vrot.slane %v13216_v53, 3 }
 0x24d   : > { %10167 = vmatpush3.bf16.msra.mxu0 %v11011_v41  ;;  %v11020_v41 = vld [vmem:[%s13704_s3 + $0x8] sm:$0xff]  }
 0x24e   : > { %10168 = vmatprep.subr.bf16.mxu0 %v11014_v54 }
 0x24f   : > { %10271 = vmatpush3.bf16.msra.mxu1 %v11012_v33  ;;  %v11022_v33 = vld [vmem:[%s13704_s3 + $0x30] sm:$0xff]  }
 0x250   : > { %10153 = vmatmul.mubr.bf16.gmra.mrb[72].mxu0 %v5722_v57  ;;  %10288 = vmatprep.subr.bf16.mxu1 %v11017_v51  ;;  %v5886_v57 = vrot.slane %v8364_v7, 2  ;;  %v13246_v7 = vcombine.low %v13106_v40, %v13119_v16 }
 0x251   : > { %10156 = vmatprep.mubr.bf16.mxu0 %v5724_v62  ;;  %10169 = vmatpush3.bf16.msra.mxu0 %v11014_v54  ;;  %v13225_v62 = vcombine.low %v13080_v34, %v13117_v11  ;;  %v5725_v54 = vrot.slane %v11021_v19, 3  ;;  %v11028_v19 = vld [vmem:[%s13704_s3 + $0x18] sm:$0xff]  }
 0x252   : > { %10273 = vmatmul.mubr.bf16.vlgmr.msra.gmra.mrb[80].mxu1 %v6726_v12  ;;  %10170 = vmatprep.subr.bf16.mxu0 %v11019_v50  ;;  %v11025_v12 = vld [vmem:[%s13704_s3 + $0x10] sm:$0xff]   ;;  %v5888_v56 = vsel %vm854_vm2, %v5886_v57, %v5887_v4 }
 0x253   : > { %10276 = vmatprep.mubr.bf16.mxu1 %v6728_v35  ;;  %10289 = vmatpush3.bf16.msra.mxu1 %v11017_v51  ;;  %v6731_v26 = vrot.slane %v13225_v62, 3  ;;  %v11027_v35 = vld [vmem:[%s13704_s3 + $0x38] sm:$0xff]   ;;  %v5726_v51 = vsel %vm677_vm1, %v5723_v63, %v5725_v54  ;;  %v13254_v54 = vcombine.low %v13108_v48, %v13237_v36 }
 0x254   : > { %10290 = vmatprep.subr.bf16.mxu1 %v11020_v41 }
 0x255   : > { %10171 = vmatpush3.bf16.msra.mxu0 %v11019_v50  ;;  %v6730_v50 = vsel %vm677_vm1, %v6727_v14, %v6729_v38  ;;  %v6732_v63 = vsel %vm677_vm1, %v6729_v38, %v6731_v26  ;;  %v5891_v14 = vrot.slane %v13102_v8, 2  ;;  %v6733_v38 = vrot.slane %v13246_v7, 3 }
 0x256   : > { %10172 = vmatprep.subr.bf16.mxu0 %v11022_v33  ;;  %v6735_v57 = vrot.slane %v13254_v54, 3 }
 0x257   : > { %10291 = vmatpush3.bf16.msra.mxu1 %v11020_v41  ;;  %v11029_v41 = vld [vmem:[%s13704_s3 + $0x80] sm:$0xff]  }
 0x258   : > { %10157 = vmatmul.mubr.bf16.gmra.mrb[76].mxu0 %v5726_v51  ;;  %10292 = vmatprep.subr.bf16.mxu1 %v11025_v12  ;;  %v11033_v51 = vld [vmem:[%s13704_s3 + $0x88] sm:$0xff]  }
 0x259   : > { %10173 = vmatpush3.bf16.msra.mxu0 %v11022_v33  ;;  %10176 = vmatprep.mubr.bf16.mxu0 %v5888_v56  ;;  %v5889_v56 = vrot.slane %v13091_v46, 2  ;;  %v11031_v33 = vld [vmem:[%s13704_s3 + $0x20] sm:$0xff]  }
 0x25a   : > { %10277 = vmatmul.mubr.bf16.gmra.mrb[84].mxu1 %v6730_v50  ;;  %10174 = vmatprep.subr.bf16.mxu0 %v11027_v35  ;;  %v6734_v50 = vsel %vm677_vm1, %v6731_v26, %v6733_v38  ;;  %v11037_v26 = vld [vmem:[%s13704_s3 + $0x30] sm:$0xff]  }
 0x25b   : > { %10280 = vmatprep.mubr.bf16.mxu1 %v6732_v63  ;;  %10293 = vmatpush3.bf16.msra.mxu1 %v11025_v12  ;;  %v5890_v46 = vsel %vm854_vm2, %v5887_v4, %v5889_v56  ;;  %v6628_v12 = vld [vmem:[#allocation3 + $0xc0] sm:$0xc]  ;;  %v5892_v8 = vsel %vm854_vm2, %v5889_v56, %v5891_v14  ;;  %v6736_v63 = vsel %vm677_vm1, %v6733_v38, %v6735_v57  ;;  %v11035_v4 = vld [vmem:[%s13704_s3 + $0x90] sm:$0xff]   ;;  %v5893_v56 = vrot.slane %v13142_v25, 2 }
 0x25c   : > { %10294 = vmatprep.subr.bf16.mxu1 %v11028_v19 }
 0x25d   : > { %10175 = vmatpush3.bf16.msra.mxu0 %v11027_v35  ;;  %v11034_v35 = vld [vmem:[%s13704_s3 + $0x28] sm:$0xff]  }
 0x25e   : > { %10192 = vmatprep.subr.bf16.mxu0 %v11029_v41 }
 0x25f   : > { %10295 = vmatpush3.bf16.msra.mxu1 %v11028_v19  ;;  %v8472_v19 = vcombine.low %v6628_v12, %v12947_v43 }
 0x260   : > { %10177 = vmatmul.mubr.bf16.vlgmr.msra.gmra.mrb[64].mxu0 %v5890_v46  ;;  %10296 = vmatprep.subr.bf16.mxu1 %v11031_v33  ;;  %v11036_v46 = vld [vmem:[#allocation3 + $0x100] ss:$0 sps:$4 sm:$0x77]  }
 0x261   : > { %10180 = vmatprep.mubr.bf16.mxu0 %v5892_v8  ;;  %10193 = vmatpush3.bf16.msra.mxu0 %v11029_v41  ;;  %v5895_v41 = vrot.slane %v13152_v45, 2  ;;  %v6898_v38 = vrot.slane %v8472_v19, 2  ;;  %v11039_v8 = vld [vmem:[%s13704_s3 + $0x98] sm:$0xff]   ;;  %v6737_v12 = vrot.slane %v11036_v46, 3  ;;  %v6899_v45 = vrot.slane %v13165_v1, 2  ;;  %v11044_v46 = vld [vmem:[%s13704_s3 + $0x88] sm:$0xff]  }
 0x262   : > { %10281 = vmatmul.mubr.bf16.gmra.mrb[88].mxu1 %v6734_v50  ;;  %10194 = vmatprep.subr.bf16.mxu0 %v11033_v51  ;;  %v5897_v1 = vrot.slane %v13175_v61, 2  ;;  %v6903_v19 = vrot.slane %v13196_v15, 2  ;;  %v11045_v15 = vld [vmem:[#allocation3 + $0xc0] ss:$0 sps:$4 sm:$0x33]  }
 0x263   : > { %10284 = vmatprep.mubr.bf16.mxu1 %v6736_v63  ;;  %10297 = vmatpush3.bf16.msra.mxu1 %v11031_v33  ;;  %v5894_v33 = vsel %vm854_vm2, %v5891_v14, %v5893_v56  ;;  %v5896_v25 = vsel %vm854_vm2, %v5893_v56, %v5895_v41  ;;  %v6738_v50 = vsel %vm677_vm1, %v6735_v57, %v6737_v12  ;;  %v11041_v14 = vld [vmem:[%s13704_s3 + $0xa0] sm:$0xff]   ;;  %v5899_v63 = vrot.slane %v13184_v24, 2  ;;  %v11043_v56 = vld [vmem:[%s13704_s3 + $0xa8] sm:$0xff]  }
 0x264   : > { %10298 = vmatprep.subr.bf16.mxu1 %v11034_v35  ;;  %v6901_v57 = vrot.slane %v13188_v55, 2  ;;  %v5898_v61 = vsel %vm854_vm2, %v5895_v41, %v5897_v1  ;;  %v11046_v41 = vld [vmem:[%s13704_s3 + $0xb0] sm:$0xff]   ;;  %v6907_v12 = vrot.slane %v13225_v62, 2 }
 0x265   : > { %10195 = vmatpush3.bf16.msra.mxu0 %v11033_v51  ;;  %v11040_v51 = vld [vmem:[%s13704_s3 + $0x38] sm:$0xff]   ;;  %v5900_v24 = vsel %vm854_vm2, %v5897_v1, %v5899_v63  ;;  %v11054_v1 = vld [vmem:[%s13706_s5 + $0x8] sm:$0xff]  }
 0x266   : > { %10196 = vmatprep.subr.bf16.mxu0 %v11035_v4  ;;  %v6902_v55 = vsel %vm854_vm2, %v6899_v45, %v6901_v57 }
 0x267   : > { %10299 = vmatpush3.bf16.msra.mxu1 %v11034_v35  ;;  %v6900_v35 = vsel %vm854_vm2, %v6898_v38, %v6899_v45  ;;  %v11048_v38 = vld [vmem:[%s13704_s3 + $0x90] sm:$0xff]  }
 0x268   : > { %10181 = vmatmul.mubr.bf16.gmra.mrb[68].mxu0 %v5894_v33  ;;  %10300 = vmatprep.subr.bf16.mxu1 %v11037_v26  ;;  %v6905_v33 = vrot.slane %v13216_v53, 2  ;;  %v13766_v53 = vcombine.low %v12928_v20, %v12920_v37  ;;  %v6909_v37 = vrot.slane %v13246_v7, 2  ;;  %v6911_v20 = vrot.slane %v13254_v54, 2 }
 0x269   : > { %10184 = vmatprep.mubr.bf16.mxu0 %v5896_v25  ;;  %10197 = vmatpush3.bf16.msra.mxu0 %v11035_v4  ;;  %v11042_v4 = vld [vmem:[%s13704_s3 + $0x80] sm:$0xff]   ;;  %v11049_v25 = vld [vmem:[%s13704_s3 + $0xb8] sm:$0xff]   ;;  %v13768_v7 = vcombine.low %v12954_v39, %v12956_v10  ;;  %v11060_v39 = vld [vmem:[%s13704_s3 + $0xb0] sm:$0xff]  }
 0x26a   : > { %10285 = vmatmul.mubr.bf16.gmra.mrb[92].mxu1 %v6738_v50  ;;  %10198 = vmatprep.subr.bf16.mxu0 %v11039_v8  ;;  %v6906_v62 = vsel %vm854_vm2, %v6903_v19, %v6905_v33  ;;  %v6908_v50 = vsel %vm854_vm2, %v6905_v33, %v6907_v12  ;;  %v6910_v54 = vsel %vm854_vm2, %v6907_v12, %v6909_v37  ;;  %v11062_v10 = vld [vmem:[%s13706_s5 + $0x18] sm:$0xff]  }
 0x26b   : > { %10301 = vmatpush3.bf16.msra.mxu1 %v11037_v26  ;;  %10304 = vmatprep.mubr.bf16.mxu1 %v6900_v35  ;;  %v6904_v26 = vsel %vm854_vm2, %v6901_v57, %v6903_v19  ;;  %v11051_v35 = vld [vmem:[%s13706_s5] sm:$0xff]   ;;  %v6912_v57 = vsel %vm854_vm2, %v6909_v37, %v6911_v20 }
 0x26c   : > { %10302 = vmatprep.subr.bf16.mxu1 %v11040_v51 }
 0x26d   : > { %10199 = vmatpush3.bf16.msra.mxu0 %v11039_v8  ;;  %v5901_v8 = vrot.slane %v11045_v15, 2  ;;  %v13775_v15 = vcombine.low %v13072_v49, %v13063_v58  ;;  %v13777_v58 = vcombine.low %v13104_v42, %v13080_v34  ;;  %v11078_v49 = vld [vmem:[#allocation2 + $0xd4] sm:$0xff]   ;;  %v11082_v42 = vld [vmem:[#allocation2 + $0xec] sm:$0xff]  }
 0x26e   : > { %10200 = vmatprep.subr.bf16.mxu0 %v11041_v14 }
 0x26f   : > { %10303 = vmatpush3.bf16.msra.mxu1 %v11040_v51  ;;  %v5902_v45 = vsel %vm854_vm2, %v5899_v63, %v5901_v8  ;;  %v11050_v51 = vld [vmem:[%s13704_s3 + $0x98] sm:$0xff]   ;;  %v13767_v63 = vcombine.low %v12933_v60, %v12935_v59  ;;  %v11057_v60 = vld [vmem:[%s13706_s5 + $0x10] sm:$0xff]   ;;  %v11059_v59 = vld [vmem:[#allocation3 + $0x100] ss:$0 sps:$4 sm:$0x33]  }
 0x270   : > { %10185 = vmatmul.mubr.bf16.gmra.mrb[72].mxu0 %v5898_v61  ;;  %10320 = vmatprep.subr.bf16.mxu1 %v11042_v4  ;;  %v6913_v19 = vrot.slane %v11059_v59, 2  ;;  %v11063_v61 = vld [vmem:[%s13704_s3 + $0xb8] sm:$0xff]  }
 0x271   : > { %10188 = vmatprep.mubr.bf16.mxu0 %v5900_v24  ;;  %10201 = vmatpush3.bf16.msra.mxu0 %v11041_v14  ;;  %v11053_v14 = vld [vmem:[%s13704_s3 + $0xa0] sm:$0xff]   ;;  %v13770_v24 = vcombine.low %v13024_v2, %v13019_v5  ;;  %v13772_v5 = vcombine.low %v13061_v21, %v13049_v9  ;;  %v13773_v2 = vcombine.low %v13070_v22, %v13056_v52  ;;  %v11075_v22 = vld [vmem:[#allocation2 + $0xcc] sm:$0xff]  }
 0x272   : > { %10305 = vmatmul.mubr.bf16.vlgmr.msra.gmra.mrb[80].mxu1 %v6902_v55  ;;  %10202 = vmatprep.subr.bf16.mxu0 %v11043_v56  ;;  %v11065_v55 = vld [vmem:[%s13706_s5 + $0x20] sm:$0xff]  }
 0x273   : > { %10308 = vmatprep.mubr.bf16.mxu1 %v6904_v26  ;;  %10321 = vmatpush3.bf16.msra.mxu1 %v11042_v4  ;;  %v11055_v4 = vld [vmem:[%s13704_s3 + $0xa8] sm:$0xff]   ;;  %v6056_v9 = vld [vmem:[#allocation3 + $0xc0] sm:$0xf]  ;;  %v13779_v26 = vcombine.low %v13119_v16, %v13108_v48  ;;  %v11084_v8 = vld [vmem:[#allocation2 + $0xfc] sm:$0xff]  }
 0x274   : > { %10322 = vmatprep.subr.bf16.mxu1 %v11044_v46  ;;  %v11074_v21 = vld [vmem:[#allocation2 + $0xc4] sm:$0xff]   ;;  %v8397_v52 = vcombine.low %v13167_v6, %v6056_v9  ;;  %v13778_v6 = vcombine.low %v13117_v11, %v13106_v40  ;;  %v13418_v40 = vld [vmem:[%s13705_s4] ss:$0 sm:$0xff] }
 0x275   : > { %10203 = vmatpush3.bf16.msra.mxu0 %v11043_v56  ;;  %v13769_v56 = vcombine.low %v13000_v30, %v12992_v3  ;;  %v13771_v3 = vcombine.low %v12947_v43, %v12930_v17  ;;  %v11068_v30 = vld [vmem:[%s13706_s5 + $0x28] sm:$0xff]   ;;  %v13774_v17 = vcombine.low %v12982_v32, %v12974_v44  ;;  %v11070_v43 = vld [vmem:[%s13706_s5 + $0x30] sm:$0xff]   ;;  %v11073_v44 = vld [vmem:[%s13706_s5 + $0x38] sm:$0xff]   ;;  %v13776_v32 = vcombine.low %v13093_v31, %v13078_v28 }
 0x276   : > { %10204 = vmatprep.subr.bf16.mxu0 %v11046_v41  ;;  %v11079_v28 = vld [vmem:[#allocation2 + $0xdc] sm:$0xff]   ;;  %v7068_v31 = vld [vmem:[#allocation3 + $0x100] sm:$0xf] }
 0x277   : > { %10323 = vmatpush3.bf16.msra.mxu1 %v11044_v46  ;;  %v6914_v46 = vsel %vm854_vm2, %v6911_v20, %v6913_v19  ;;  %v8505_v34 = vcombine.low %v13237_v36, %v7068_v31  ;;  %v13423_v48 = vld [vmem:[%s13707_s6] ss:$0 sm:$0xff] }
 0x278   : > { %10189 = vmatmul.mubr.bf16.gmra.mrb[76].mxu0 %v5902_v45  ;;  %10324 = vmatprep.subr.bf16.mxu1 %v11048_v38 }
 0x279   : > { %10205 = vmatpush3.bf16.msra.mxu0 %v11046_v41  ;;  %10208 = vmatprep.mubr.bf16.mxu0 %v13766_v53  ;;  %v11081_v41 = vld [vmem:[#allocation2 + $0xe4] sm:$0xff]  }
 0x27a   : > { %10309 = vmatmul.mubr.bf16.gmra.mrb[84].mxu1 %v6906_v62  ;;  %10206 = vmatprep.subr.bf16.mxu0 %v11049_v25  ;;  %v4430_v62 = vadd.f32 %v13423_v48, %v13009_v23 }
 0x27b   : > { %10312 = vmatprep.mubr.bf16.mxu1 %v6908_v50  ;;  %10325 = vmatpush3.bf16.msra.mxu1 %v11048_v38  ;;  %v11083_v38 = vld [vmem:[#allocation2 + $0xf4] sm:$0xff]  }
 0x27c   : > { %10326 = vmatprep.subr.bf16.mxu1 %v11050_v51 }
 0x27d   : > { %10207 = vmatpush3.bf16.msra.mxu0 %v11049_v25  ;;  %v4438_v25 = vadd.f32 %v13002_v29, %v13423_v48 }
 0x27e   : > { %10352 = vmatprep.subr.bf16.mxu0 %v11051_v35 }
 0x27f   : > { %10327 = vmatpush3.bf16.msra.mxu1 %v11050_v51 }
 0x280   : > { %10209 = vmatmul.mubr.bf16.vlgmr.msra.gmra.mrb[64].mxu0 %v13767_v63  ;;  %10328 = vmatprep.subr.bf16.mxu1 %v11053_v14 }
 0x281   : > { %10212 = vmatprep.mubr.bf16.mxu0 %v13768_v7  ;;  %10353 = vmatpush3.bf16.msra.mxu0 %v11051_v35 }
 0x282   : > { %10313 = vmatmul.mubr.bf16.gmra.mrb[88].mxu1 %v6910_v54  ;;  %10354 = vmatprep.subr.bf16.mxu0 %v11054_v1 }
 0x283   : > { %10316 = vmatprep.mubr.bf16.mxu1 %v6912_v57  ;;  %10329 = vmatpush3.bf16.msra.mxu1 %v11053_v14  ;;  %v4441_v14 = vadd.f32 %v13011_v13, %v13423_v48 }
 0x284   : > { %10330 = vmatprep.subr.bf16.mxu1 %v11055_v4 }
 0x285   : > { %10355 = vmatpush3.bf16.msra.mxu0 %v11054_v1  ;;  %v4433_v1 = vadd.f32 %v13423_v48, %v13017_v18  ;;  %v4454_v18 = vadd.f32 %v13034_v0, %v13423_v48 }
 0x286   : > { %10356 = vmatprep.subr.bf16.mxu0 %v11057_v60 }
 0x287   : > { %10331 = vmatpush3.bf16.msra.mxu1 %v11055_v4 }
 0x288   : > { %10213 = vmatmul.mubr.bf16.gmra.mrb[68].mxu0 %v13769_v56  ;;  %10332 = vmatprep.subr.bf16.mxu1 %v11060_v39 }
 0x289   : > { %10216 = vmatprep.mubr.bf16.mxu0 %v13770_v24  ;;  %10357 = vmatpush3.bf16.msra.mxu0 %v11057_v60 }
 0x28a   : > { %10317 = vmatmul.mubr.bf16.gmra.mrb[92].mxu1 %v6914_v46  ;;  %10358 = vmatprep.subr.bf16.mxu0 %v11062_v10 }
 0x28b   : > { %10333 = vmatpush3.bf16.msra.mxu1 %v11060_v39  ;;  %10336 = vmatprep.mubr.bf16.mxu1 %v13771_v3 }
 0x28c   : > { %10334 = vmatprep.subr.bf16.mxu1 %v11063_v61 }
 0x28d   : > { %10359 = vmatpush3.bf16.msra.mxu0 %v11062_v10 }
 0x28e   : > { %10360 = vmatprep.subr.bf16.mxu0 %v11065_v55 }
 0x28f   : > { %10335 = vmatpush3.bf16.msra.mxu1 %v11063_v61 }
 0x290   : > { %10217 = vmatmul.mubr.bf16.gmra.mrb[72].mxu0 %v13772_v5 }
 0x291   : > { %10220 = vmatprep.mubr.bf16.mxu0 %v13773_v2  ;;  %10361 = vmatpush3.bf16.msra.mxu0 %v11065_v55  ;;  %v4446_v55 = vadd.f32 %v13423_v48, %v13043_v27  ;;  %v4457_v2 = vadd.f32 %v13051_v47, %v13423_v48 }
 0x292   : > { %10337 = vmatmul.mubr.bf16.vlgmr.msra.gmra.mrb[80].mxu1 %v13774_v17  ;;  %10362 = vmatprep.subr.bf16.mxu0 %v11068_v30 }
 0x293   : > { %10340 = vmatprep.mubr.bf16.mxu1 %v13775_v15  ;;  %v13780_v15 = vld [vmem:[#allocation9_spill] sm:$0xff] }
 0x294   : > { %v4449_v0 = vadd.f32 %v13423_v48, %v13780_v15 }
 0x295   : > { %10363 = vmatpush3.bf16.msra.mxu0 %v11068_v30 }
 0x296   : > { %10364 = vmatprep.subr.bf16.mxu0 %v11070_v43 }
 0x298   : > { %10221 = vmatmul.mubr.bf16.gmra.mrb[76].mxu0 %v8397_v52 }
 0x299   : > { %10365 = vmatpush3.bf16.msra.mxu0 %v11070_v43  ;;  %10368 = vmatprep.mubr.bf16.mxu0 %v11074_v21 }
 0x29a   : > { %10341 = vmatmul.mubr.bf16.gmra.mrb[84].mxu1 %v13776_v32  ;;  %10366 = vmatprep.subr.bf16.mxu0 %v11073_v44 }
 0x29b   : > { %10344 = vmatprep.mubr.bf16.mxu1 %v13777_v58 }
 0x29d   : > { %10367 = vmatpush3.bf16.msra.mxu0 %v11073_v44 }
 0x2a0   : > { %10369 = vmatmul.mubr.bf16.vlgmr.msra.gmra.mrb[80].mxu0 %v11075_v22 }
 0x2a1   : > { %10372 = vmatprep.mubr.bf16.mxu0 %v11078_v49 }
 0x2a2   : > { %10345 = vmatmul.mubr.bf16.gmra.mrb[88].mxu1 %v13778_v6 }
 0x2a3   : > { %10348 = vmatprep.mubr.bf16.mxu1 %v13779_v26 }
 0x2a8   : > { %10373 = vmatmul.mubr.bf16.gmra.mrb[84].mxu0 %v11079_v28 }
 0x2a9   : > { %10376 = vmatprep.mubr.bf16.mxu0 %v11081_v41  ;;  %v13781_v41 = vld [vmem:[#allocation10_spill] sm:$0xff] }
 0x2aa   : > { %10349 = vmatmul.mubr.bf16.gmra.mrb[92].mxu1 %v8505_v34  ;;  %v4470_v34 = vadd.f32 %v13781_v41, %v13423_v48 }
 0x2b0   : > { %10377 = vmatmul.mubr.bf16.gmra.mrb[88].mxu0 %v11082_v42 }
 0x2b1   : > { %10380 = vmatprep.mubr.bf16.mxu0 %v11083_v38 }
 0x2b8   : > { %10381 = vmatmul.mubr.bf16.gmra.mrb[92].mxu0 %v11084_v8 }
 0x2d3   : > { %v9954_v11 = vpop.f32.mrb[32].mxu0 }
 0x2d4   : > { %v4230_v16 = vadd.f32 %v9954_v11, %v13418_v40  ;;  %v4143_v36 = vpop.f32.mrb[33].mxu0 }
 0x2d5   : > { %v4228_v33 = vadd.f32 %v13418_v40, %v4143_v36  ;;  %v9955_v12 = vpop.f32.mrb[34].mxu0  ;;  %v13782_v36 = vld [vmem:[#allocation11_spill] sm:$0xff] }
 0x2d6   : > { %v4246_v45 = vmax.f32 %v4230_v16, 0.0  ;;  %v4231_v51 = vadd.f32 %v9955_v12, %v13418_v40  ;;  %v4146_v53 = vpop.f32.mrb[35].mxu0 }
 0x2d7   : > { %v4244_v50 = vmax.f32 %v4228_v33, 0.0  ;;  %v4229_v35 = vadd.f32 %v13418_v40, %v4146_v53  ;;  %v4462_v33 = vadd.f32 %v13423_v48, %v13782_v36  ;;  %v13783_v53 = vld [vmem:[#allocation12_spill] sm:$0xff] }
 0x2d8   : > { %v4494_v37 = vadd.f32 %v4438_v25, %v4246_v45  ;;  %v4247_v20 = vmax.f32 %v4231_v51, 0.0 }
 0x2d9   : > { %v4492_v63 = vadd.f32 %v4430_v62, %v4244_v50  ;;  %v4245_v29 = vmax.f32 %v4229_v35, 0.0  ;;  %v4473_v62 = vadd.f32 %v13783_v53, %v13423_v48 }
 0x2da   : > { %v4495_v4 = vadd.f32 %v4441_v14, %v4247_v20  ;;  %v4510_v57 = vmax.f32 %v4494_v37, 0.0  ;;  %v13784_v37 = vld [vmem:[#allocation13_spill] sm:$0xff] }
 0x2db   : > { %v4493_v7 = vadd.f32 %v4433_v1, %v4245_v29  ;;  %v9958_v54 = vpop.f32.mrb[36].mxu0  ;;  %v4508_v39 = vmax.f32 %v4492_v63, 0.0  ;;  %v4465_v20 = vadd.f32 %v13423_v48, %v13784_v37 }
 0x2dc   : > { %v4511_v60 = vmax.f32 %v4495_v4, 0.0  ;;  %v4234_v23 = vadd.f32 %v9958_v54, %v13418_v40  ;;  %v4159_v59 = vpop.f32.mrb[37].mxu0 }
 0x2dd   : > { %v4509_v10 = vmax.f32 %v4493_v7, 0.0  ;;  %v4232_v13 = vadd.f32 %v13418_v40, %v4159_v59  ;;  %v9959_v19 = vpop.f32.mrb[38].mxu0 }
 0x2de   : > { %v8829_v56 = vpack.c.bf16 %v4511_v60, %v4510_v57  ;;  %v4250_v61 = vmax.f32 %v4234_v23, 0.0  ;;  %v4235_v24 = vadd.f32 %v9959_v19, %v13418_v40  ;;  %v4162_v46 = vpop.f32.mrb[39].mxu0 }
 0x2df   : > { %v8824_v3 = vpack.c.bf16 %v4509_v10, %v4508_v39  ;;  %v4248_v30 = vmax.f32 %v4232_v13, 0.0  ;;  %v4233_v5 = vadd.f32 %v13418_v40, %v4162_v46 }
 0x2e0   : > { %9009 = vst [vmem:[%s11312_s11 + $0x8] sm:$0xff] %v8829_v56   ;;  %v4498_v17 = vadd.f32 %v4454_v18, %v4250_v61  ;;  %v4251_v43 = vmax.f32 %v4235_v24, 0.0  ;;  %v13785_v18 = vld [vmem:[#allocation14_spill] sm:$0xff] }
 0x2e1   : > { %8825 = vst [vmem:[%s11312_s11] sm:$0xff] %v8824_v3   ;;  %v4496_v9 = vadd.f32 %v4446_v55, %v4248_v30  ;;  %v4249_v21 = vmax.f32 %v4233_v5, 0.0  ;;  %v4486_v56 = vadd.f32 %v13785_v18, %v13423_v48  ;;  %v13786_v30 = vld [vmem:[#allocation15_spill] sm:$0xff] }
 0x2e2   : > { %v4499_v52 = vadd.f32 %v4457_v2, %v4251_v43  ;;  %v4514_v27 = vmax.f32 %v4498_v17, 0.0  ;;  %v4478_v5 = vadd.f32 %v13423_v48, %v13786_v30 }
 0x2e3   : > { %v4497_v44 = vadd.f32 %v4449_v0, %v4249_v21  ;;  %v9962_v32 = vpop.f32.mrb[40].mxu0  ;;  %v4512_v6 = vmax.f32 %v4496_v9, 0.0  ;;  %v13787_v0 = vld [vmem:[#allocation16_spill] sm:$0xff] }
 0x2e4   : > { %v4515_v58 = vmax.f32 %v4499_v52, 0.0  ;;  %v4238_v22 = vadd.f32 %v9962_v32, %v13418_v40  ;;  %v4175_v49 = vpop.f32.mrb[41].mxu0  ;;  %v4489_v9 = vadd.f32 %v13787_v0, %v13423_v48 }
 0x2e5   : > { %v4513_v26 = vmax.f32 %v4497_v44, 0.0  ;;  %v4236_v47 = vadd.f32 %v13418_v40, %v4175_v49  ;;  %v9963_v28 = vpop.f32.mrb[42].mxu0  ;;  %v10082_v31 = vpop.f32.mrb[48].mxu1 }
 0x2e6   : > { %v8839_v42 = vpack.c.bf16 %v4515_v58, %v4514_v27  ;;  %v4254_v38 = vmax.f32 %v4238_v22, 0.0  ;;  %v4239_v8 = vadd.f32 %v9963_v28, %v13418_v40  ;;  %v4178_v11 = vpop.f32.mrb[43].mxu0  ;;  %v5161_v16 = vpop.f32.mrb[49].mxu1  ;;  %v5242_v21 = vadd.f32 %v10082_v31, %v13418_v40  ;;  %v13788_v27 = vld [vmem:[#allocation17_spill] sm:$0xff] }
 0x2e7   : > { %v8834_v12 = vpack.c.bf16 %v4513_v26, %v4512_v6  ;;  %v4252_v25 = vmax.f32 %v4236_v47, 0.0  ;;  %v4237_v45 = vadd.f32 %v13418_v40, %v4178_v11  ;;  %v10083_v51 = vpop.f32.mrb[50].mxu1  ;;  %v4481_v58 = vadd.f32 %v13423_v48, %v13788_v27 }
 0x2e8   : > { %9011 = vst [vmem:[%s11312_s11 + $0x18] sm:$0xff] %v8839_v42   ;;  %v4502_v50 = vadd.f32 %v4470_v34, %v4254_v38  ;;  %v4255_v35 = vmax.f32 %v4239_v8, 0.0  ;;  %v5164_v14 = vpop.f32.mrb[51].mxu1  ;;  %v5240_v22 = vadd.f32 %v13418_v40, %v5161_v16  ;;  %v5243_v26 = vadd.f32 %v10083_v51, %v13418_v40 }
 0x2e9   : > { %9010 = vst [vmem:[%s11312_s11 + $0x10] sm:$0xff] %v8834_v12   ;;  %v4500_v1 = vadd.f32 %v4462_v33, %v4252_v25  ;;  %v4253_v63 = vmax.f32 %v4237_v45, 0.0  ;;  %v5241_v28 = vadd.f32 %v13418_v40, %v5164_v14  ;;  %v5258_v42 = vmax.f32 %v5242_v21, 0.0 }
 0x2ea   : > { %v4503_v29 = vadd.f32 %v4473_v62, %v4255_v35  ;;  %v4518_v54 = vmax.f32 %v4502_v50, 0.0  ;;  %v5256_v36 = vmax.f32 %v5240_v22, 0.0  ;;  %v5259_v51 = vmax.f32 %v5243_v26, 0.0 }
 0x2eb   : > { %v4501_v4 = vadd.f32 %v4465_v20, %v4253_v63  ;;  %v9966_v7 = vpop.f32.mrb[44].mxu0  ;;  %v4516_v59 = vmax.f32 %v4500_v1, 0.0  ;;  %v5257_v37 = vmax.f32 %v5241_v28, 0.0 }
 0x2ec   : > { %v4519_v57 = vmax.f32 %v4503_v29, 0.0  ;;  %v4242_v60 = vadd.f32 %v9966_v7, %v13418_v40  ;;  %v4191_v23 = vpop.f32.mrb[45].mxu0 }
 0x2ed   : > { %v4517_v39 = vmax.f32 %v4501_v4, 0.0  ;;  %v4240_v10 = vadd.f32 %v13418_v40, %v4191_v23  ;;  %v9967_v13 = vpop.f32.mrb[46].mxu0  ;;  %v10086_v19 = vpop.f32.mrb[52].mxu1 }
 0x2ee   : > { %v8849_v61 = vpack.c.bf16 %v4519_v57, %v4518_v54  ;;  %v4258_v24 = vmax.f32 %v4242_v60, 0.0  ;;  %v4243_v46 = vadd.f32 %v9967_v13, %v13418_v40  ;;  %v4194_v55 = vpop.f32.mrb[47].mxu0  ;;  %v5177_v3 = vpop.f32.mrb[53].mxu1  ;;  %v5246_v4 = vadd.f32 %v10086_v19, %v13418_v40 }
 0x2ef   : > { %v8844_v2 = vpack.c.bf16 %v4517_v39, %v4516_v59  ;;  %v4256_v17 = vmax.f32 %v4240_v10, 0.0  ;;  %v4241_v43 = vadd.f32 %v13418_v40, %v4194_v55  ;;  %v10087_v15 = vpop.f32.mrb[54].mxu1  ;;  %v5244_v57 = vadd.f32 %v13418_v40, %v5177_v3 }
 0x2f0   : > { %9013 = vst [vmem:[%s11312_s11 + $0x28] sm:$0xff] %v8849_v61   ;;  %v4506_v52 = vadd.f32 %v4486_v56, %v4258_v24  ;;  %v4259_v44 = vmax.f32 %v4243_v46, 0.0  ;;  %v5180_v32 = vpop.f32.mrb[55].mxu1  ;;  %v5247_v23 = vadd.f32 %v10087_v15, %v13418_v40  ;;  %v5262_v61 = vmax.f32 %v5246_v4, 0.0 }
 0x2f1   : > { %9012 = vst [vmem:[%s11312_s11 + $0x20] sm:$0xff] %v8844_v2   ;;  %v4504_v49 = vadd.f32 %v4478_v5, %v4256_v17  ;;  %v4257_v6 = vmax.f32 %v4241_v43, 0.0  ;;  %v5245_v10 = vadd.f32 %v13418_v40, %v5180_v32  ;;  %v5260_v55 = vmax.f32 %v5244_v57, 0.0 }
 0x2f2   : > { %v4507_v47 = vadd.f32 %v4489_v9, %v4259_v44  ;;  %v4522_v31 = vmax.f32 %v4506_v52, 0.0  ;;  %v5263_v17 = vmax.f32 %v5247_v23, 0.0 }
 0x2f3   : > { %v4505_v41 = vadd.f32 %v4481_v58, %v4257_v6  ;;  %v10114_v34 = vpop.f32.mrb[48].mxu0  ;;  %v4520_v33 = vmax.f32 %v4504_v49, 0.0  ;;  %v5261_v21 = vmax.f32 %v5245_v10, 0.0 }
 0x2f4   : > { %v4523_v38 = vmax.f32 %v4507_v47, 0.0  ;;  %v5450_v8 = vadd.f32 %v10114_v34, %v13423_v48  ;;  %v5441_v11 = vpop.f32.mrb[49].mxu0 }
 0x2f5   : > { %v4521_v12 = vmax.f32 %v4505_v41, 0.0  ;;  %v5442_v16 = vadd.f32 %v13423_v48, %v5441_v11  ;;  %v10090_v25 = vpop.f32.mrb[56].mxu1  ;;  %v10115_v45 = vpop.f32.mrb[50].mxu0 }
 0x2f6   : > { %v8859_v53 = vpack.c.bf16 %v4523_v38, %v4522_v31  ;;  %v5506_v62 = vadd.f32 %v5450_v8, %v5258_v42  ;;  %v5453_v50 = vadd.f32 %v10115_v45, %v13423_v48  ;;  %v5193_v35 = vpop.f32.mrb[57].mxu1  ;;  %v5444_v14 = vpop.f32.mrb[51].mxu0  ;;  %v5250_v27 = vadd.f32 %v10090_v25, %v13418_v40 }
 0x2f7   : > { %v8854_v20 = vpack.c.bf16 %v4521_v12, %v4520_v33  ;;  %v5504_v1 = vadd.f32 %v5442_v16, %v5256_v36  ;;  %v5445_v63 = vadd.f32 %v13423_v48, %v5444_v14  ;;  %v10091_v29 = vpop.f32.mrb[58].mxu1  ;;  %v5248_v49 = vadd.f32 %v13418_v40, %v5193_v35 }
 0x2f8   : > { %9015 = vst [vmem:[%s11312_s11 + $0x38] sm:$0xff] %v8859_v53   ;;  %v5507_v7 = vadd.f32 %v5453_v50, %v5259_v51  ;;  %v5196_v54 = vpop.f32.mrb[59].mxu1  ;;  %v5522_v59 = vmax.f32 %v5506_v62, 0.0  ;;  %v5251_v26 = vadd.f32 %v10091_v29, %v13418_v40  ;;  %v5266_v38 = vmax.f32 %v5250_v27, 0.0 }
 0x2f9   : > { %9014 = vst [vmem:[%s11312_s11 + $0x30] sm:$0xff] %v8854_v20   ;;  %v5505_v60 = vadd.f32 %v5445_v63, %v5257_v37  ;;  %v5520_v13 = vmax.f32 %v5504_v1, 0.0  ;;  %v5249_v41 = vadd.f32 %v13418_v40, %v5196_v54  ;;  %v5264_v33 = vmax.f32 %v5248_v49, 0.0 }
 0x2fa   : > { %v5523_v39 = vmax.f32 %v5507_v7, 0.0  ;;  %v5267_v51 = vmax.f32 %v5251_v26, 0.0 }
 0x2fb   : > { %v5521_v18 = vmax.f32 %v5505_v60, 0.0  ;;  %v10118_v56 = vpop.f32.mrb[52].mxu0  ;;  %v5265_v14 = vmax.f32 %v5249_v41, 0.0 }
 0x2fc   : > { %v8869_v24 = vpack.c.bf16 %v5523_v39, %v5522_v59  ;;  %v5466_v19 = vadd.f32 %v10118_v56, %v13423_v48  ;;  %v5457_v46 = vpop.f32.mrb[53].mxu0 }
 0x2fd   : > { %v8864_v30 = vpack.c.bf16 %v5521_v18, %v5520_v13  ;;  %v5458_v3 = vadd.f32 %v13423_v48, %v5457_v46  ;;  %v10094_v5 = vpop.f32.mrb[60].mxu1  ;;  %v10119_v2 = vpop.f32.mrb[54].mxu0 }
 0x2fe   : > { %9017 = vst [vmem:[%s11312_s11 + $0x48] sm:$0xff] %v8869_v24   ;;  %v5510_v43 = vadd.f32 %v5466_v19, %v5262_v61  ;;  %v5469_v15 = vadd.f32 %v10119_v2, %v13423_v48  ;;  %v5209_v0 = vpop.f32.mrb[61].mxu1  ;;  %v5460_v9 = vpop.f32.mrb[55].mxu0  ;;  %v5254_v63 = vadd.f32 %v10094_v5, %v13418_v40 }
 0x2ff   : > { %9016 = vst [vmem:[%s11312_s11 + $0x40] sm:$0xff] %v8864_v30   ;;  %v5508_v52 = vadd.f32 %v5458_v3, %v5260_v55  ;;  %v5461_v44 = vadd.f32 %v13423_v48, %v5460_v9  ;;  %v10095_v32 = vpop.f32.mrb[62].mxu1  ;;  %v5252_v7 = vadd.f32 %v13418_v40, %v5209_v0 }
 0x300   : > { %v5511_v58 = vadd.f32 %v5469_v15, %v5263_v17  ;;  %v5212_v22 = vpop.f32.mrb[63].mxu1  ;;  %v5526_v47 = vmax.f32 %v5510_v43, 0.0  ;;  %v5255_v57 = vadd.f32 %v10095_v32, %v13418_v40  ;;  %v5270_v18 = vmax.f32 %v5254_v63, 0.0 }
 0x301   : > { %v5509_v6 = vadd.f32 %v5461_v44, %v5261_v21  ;;  %v5524_v34 = vmax.f32 %v5508_v52, 0.0  ;;  %v5253_v59 = vadd.f32 %v13418_v40, %v5212_v22  ;;  %v5268_v19 = vmax.f32 %v5252_v7, 0.0 }
 0x302   : > { %v5527_v28 = vmax.f32 %v5511_v58, 0.0  ;;  %v5271_v5 = vmax.f32 %v5255_v57, 0.0 }
 0x303   : > { %v5525_v42 = vmax.f32 %v5509_v6, 0.0  ;;  %v10122_v31 = vpop.f32.mrb[56].mxu0  ;;  %v5269_v0 = vmax.f32 %v5253_v59, 0.0 }
 0x304   : > { %v8879_v8 = vpack.c.bf16 %v5527_v28, %v5526_v47  ;;  %v5482_v11 = vadd.f32 %v10122_v31, %v13423_v48  ;;  %v5473_v36 = vpop.f32.mrb[57].mxu0 }
 0x305   : > { %v8874_v12 = vpack.c.bf16 %v5525_v42, %v5524_v34  ;;  %v5474_v16 = vadd.f32 %v13423_v48, %v5473_v36  ;;  %v10123_v25 = vpop.f32.mrb[58].mxu0  ;;  %v13505_v45 = vpop.f32.mrb[64].mxu1 }
 0x306   : > { %9019 = vst [vmem:[%s11312_s11 + $0x58] sm:$0xff] %v8879_v8   ;;  %v5514_v53 = vadd.f32 %v5482_v11, %v5266_v38  ;;  %v5485_v62 = vadd.f32 %v10123_v25, %v13423_v48  ;;  %v5476_v50 = vpop.f32.mrb[59].mxu0  ;;  %v13509_v35 = vpop.f32.mrb[65].mxu1 }
 0x307   : > { %9018 = vst [vmem:[%s11312_s11 + $0x50] sm:$0xff] %v8874_v12   ;;  %v5512_v37 = vadd.f32 %v5474_v16, %v5264_v33  ;;  %v5477_v20 = vadd.f32 %v13423_v48, %v5476_v50  ;;  %v13513_v1 = vpop.f32.mrb[66].mxu1 }
 0x308   : > { %v5515_v29 = vadd.f32 %v5485_v62, %v5267_v51  ;;  %v13516_v4 = vpop.f32.mrb[67].mxu1  ;;  %v5530_v60 = vmax.f32 %v5514_v53, 0.0  ;;  %v6462_v51 = vadd.f32 %v13505_v45, %v13423_v48  ;;  %v6465_v63 = vadd.f32 %v13513_v1, %v13423_v48 }
 0x309   : > { %v5513_v54 = vadd.f32 %v5477_v20, %v5265_v14  ;;  %v5528_v39 = vmax.f32 %v5512_v37, 0.0  ;;  %v6454_v14 = vadd.f32 %v13423_v48, %v13509_v35 }
 0x30a   : > { %v5531_v23 = vmax.f32 %v5515_v29, 0.0 }
 0x30b   : > { %v5529_v10 = vmax.f32 %v5513_v54, 0.0  ;;  %v10126_v13 = vpop.f32.mrb[60].mxu0  ;;  %v6457_v54 = vadd.f32 %v13423_v48, %v13516_v4 }
 0x30c   : > { %v8889_v56 = vpack.c.bf16 %v5531_v23, %v5530_v60  ;;  %v5498_v61 = vadd.f32 %v10126_v13, %v13423_v48  ;;  %v5489_v24 = vpop.f32.mrb[61].mxu0 }
 0x30d   : > { %v8884_v46 = vpack.c.bf16 %v5529_v10, %v5528_v39  ;;  %v5490_v55 = vadd.f32 %v13423_v48, %v5489_v24  ;;  %v10127_v30 = vpop.f32.mrb[62].mxu0  ;;  %v10246_v3 = vpop.f32.mrb[68].mxu1 }
 0x30e   : > { %9021 = vst [vmem:[%s11312_s11 + $0x68] sm:$0xff] %v8889_v56   ;;  %v5518_v2 = vadd.f32 %v5498_v61, %v5270_v18  ;;  %v5501_v17 = vadd.f32 %v10127_v30, %v13423_v48  ;;  %v5492_v43 = vpop.f32.mrb[63].mxu0  ;;  %v6469_v15 = vpop.f32.mrb[69].mxu1  ;;  %v6478_v24 = vadd.f32 %v10246_v3, %v13423_v48 }
 0x30f   : > { %9020 = vst [vmem:[%s11312_s11 + $0x60] sm:$0xff] %v8884_v46   ;;  %v5516_v9 = vadd.f32 %v5490_v55, %v5268_v19  ;;  %v5493_v21 = vadd.f32 %v13423_v48, %v5492_v43  ;;  %v10247_v52 = vpop.f32.mrb[70].mxu1  ;;  %v6470_v30 = vadd.f32 %v13423_v48, %v6469_v15 }
 0x310   : > { %v5519_v44 = vadd.f32 %v5501_v17, %v5271_v5  ;;  %v6472_v32 = vpop.f32.mrb[71].mxu1  ;;  %v5534_v58 = vmax.f32 %v5518_v2, 0.0  ;;  %v6481_v43 = vadd.f32 %v10247_v52, %v13423_v48 }
 0x311   : > { %v5517_v27 = vadd.f32 %v5493_v21, %v5269_v0  ;;  %v5532_v49 = vmax.f32 %v5516_v9, 0.0  ;;  %v6473_v21 = vadd.f32 %v13423_v48, %v6472_v32 }
 0x312   : > { %v5535_v22 = vmax.f32 %v5519_v44, 0.0 }
 0x313   : > { %v5533_v6 = vmax.f32 %v5517_v27, 0.0 }
 0x314   : > { %v8899_v26 = vpack.c.bf16 %v5535_v22, %v5534_v58 }
 0x315   : > { %v8894_v47 = vpack.c.bf16 %v5533_v6, %v5532_v49  ;;  %v13527_v28 = vpop.f32.mrb[72].mxu1 }
 0x316   : > { %9023 = vst [vmem:[%s11312_s11 + $0x78] sm:$0xff] %v8899_v26   ;;  %v13530_v41 = vpop.f32.mrb[73].mxu1  ;;  %v6494_v32 = vadd.f32 %v13527_v28, %v13423_v48 }
 0x317   : > { %9022 = vst [vmem:[%s11312_s11 + $0x70] sm:$0xff] %v8894_v47   ;;  %v13533_v34 = vpop.f32.mrb[74].mxu1 }
 0x318   : > { %v13535_v42 = vpop.f32.mrb[75].mxu1 }
 0x31d   : > { %v13537_v31 = vpop.f32.mrb[76].mxu1 }
 0x31e   : > { %v13539_v38 = vpop.f32.mrb[77].mxu1 }
 0x31f   : > { %v13541_v8 = vpop.f32.mrb[78].mxu1 }
 0x320   : > { %v13543_v11 = vpop.f32.mrb[79].mxu1 }
 0x353   : > { %v10210_v36 = vpop.f32.mrb[64].mxu0 }
 0x354   : > { %v6254_v33 = vadd.f32 %v10210_v36, %v13418_v40  ;;  %v6173_v12 = vpop.f32.mrb[65].mxu0 }
 0x355   : > { %v6252_v16 = vadd.f32 %v13418_v40, %v6173_v12  ;;  %v10211_v25 = vpop.f32.mrb[66].mxu0 }
 0x356   : > { %v6270_v53 = vmax.f32 %v6254_v33, 0.0  ;;  %v6255_v62 = vadd.f32 %v10211_v25, %v13418_v40  ;;  %v6176_v50 = vpop.f32.mrb[67].mxu0 }
 0x357   : > { %v6268_v37 = vmax.f32 %v6252_v16, 0.0  ;;  %v6253_v20 = vadd.f32 %v13418_v40, %v6176_v50  ;;  %v6486_v50 = vadd.f32 %v13423_v48, %v13530_v41 }
 0x358   : > { %v6518_v29 = vadd.f32 %v6462_v51, %v6270_v53  ;;  %v6271_v7 = vmax.f32 %v6255_v62, 0.0 }
 0x359   : > { %v6516_v57 = vadd.f32 %v6454_v14, %v6268_v37  ;;  %v6269_v45 = vmax.f32 %v6253_v20, 0.0 }
 0x35a   : > { %v6519_v60 = vadd.f32 %v6465_v63, %v6271_v7  ;;  %v6534_v39 = vmax.f32 %v6518_v29, 0.0  ;;  %v6497_v29 = vadd.f32 %v13533_v34, %v13423_v48 }
 0x35b   : > { %v6517_v23 = vadd.f32 %v6457_v54, %v6269_v45  ;;  %v10214_v59 = vpop.f32.mrb[68].mxu0  ;;  %v6532_v18 = vmax.f32 %v6516_v57, 0.0  ;;  %v6489_v57 = vadd.f32 %v13423_v48, %v13535_v42  ;;  %v6510_v42 = vadd.f32 %v13537_v31, %v13423_v48 }
 0x35c   : > { %v6535_v10 = vmax.f32 %v6519_v60, 0.0  ;;  %v6258_v35 = vadd.f32 %v10214_v59, %v13418_v40  ;;  %v6189_v13 = vpop.f32.mrb[69].mxu0 }
 0x35d   : > { %v6533_v56 = vmax.f32 %v6517_v23, 0.0  ;;  %v6256_v1 = vadd.f32 %v13418_v40, %v6189_v13  ;;  %v10215_v61 = vpop.f32.mrb[70].mxu0 }
 0x35e   : > { %v8909_v4 = vpack.c.bf16 %v6535_v10, %v6534_v39  ;;  %v6274_v19 = vmax.f32 %v6258_v35, 0.0  ;;  %v6259_v46 = vadd.f32 %v10215_v61, %v13418_v40  ;;  %v6192_v55 = vpop.f32.mrb[71].mxu0 }
 0x35f   : > { %v8904_v5 = vpack.c.bf16 %v6533_v56, %v6532_v18  ;;  %v6272_v2 = vmax.f32 %v6256_v1, 0.0  ;;  %v6257_v17 = vadd.f32 %v13418_v40, %v6192_v55 }
 0x360   : > { %9025 = vst [vmem:[%s11312_s11 + $0x88] sm:$0xff] %v8909_v4   ;;  %v6522_v0 = vadd.f32 %v6478_v24, %v6274_v19  ;;  %v6275_v9 = vmax.f32 %v6259_v46, 0.0 }
 0x361   : > { %9024 = vst [vmem:[%s11312_s11 + $0x80] sm:$0xff] %v8904_v5   ;;  %v6520_v3 = vadd.f32 %v6470_v30, %v6272_v2  ;;  %v6273_v44 = vmax.f32 %v6257_v17, 0.0  ;;  %v6502_v30 = vadd.f32 %v13423_v48, %v13539_v38 }
 0x362   : > { %v6523_v27 = vadd.f32 %v6481_v43, %v6275_v9  ;;  %v6538_v49 = vmax.f32 %v6522_v0, 0.0  ;;  %v6513_v0 = vadd.f32 %v13541_v8, %v13423_v48 }
 0x363   : > { %v6521_v58 = vadd.f32 %v6473_v21, %v6273_v44  ;;  %v10218_v22 = vpop.f32.mrb[72].mxu0  ;;  %v6536_v47 = vmax.f32 %v6520_v3, 0.0  ;;  %v6505_v44 = vadd.f32 %v13423_v48, %v13543_v11 }
 0x364   : > { %v6539_v6 = vmax.f32 %v6523_v27, 0.0  ;;  %v6262_v15 = vadd.f32 %v10218_v22, %v13418_v40  ;;  %v6205_v26 = vpop.f32.mrb[73].mxu0 }
 0x365   : > { %v6537_v36 = vmax.f32 %v6521_v58, 0.0  ;;  %v6260_v52 = vadd.f32 %v13418_v40, %v6205_v26  ;;  %v10219_v33 = vpop.f32.mrb[74].mxu0  ;;  %v10338_v12 = vpop.f32.mrb[80].mxu1 }
 0x366   : > { %v8919_v16 = vpack.c.bf16 %v6539_v6, %v6538_v49  ;;  %v6278_v25 = vmax.f32 %v6262_v15, 0.0  ;;  %v6263_v51 = vadd.f32 %v10219_v33, %v13418_v40  ;;  %v6208_v53 = vpop.f32.mrb[75].mxu0  ;;  %v7185_v62 = vpop.f32.mrb[81].mxu1  ;;  %v7266_v31 = vadd.f32 %v10338_v12, %v13418_v40 }
 0x367   : > { %v8914_v14 = vpack.c.bf16 %v6537_v36, %v6536_v47  ;;  %v6276_v37 = vmax.f32 %v6260_v52, 0.0  ;;  %v6261_v20 = vadd.f32 %v13418_v40, %v6208_v53  ;;  %v10339_v63 = vpop.f32.mrb[82].mxu1  ;;  %v7264_v38 = vadd.f32 %v13418_v40, %v7185_v62 }
 0x368   : > { %9027 = vst [vmem:[%s11312_s11 + $0x98] sm:$0xff] %v8919_v16   ;;  %v6526_v28 = vadd.f32 %v6494_v32, %v6278_v25  ;;  %v6279_v7 = vmax.f32 %v6263_v51, 0.0  ;;  %v7188_v54 = vpop.f32.mrb[83].mxu1  ;;  %v7267_v22 = vadd.f32 %v10339_v63, %v13418_v40  ;;  %v7282_v26 = vmax.f32 %v7266_v31, 0.0 }
 0x369   : > { %9026 = vst [vmem:[%s11312_s11 + $0x90] sm:$0xff] %v8914_v14   ;;  %v6524_v45 = vadd.f32 %v6486_v50, %v6276_v37  ;;  %v6277_v60 = vmax.f32 %v6261_v20, 0.0  ;;  %v7265_v6 = vadd.f32 %v13418_v40, %v7188_v54  ;;  %v7280_v12 = vmax.f32 %v7264_v38, 0.0 }
 0x36a   : > { %v6527_v23 = vadd.f32 %v6497_v29, %v6279_v7  ;;  %v6542_v39 = vmax.f32 %v6526_v28, 0.0  ;;  %v7283_v53 = vmax.f32 %v7267_v22, 0.0 }
 0x36b   : > { %v6525_v41 = vadd.f32 %v6489_v57, %v6277_v60  ;;  %v10222_v59 = vpop.f32.mrb[76].mxu0  ;;  %v6540_v18 = vmax.f32 %v6524_v45, 0.0  ;;  %v7281_v63 = vmax.f32 %v7265_v6, 0.0 }
 0x36c   : > { %v6543_v10 = vmax.f32 %v6527_v23, 0.0  ;;  %v6266_v35 = vadd.f32 %v10222_v59, %v13418_v40  ;;  %v6221_v13 = vpop.f32.mrb[77].mxu0 }
 0x36d   : > { %v6541_v34 = vmax.f32 %v6525_v41, 0.0  ;;  %v6264_v56 = vadd.f32 %v13418_v40, %v6221_v13  ;;  %v10223_v1 = vpop.f32.mrb[78].mxu0  ;;  %v10342_v61 = vpop.f32.mrb[84].mxu1 }
 0x36e   : > { %v8929_v24 = vpack.c.bf16 %v6543_v10, %v6542_v39  ;;  %v6282_v4 = vmax.f32 %v6266_v35, 0.0  ;;  %v6267_v19 = vadd.f32 %v10223_v1, %v13418_v40  ;;  %v6224_v46 = vpop.f32.mrb[79].mxu0  ;;  %v7201_v55 = vpop.f32.mrb[85].mxu1  ;;  %v7270_v57 = vadd.f32 %v10342_v61, %v13418_v40 }
 0x36f   : > { %v8924_v5 = vpack.c.bf16 %v6541_v34, %v6540_v18  ;;  %v6280_v2 = vmax.f32 %v6264_v56, 0.0  ;;  %v6265_v17 = vadd.f32 %v13418_v40, %v6224_v46  ;;  %v10343_v43 = vpop.f32.mrb[86].mxu1  ;;  %v7268_v23 = vadd.f32 %v13418_v40, %v7201_v55 }
 0x370   : > { %9029 = vst [vmem:[%s11312_s11 + $0xa8] sm:$0xff] %v8929_v24   ;;  %v6530_v9 = vadd.f32 %v6510_v42, %v6282_v4  ;;  %v6283_v21 = vmax.f32 %v6267_v19, 0.0  ;;  %v7204_v3 = vpop.f32.mrb[87].mxu1  ;;  %v7271_v59 = vadd.f32 %v10343_v43, %v13418_v40  ;;  %v7286_v56 = vmax.f32 %v7270_v57, 0.0 }
 0x371   : > { %9028 = vst [vmem:[%s11312_s11 + $0xa0] sm:$0xff] %v8924_v5   ;;  %v6528_v27 = vadd.f32 %v6502_v30, %v6280_v2  ;;  %v6281_v58 = vmax.f32 %v6265_v17, 0.0  ;;  %v7269_v35 = vadd.f32 %v13418_v40, %v7204_v3  ;;  %v7284_v24 = vmax.f32 %v7268_v23, 0.0 }
 0x372   : > { %v6531_v49 = vadd.f32 %v6513_v0, %v6283_v21  ;;  %v6546_v47 = vmax.f32 %v6530_v9, 0.0  ;;  %v7287_v30 = vmax.f32 %v7271_v59, 0.0 }
 0x373   : > { %v6529_v8 = vadd.f32 %v6505_v44, %v6281_v58  ;;  %v10370_v15 = vpop.f32.mrb[80].mxu0  ;;  %v6544_v11 = vmax.f32 %v6528_v27, 0.0  ;;  %v7285_v0 = vmax.f32 %v7269_v35, 0.0 }
 0x374   : > { %v6547_v36 = vmax.f32 %v6531_v49, 0.0  ;;  %v7474_v52 = vadd.f32 %v10370_v15, %v13423_v48  ;;  %v7465_v33 = vpop.f32.mrb[81].mxu0 }
 0x375   : > { %v6545_v32 = vmax.f32 %v6529_v8, 0.0  ;;  %v7466_v16 = vadd.f32 %v13423_v48, %v7465_v33  ;;  %v10346_v25 = vpop.f32.mrb[88].mxu1  ;;  %v10371_v51 = vpop.f32.mrb[82].mxu0 }
 0x376   : > { %v8939_v62 = vpack.c.bf16 %v6547_v36, %v6546_v47  ;;  %v7530_v50 = vadd.f32 %v7474_v52, %v7282_v26  ;;  %v7477_v14 = vadd.f32 %v10371_v51, %v13423_v48  ;;  %v7217_v37 = vpop.f32.mrb[89].mxu1  ;;  %v7468_v20 = vpop.f32.mrb[83].mxu0  ;;  %v7274_v3 = vadd.f32 %v10346_v25, %v13418_v40 }
 0x377   : > { %v8934_v29 = vpack.c.bf16 %v6545_v32, %v6544_v11  ;;  %v7528_v28 = vadd.f32 %v7466_v16, %v7280_v12  ;;  %v7469_v7 = vadd.f32 %v13423_v48, %v7468_v20  ;;  %v10347_v54 = vpop.f32.mrb[90].mxu1  ;;  %v7272_v27 = vadd.f32 %v13418_v40, %v7217_v37 }
 0x378   : > { %9031 = vst [vmem:[%s11312_s11 + $0xb8] sm:$0xff] %v8939_v62   ;;  %v7531_v45 = vadd.f32 %v7477_v14, %v7283_v53  ;;  %v7220_v60 = vpop.f32.mrb[91].mxu1  ;;  %v7546_v39 = vmax.f32 %v7530_v50, 0.0  ;;  %v7275_v22 = vadd.f32 %v10347_v54, %v13418_v40  ;;  %v7290_v36 = vmax.f32 %v7274_v3, 0.0 }
 0x379   : > { %9030 = vst [vmem:[%s11312_s11 + $0xb0] sm:$0xff] %v8934_v29   ;;  %v7529_v41 = vadd.f32 %v7469_v7, %v7281_v63  ;;  %v7544_v13 = vmax.f32 %v7528_v28, 0.0  ;;  %v7273_v8 = vadd.f32 %v13418_v40, %v7220_v60  ;;  %v7288_v11 = vmax.f32 %v7272_v27, 0.0 }
 0x37a   : > { %v7547_v10 = vmax.f32 %v7531_v45, 0.0  ;;  %v7291_v51 = vmax.f32 %v7275_v22, 0.0 }
 0x37b   : > { %v7545_v18 = vmax.f32 %v7529_v41, 0.0  ;;  %v10374_v34 = vpop.f32.mrb[84].mxu0  ;;  %v7289_v14 = vmax.f32 %v7273_v8, 0.0 }
 0x37c   : > { %v8949_v1 = vpack.c.bf16 %v7547_v10, %v7546_v39  ;;  %v7490_v61 = vadd.f32 %v10374_v34, %v13423_v48  ;;  %v7481_v42 = vpop.f32.mrb[85].mxu0 }
 0x37d   : > { %v8944_v4 = vpack.c.bf16 %v7545_v18, %v7544_v13  ;;  %v7482_v19 = vadd.f32 %v13423_v48, %v7481_v42  ;;  %v10350_v46 = vpop.f32.mrb[92].mxu1  ;;  %v10375_v55 = vpop.f32.mrb[86].mxu0 }
 0x37e   : > { %9033 = vst [vmem:[%s11312_s11 + $0xc8] sm:$0xff] %v8949_v1   ;;  %v7534_v5 = vadd.f32 %v7490_v61, %v7286_v56  ;;  %v7493_v2 = vadd.f32 %v10375_v55, %v13423_v48  ;;  %v7233_v17 = vpop.f32.mrb[93].mxu1  ;;  %v7484_v43 = vpop.f32.mrb[87].mxu0  ;;  %v7278_v63 = vadd.f32 %v10350_v46, %v13418_v40 }
 0x37f   : > { %9032 = vst [vmem:[%s11312_s11 + $0xc0] sm:$0xff] %v8944_v4   ;;  %v7532_v31 = vadd.f32 %v7482_v19, %v7284_v24  ;;  %v7485_v9 = vadd.f32 %v13423_v48, %v7484_v43  ;;  %v10351_v21 = vpop.f32.mrb[94].mxu1  ;;  %v7276_v28 = vadd.f32 %v13418_v40, %v7233_v17 }
 0x380   : > { %v7535_v44 = vadd.f32 %v7493_v2, %v7287_v30  ;;  %v7236_v38 = vpop.f32.mrb[95].mxu1  ;;  %v7550_v49 = vmax.f32 %v7534_v5, 0.0  ;;  %v7279_v54 = vadd.f32 %v10351_v21, %v13418_v40  ;;  %v7294_v39 = vmax.f32 %v7278_v63, 0.0 }
 0x381   : > { %v7533_v58 = vadd.f32 %v7485_v9, %v7285_v0  ;;  %v7548_v15 = vmax.f32 %v7532_v31, 0.0  ;;  %v7277_v60 = vadd.f32 %v13418_v40, %v7236_v38  ;;  %v7292_v18 = vmax.f32 %v7276_v28, 0.0 }
 0x382   : > { %v7551_v6 = vmax.f32 %v7535_v44, 0.0  ;;  %v7295_v61 = vmax.f32 %v7279_v54, 0.0 }
 0x383   : > { %v7549_v26 = vmax.f32 %v7533_v58, 0.0  ;;  %v10378_v47 = vpop.f32.mrb[88].mxu0  ;;  %v7293_v4 = vmax.f32 %v7277_v60, 0.0 }
 0x384   : > { %v8959_v52 = vpack.c.bf16 %v7551_v6, %v7550_v49  ;;  %v7506_v33 = vadd.f32 %v10378_v47, %v13423_v48  ;;  %v7497_v12 = vpop.f32.mrb[89].mxu0 }
 0x385   : > { %v8954_v32 = vpack.c.bf16 %v7549_v26, %v7548_v15  ;;  %v7498_v16 = vadd.f32 %v13423_v48, %v7497_v12  ;;  %v10379_v25 = vpop.f32.mrb[90].mxu0 }
 0x386   : > { %9035 = vst [vmem:[%s11312_s11 + $0xd8] sm:$0xff] %v8959_v52   ;;  %v7538_v53 = vadd.f32 %v7506_v33, %v7290_v36  ;;  %v7509_v62 = vadd.f32 %v10379_v25, %v13423_v48  ;;  %v7500_v50 = vpop.f32.mrb[91].mxu0 }
 0x387   : > { %9034 = vst [vmem:[%s11312_s11 + $0xd0] sm:$0xff] %v8954_v32   ;;  %v7536_v37 = vadd.f32 %v7498_v16, %v7288_v11  ;;  %v7501_v20 = vadd.f32 %v13423_v48, %v7500_v50 }
 0x388   : > { %v7539_v29 = vadd.f32 %v7509_v62, %v7291_v51  ;;  %v7554_v57 = vmax.f32 %v7538_v53, 0.0 }
 0x389   : > { %v7537_v7 = vadd.f32 %v7501_v20, %v7289_v14  ;;  %v7552_v23 = vmax.f32 %v7536_v37, 0.0 }
 0x38a   : > { %v7555_v45 = vmax.f32 %v7539_v29, 0.0 }
 0x38b   : > { %v7553_v41 = vmax.f32 %v7537_v7, 0.0  ;;  %v10382_v59 = vpop.f32.mrb[92].mxu0 }
 0x38c   : > { %v8969_v10 = vpack.c.bf16 %v7555_v45, %v7554_v57  ;;  %v7522_v35 = vadd.f32 %v10382_v59, %v13423_v48  ;;  %v7513_v13 = vpop.f32.mrb[93].mxu0 }
 0x38d   : > { %v8964_v34 = vpack.c.bf16 %v7553_v41, %v7552_v23  ;;  %v7514_v56 = vadd.f32 %v13423_v48, %v7513_v13  ;;  %v10383_v1 = vpop.f32.mrb[94].mxu0 }
 0x38e   : > { %9037 = vst [vmem:[%s11312_s11 + $0xe8] sm:$0xff] %v8969_v10   ;;  %v7542_v40 = vadd.f32 %v7522_v35, %v7294_v39  ;;  %v7525_v42 = vadd.f32 %v10383_v1, %v13423_v48  ;;  %v7516_v24 = vpop.f32.mrb[95].mxu0 }
 0x38f   : > { %9036 = vst [vmem:[%s11312_s11 + $0xe0] sm:$0xff] %v8964_v34   ;;  %v7540_v19 = vadd.f32 %v7514_v56, %v7292_v18  ;;  %v7517_v46 = vadd.f32 %v13423_v48, %v7516_v24 }
 0x390   : > { %v7543_v55 = vadd.f32 %v7525_v42, %v7295_v61  ;;  %v7558_v5 = vmax.f32 %v7542_v40, 0.0 }
 0x391   : > { %v7541_v30 = vadd.f32 %v7517_v46, %v7293_v4  ;;  %v7556_v17 = vmax.f32 %v7540_v19, 0.0 }
 0x392   : > { %v7559_v2 = vmax.f32 %v7543_v55, 0.0 }
 0x393   : > { %v7557_v43 = vmax.f32 %v7541_v30, 0.0 }
 0x394   : > { %v8979_v0 = vpack.c.bf16 %v7559_v2, %v7558_v5 }
 0x395   : > { %v8974_v48 = vpack.c.bf16 %v7557_v43, %v7556_v17 }
 0x396   : > { %9039 = vst [vmem:[%s11312_s11 + $0xf8] sm:$0xff] %v8979_v0  }
 0x397   : > { %9038 = vst [vmem:[%s11312_s11 + $0xf0] sm:$0xff] %v8974_v48  }
 0x398   : > { %11099 = shalt.err (!%p11096_p10)
}
 0x399   : > { %s11100_s11 = scalar_lea.hbm %s13641_s12, 4096  ;;  %s11104_s23 = scalar_lea.hbm %s13708_s7, 16384 }
 0x39a   : > { %p11101_p11 = scmp.ne.s32.totalorder %s13641_s12, %s11100_s11  ;;  %p11105_p0 = scmp.lt.u32.totalorder %s13641_s12, %s13708_s7 }
 0x39b   : > { %p11106_p1 = scmp.lt.u32.totalorder %s11104_s23, %s11100_s11  ;;  %p11108_p4 = scmp.lt.u32.totalorder %s11100_s11, %s13641_s12 }
 0x39c   : > { %p11102_p12 = pnand %p11101_p11, %p11277_p3 }
 0x39d   : > { %p11107_p2 = por %p11106_p1, %p11105_p0 }
 0x39e   : > { %p11103_p13 = pneg %p11102_p12 }
 0x39f   : > { %p11109_p5 = por %p11108_p4, %p11107_p2 }
 0x3a1   : > { %p11110_p6 = pnand %p11109_p5, %p11103_p13 }
 0x3a3   : > { %11113 = shalt.err (!%p11110_p6)
}
 0x3a4   : > { %s11184_s21 = smov 64   ;;  %s11185_s16 = smov 4  }
 0x3a5   : > { %10640 = dma.vmem_to_hbm [thread:$0]  (%p11277_p3), %s13643_s9, 4096, %s13641_s12, %s13649_s13, %s11184_s21, %s11184_s21, %s11185_s16  }
 0x3a6 PF: > { %p10646_p7 = scmp.ge.s32.totalorder %s11180_s8, 2  ;;  %s7671_s27 = sand.u32 1, %s11152_s24  }
 0x3a7   : > { %s7672_s17 = scalar_lea.sflag [#allocation5], %s7671_s27 }
 0x3a8   : > { %p10643_p9 = pnand %p10646_p7, %p11286_p8 }
 0x3aa   : > { %11147 = dma.done.wait (!%p10643_p9), %s7672_s17, 4096  }
 0x3ab   : > { %11149 = vsyncadd (!%p10643_p9), %s7672_s17, 4294963200  ;;  %s20_s8 = sadd.s32 1, %s11180_s8   ;;  %s13789_s14 = sld [smem:[#allocation7_spill]] }
 0x3ac   : > { %p17_p10 = scmp.ge.s32.totalorder %s20_s8, 6   ;;  %s13790_s9 = sld [smem:[#allocation8_spill]] }
 0x3ad   : > { %s13791_s24 = smov %s11156_s25  ;;  %s13792_s25 = smov %s11160_s26 }
 0x3ae   : > { %s13793_s26 = smov %s11295_s19  ;;  %s13794_s27 = smov %s11172_s29 }
 0x3af   : > { %s13795_s28 = smov %s11176_s30  ;;  %19 = sbr.rel (!%p17_p10) target bundleno = 5 (0x5), region = 95 }
 0x3b1   : > { %s13796_s29 = smov %s13789_s14 }
 0x3b2   : > { %s13797_s30 = smov %s13790_s9 }
 0x3b6   :  { %7677 = vsyncpa [#allocation5], 1 }
 0x3b7   :  { %7679 = vsyncpa [#allocation5 + $0x1], 1 }

</bundles_post_ra>
